<compile_context>
chip_gen: v7x
topology: tpu7x:2x2x1
jax: 0.10.0
libtpu: 0.0.40
codegen_flags: <defaults>
</compile_context>

<pallas_src>
import random

import jax
import jax.numpy as jnp
from jax import lax
from jax.experimental import pallas as pl
from jax.experimental.pallas import tpu as pltpu


# ----------------------------------------------------------------------------
# Model dims (logical) and lane-aligned kernel dims
# ----------------------------------------------------------------------------
EMB_DIM = 32
HID_DIM = 64
SRC_VOCAB = 48
TGT_VOCAB = 48

K_P = 128            # packed LSTM-input width: lanes 0..63 h, 64..95 x, 96 = 1.0
H_P = 128            # per-gate padded width (each gate is 128-lane aligned)
V_P = 128            # padded vocab
G_P = 4 * H_P        # fused gate width

X_OFF = HID_DIM              # 64: x embedding starts here in the packed layout
ONE_OFF = HID_DIM + EMB_DIM  # 96: constant-1 "bias" lane


# ----------------------------------------------------------------------------
# Fused encoder+decoder kernel (single invocation, fori_loops over time)
# ----------------------------------------------------------------------------
def _seq2seq_kernel(tf_ref,        # (T,) int32 in SMEM (scalar prefetch)
                    src_emb_ref,   # (S,   B, K_P) f32  packed source embeddings
                    tf_emb_ref,    # (T-1, B, K_P) f32  packed teacher-forced embeddings
                    enc_w_ref,     # (K_P, G_P) bf16    fused [W_hh; W_ih; bias]
                    dec_w_ref,     # (K_P, G_P) bf16
                    fc_w_ref,      # (H_P, V_P) bf16
                    fc_b_ref,      # (1,   V_P) f32     (-1e9 on padded vocab cols)
                    dec_emb_ref,   # (V_P, K_P) bf16    packed decoder embedding table
                    out_ref,       # (T-1, B, V_P) f32  logits
                    h_sc, c_sc, x_sc):
    n_src = src_emb_ref.shape[0]
    n_dec = tf_emb_ref.shape[0]
    B = h_sc.shape[0]

    h_sc[...] = jnp.zeros_like(h_sc)
    c_sc[...] = jnp.zeros_like(c_sc)

    def lstm_step(x_packed, w_ref):
        # Packed LHS: h occupies lanes 0..63 (its padded lanes provably stay 0),
        # x occupies 64..95, lane 96 carries 1.0 -> K=128 matmul, bias folded
        # into weight row 96.  Gate order i, f, g, o; each gate 128-lane block.
        lhs = (h_sc[...] + x_packed).astype(jnp.bfloat16)
        gates = jnp.dot(lhs, w_ref[...], preferred_element_type=jnp.float32)
        i = jax.nn.sigmoid(gates[:, 0 * H_P:1 * H_P])
        f = jax.nn.sigmoid(gates[:, 1 * H_P:2 * H_P])
        g = jnp.tanh(gates[:, 2 * H_P:3 * H_P])
        o = jax.nn.sigmoid(gates[:, 3 * H_P:4 * H_P])
        c_new = f * c_sc[...] + i * g
        h_new = o * jnp.tanh(c_new)
        h_sc[...] = h_new
        c_sc[...] = c_new
        return h_new

    # ---------------- encoder ----------------
    def enc_body(t, carry):
        lstm_step(src_emb_ref[t], enc_w_ref)
        return carry

    lax.fori_loop(0, n_src, enc_body, 0, unroll=True)

    # ---------------- decoder ----------------
    fc_bias = jnp.broadcast_to(fc_b_ref[...], (B, V_P))   # hoisted out of the loop

    def dec_body(s, carry):
        # Teacher forcing: x = embedding(target[s]).  Step 0 always uses
        # target[0] (matches the PyTorch reference) regardless of the mask.
        @pl.when(jnp.logical_or(s == 0, tf_ref[s] != 0))
        def _():
            x_sc[...] = tf_emb_ref[s]

        h_new = lstm_step(x_sc[...], dec_w_ref)

        logits = jnp.dot(h_new.astype(jnp.bfloat16), fc_w_ref[...],
                         preferred_element_type=jnp.float32) + fc_bias
        out_ref[s] = logits                                # lane-dense 128-wide store

        # Greedy feedback is only consumed when the NEXT step is NOT
        # teacher-forced (and never after the last step) -> skip it otherwise.
        # tf_ref has length T = n_dec + 1 so tf_ref[s+1] is always in bounds.
        @pl.when(jnp.logical_and(s + 1 < n_dec, tf_ref[s + 1] == 0))
        def _():
            col = lax.broadcasted_iota(jnp.int32, (B, V_P), 1).astype(jnp.float32)
            max_v = jnp.max(logits, axis=1, keepdims=True)
            best = jnp.min(jnp.where(logits >= max_v, col, jnp.float32(V_P)),
                           axis=1, keepdims=True)          # first-max index
            onehot = (col == best).astype(jnp.bfloat16)
            # one-hot MXU gather of the next packed input embedding (the table
            # already carries the 1.0 bias lane) -> feedback never leaves VMEM.
            x_sc[...] = jnp.dot(onehot, dec_emb_ref[...],
                                preferred_element_type=jnp.float32)

        return carry

    lax.fori_loop(0, n_dec, dec_body, 0, unroll=True)


def _seq2seq_call(tf_mask, src_emb, tf_emb, enc_w, dec_w, fc_w, fc_b, dec_emb):
    S, B, _ = src_emb.shape
    steps = tf_emb.shape[0]
    grid_spec = pltpu.PrefetchScalarGridSpec(
        num_scalar_prefetch=1,
        grid=(1,),
        in_specs=[
            pl.BlockSpec((S, B, K_P), lambda i, tf: (0, 0, 0)),      # packed src emb
            pl.BlockSpec((steps, B, K_P), lambda i, tf: (0, 0, 0)),  # packed tf emb
            pl.BlockSpec((K_P, G_P), lambda i, tf: (0, 0)),          # fused enc W
            pl.BlockSpec((K_P, G_P), lambda i, tf: (0, 0)),          # fused dec W
            pl.BlockSpec((H_P, V_P), lambda i, tf: (0, 0)),          # fc_w
            pl.BlockSpec((1, V_P), lambda i, tf: (0, 0)),            # fc_b
            pl.BlockSpec((V_P, K_P), lambda i, tf: (0, 0)),          # dec emb table
        ],
        out_specs=pl.BlockSpec((steps, B, V_P), lambda i, tf: (0, 0, 0)),
        scratch_shapes=[pltpu.VMEM((B, K_P), jnp.float32),           # h
                        pltpu.VMEM((B, K_P), jnp.float32),           # c
                        pltpu.VMEM((B, K_P), jnp.float32)],          # packed fed-back x
    )
    return pl.pallas_call(
        _seq2seq_kernel,
        out_shape=jax.ShapeDtypeStruct((steps, B, V_P), jnp.float32),
        grid_spec=grid_spec,
        compiler_params=pltpu.CompilerParams(
            dimension_semantics=("arbitrary",)),
    )(tf_mask, src_emb, tf_emb, enc_w, dec_w, fc_w, fc_b, dec_emb)


# ----------------------------------------------------------------------------
# Parameter init (logical PyTorch-layout params, then packed/fused for kernel)
# ----------------------------------------------------------------------------
def init_params(key):
    ks = jax.random.split(key, 10)
    s = 0.1
    enc_emb = s * jax.random.normal(ks[0], (SRC_VOCAB, EMB_DIM), jnp.float32)
    enc_w_ih = s * jax.random.normal(ks[1], (EMB_DIM, 4 * HID_DIM), jnp.float32)
    enc_w_hh = s * jax.random.normal(ks[2], (HID_DIM, 4 * HID_DIM), jnp.float32)
    enc_b = s * jax.random.normal(ks[3], (1, 4 * HID_DIM), jnp.float32)
    dec_emb = s * jax.random.normal(ks[4], (TGT_VOCAB, EMB_DIM), jnp.float32)
    dec_w_ih = s * jax.random.normal(ks[5], (EMB_DIM, 4 * HID_DIM), jnp.float32)
    dec_w_hh = s * jax.random.normal(ks[6], (HID_DIM, 4 * HID_DIM), jnp.float32)
    dec_b = s * jax.random.normal(ks[7], (1, 4 * HID_DIM), jnp.float32)
    fc_w = s * jax.random.normal(ks[8], (HID_DIM, TGT_VOCAB), jnp.float32)
    fc_b = s * jax.random.normal(ks[9], (1, TGT_VOCAB), jnp.float32)

    def pad_gates(w):
        # (rows, 4H) -> (rows, 4*H_P): each gate gets its own 128-lane block
        parts = [jnp.pad(w[:, k * HID_DIM:(k + 1) * HID_DIM],
                         ((0, 0), (0, H_P - HID_DIM))) for k in range(4)]
        return jnp.concatenate(parts, axis=1)

    def fuse_lstm(w_ih, w_hh, b):
        # Packed-K layout: rows 0..63 = W_hh, rows 64..95 = W_ih, row 96 = bias
        w = jnp.zeros((K_P, G_P), jnp.float32)
        w = w.at[0:HID_DIM, :].set(pad_gates(w_hh))
        w = w.at[X_OFF:X_OFF + EMB_DIM, :].set(pad_gates(w_ih))
        w = w.at[ONE_OFF, :].set(pad_gates(b)[0])
        return w.astype(jnp.bfloat16)

    def pack_emb(emb, rows_out):
        # Embedding placed at lanes 64..95, constant 1.0 at lane 96 (bias lane)
        out = jnp.zeros((rows_out, K_P), jnp.float32)
        out = out.at[:emb.shape[0], X_OFF:X_OFF + EMB_DIM].set(emb)
        out = out.at[:emb.shape[0], ONE_OFF].set(1.0)
        return out

    dec_emb_packed = pack_emb(dec_emb, V_P)

    return {
        "enc_emb": pack_emb(enc_emb, SRC_VOCAB),              # (48,128) f32, gathered on host side
        "dec_emb_f32": dec_emb_packed[:TGT_VOCAB],            # (48,128) f32, teacher-forced gather
        "dec_emb_bf16": dec_emb_packed.astype(jnp.bfloat16),  # (128,128) bf16, in-kernel greedy gather
        "enc_w": fuse_lstm(enc_w_ih, enc_w_hh, enc_b),        # (128,512) bf16
        "dec_w": fuse_lstm(dec_w_ih, dec_w_hh, dec_b),        # (128,512) bf16
        "fc_w": jnp.pad(fc_w, ((0, H_P - HID_DIM),
                               (0, V_P - TGT_VOCAB))).astype(jnp.bfloat16),
        "fc_b": jnp.pad(fc_b, ((0, 0), (0, V_P - TGT_VOCAB)),
                        constant_values=-1e9),                # mask padded vocab cols
    }


# ----------------------------------------------------------------------------
# Full forward (jitted): embedding gathers + ONE fused kernel + output assembly
# ----------------------------------------------------------------------------
@jax.jit
def seq2seq_forward(params, source, target, tf_mask):
    B = source.shape[1]
    # One gather for the whole source / teacher-forced targets (packed tables).
    src_emb = jnp.take(params["enc_emb"], source, axis=0)          # (S,   B, 128) f32
    tf_emb = jnp.take(params["dec_emb_f32"], target[:-1], axis=0)  # (T-1, B, 128) f32

    logits = _seq2seq_call(tf_mask, src_emb, tf_emb,
                           params["enc_w"], params["dec_w"],
                           params["fc_w"], params["fc_b"],
                           params["dec_emb_bf16"])

    # outputs[0] stays zero, exactly like the PyTorch reference; drop vocab pad.
    outputs = jnp.concatenate(
        [jnp.zeros((1, B, TGT_VOCAB), jnp.float32),
         logits[:, :, :TGT_VOCAB]], axis=0)
    return outputs


def make_tf_mask(tgt_len, teacher_force_ratio=0.5, seed=0):
    """Host-side stand-in for python random.random() teacher forcing.
    mask[s] == 1 -> decoder step s consumes target[s]; mask[0] is always 1.
    Padded to length tgt_len so the kernel can safely read mask[s+1]."""
    rng = random.Random(seed)
    mask = [1]
    for _ in range(1, tgt_len - 1):
        mask.append(1 if rng.random() < teacher_force_ratio else 0)
    mask.append(1)  # padding element (never consumed: guarded by s+1 < steps)
    return jnp.asarray(mask, jnp.int32)


# ----------------------------------------------------------------------------
# Main
# ----------------------------------------------------------------------------
if __name__ == "__main__":
    BATCH = 8
    SRC_LEN = 6
    TGT_LEN = 7

    key = jax.random.PRNGKey(0)
    k_param, k_src, k_tgt = jax.random.split(key, 3)

    params = init_params(k_param)
    source = jax.random.randint(k_src, (SRC_LEN, BATCH), 0, SRC_VOCAB, jnp.int32)
    target = jax.random.randint(k_tgt, (TGT_LEN, BATCH), 0, TGT_VOCAB, jnp.int32)
    tf_mask = make_tf_mask(TGT_LEN, teacher_force_ratio=0.5, seed=0)

    outputs = seq2seq_forward(params, source, target, tf_mask)
    outputs = jax.block_until_ready(outputs)

    assert outputs.shape == (TGT_LEN, BATCH, TGT_VOCAB)
    assert bool(jnp.all(outputs[0] == 0.0))
    assert bool(jnp.all(jnp.isfinite(outputs)))
    print("KERNEL_OK")
</pallas_src>

<mosaic_0001>
module attributes {stable_mosaic.version = 11 : i64} {
  func.func @_seq2seq_kernel(%arg0: i32, %arg1: memref<7xi32, #tpu.memory_space<smem>>, %arg2: memref<6x8x128xf32, #tpu.memory_space<vmem>>, %arg3: memref<6x8x128xf32, #tpu.memory_space<vmem>>, %arg4: memref<128x512xbf16, #tpu.memory_space<vmem>>, %arg5: memref<128x512xbf16, #tpu.memory_space<vmem>>, %arg6: memref<128x128xbf16, #tpu.memory_space<vmem>>, %arg7: memref<1x128xf32, #tpu.memory_space<vmem>>, %arg8: memref<128x128xbf16, #tpu.memory_space<vmem>>, %arg9: memref<6x8x128xf32, #tpu.memory_space<vmem>>, %arg10: memref<8x128xf32, #tpu.memory_space<vmem>>, %arg11: memref<8x128xf32, #tpu.memory_space<vmem>>, %arg12: memref<8x128xf32, #tpu.memory_space<vmem>>) attributes {dimension_semantics = [#tpu.dimension_semantics<arbitrary>], iteration_bounds = array<i64: 1>, scalar_prefetch = 1 : i64, scratch_operands = 3 : i64, tpu.core_type = #tpu.core_type<tc>, window_params = [{pipeline_mode = #tpu.pipeline_mode<synchronous>, transform_indices = @transform_0, window_bounds = array<i64: 6, 8, 128>}, {pipeline_mode = #tpu.pipeline_mode<synchronous>, transform_indices = @transform_1, window_bounds = array<i64: 6, 8, 128>}, {pipeline_mode = #tpu.pipeline_mode<synchronous>, transform_indices = @transform_2, window_bounds = array<i64: 128, 512>}, {pipeline_mode = #tpu.pipeline_mode<synchronous>, transform_indices = @transform_3, window_bounds = array<i64: 128, 512>}, {pipeline_mode = #tpu.pipeline_mode<synchronous>, transform_indices = @transform_4, window_bounds = array<i64: 128, 128>}, {pipeline_mode = #tpu.pipeline_mode<synchronous>, transform_indices = @transform_5, window_bounds = array<i64: 1, 128>}, {pipeline_mode = #tpu.pipeline_mode<synchronous>, transform_indices = @transform_6, window_bounds = array<i64: 128, 128>}, {pipeline_mode = #tpu.pipeline_mode<synchronous>, transform_indices = @transform_7, window_bounds = array<i64: 6, 8, 128>}]} {
    %cst = arith.constant 0.000000e+00 : f32
    %0 = vector.broadcast %cst : f32 to vector<8x128xf32>
    %c0 = arith.constant 0 : index
    %c0_0 = arith.constant 0 : index
    %1 = vector.load %arg10[%c0, %c0_0] : memref<8x128xf32, #tpu.memory_space<vmem>>, vector<8x128xf32>
    tpu.vector_store %arg10[%c0, %c0_0], %0 {strides = array<i32>} : memref<8x128xf32, #tpu.memory_space<vmem>>, vector<8x128xf32>,
    %cst_1 = arith.constant 0.000000e+00 : f32
    %2 = vector.broadcast %cst_1 : f32 to vector<8x128xf32>
    %c0_2 = arith.constant 0 : index
    %c0_3 = arith.constant 0 : index
    %3 = vector.load %arg11[%c0_2, %c0_3] : memref<8x128xf32, #tpu.memory_space<vmem>>, vector<8x128xf32>
    tpu.vector_store %arg11[%c0_2, %c0_3], %2 {strides = array<i32>} : memref<8x128xf32, #tpu.memory_space<vmem>>, vector<8x128xf32>,
    %c0_i32 = arith.constant 0 : i32
    %4 = arith.index_cast %c0_i32 : i32 to index
    %c0_4 = arith.constant 0 : index
    %c0_5 = arith.constant 0 : index
    %5 = vector.load %arg2[%4, %c0_4, %c0_5] : memref<6x8x128xf32, #tpu.memory_space<vmem>>, vector<1x8x128xf32>
    %6 = vector.shape_cast %5 : vector<1x8x128xf32> to vector<8x128xf32>
    %c0_6 = arith.constant 0 : index
    %c0_7 = arith.constant 0 : index
    %7 = vector.load %arg10[%c0_6, %c0_7] : memref<8x128xf32, #tpu.memory_space<vmem>>, vector<8x128xf32>
    %8 = arith.addf %7, %6 : vector<8x128xf32>
    %9 = arith.truncf %8 : vector<8x128xf32> to vector<8x128xbf16>
    %c0_8 = arith.constant 0 : index
    %c0_9 = arith.constant 0 : index
    %10 = vector.load %arg4[%c0_8, %c0_9] : memref<128x512xbf16, #tpu.memory_space<vmem>>, vector<128x512xbf16>
    %cst_10 = arith.constant dense<0.000000e+00> : vector<8x512xf32>
    %11 = tpu.matmul %9, %10, %cst_10 {dimension_numbers = #tpu.dot_dimension_numbers<[1], [0], [0], [1], [0, 0, 1, 1], [], []>} : vector<8x128xbf16>, vector<128x512xbf16>, vector<8x512xf32> -> vector<8x512xf32>
    %12 = vector.extract_strided_slice %11 {offsets = [0, 0], sizes = [8, 128], strides = [1, 1]} : vector<8x512xf32> to vector<8x128xf32>
    %13 = arith.negf %12 : vector<8x128xf32>
    %14 = math.exp %13 : vector<8x128xf32>
    %cst_11 = arith.constant 1.000000e+00 : f32
    %15 = vector.broadcast %cst_11 : f32 to vector<8x128xf32>
    %16 = arith.addf %15, %14 : vector<8x128xf32>
    %17 = arith.divf %15, %16 : vector<8x128xf32>
    %18 = vector.extract_strided_slice %11 {offsets = [0, 128], sizes = [8, 128], strides = [1, 1]} : vector<8x512xf32> to vector<8x128xf32>
    %19 = arith.negf %18 : vector<8x128xf32>
    %20 = math.exp %19 : vector<8x128xf32>
    %cst_12 = arith.constant 1.000000e+00 : f32
    %21 = vector.broadcast %cst_12 : f32 to vector<8x128xf32>
    %22 = arith.addf %21, %20 : vector<8x128xf32>
    %23 = arith.divf %21, %22 : vector<8x128xf32>
    %24 = vector.extract_strided_slice %11 {offsets = [0, 256], sizes = [8, 128], strides = [1, 1]} : vector<8x512xf32> to vector<8x128xf32>
    %25 = math.tanh %24 : vector<8x128xf32>
    %26 = vector.extract_strided_slice %11 {offsets = [0, 384], sizes = [8, 128], strides = [1, 1]} : vector<8x512xf32> to vector<8x128xf32>
    %27 = arith.negf %26 : vector<8x128xf32>
    %28 = math.exp %27 : vector<8x128xf32>
    %cst_13 = arith.constant 1.000000e+00 : f32
    %29 = vector.broadcast %cst_13 : f32 to vector<8x128xf32>
    %30 = arith.addf %29, %28 : vector<8x128xf32>
    %31 = arith.divf %29, %30 : vector<8x128xf32>
    %c0_14 = arith.constant 0 : index
    %c0_15 = arith.constant 0 : index
    %32 = vector.load %arg11[%c0_14, %c0_15] : memref<8x128xf32, #tpu.memory_space<vmem>>, vector<8x128xf32>
    %33 = arith.mulf %23, %32 : vector<8x128xf32>
    %34 = arith.mulf %17, %25 : vector<8x128xf32>
    %35 = arith.addf %33, %34 : vector<8x128xf32>
    %36 = math.tanh %35 : vector<8x128xf32>
    %37 = arith.mulf %31, %36 : vector<8x128xf32>
    %c0_16 = arith.constant 0 : index
    %c0_17 = arith.constant 0 : index
    %38 = vector.load %arg10[%c0_16, %c0_17] : memref<8x128xf32, #tpu.memory_space<vmem>>, vector<8x128xf32>
    tpu.vector_store %arg10[%c0_16, %c0_17], %37 {strides = array<i32>} : memref<8x128xf32, #tpu.memory_space<vmem>>, vector<8x128xf32>,
    %c0_18 = arith.constant 0 : index
    %c0_19 = arith.constant 0 : index
    %39 = vector.load %arg11[%c0_18, %c0_19] : memref<8x128xf32, #tpu.memory_space<vmem>>, vector<8x128xf32>
    tpu.vector_store %arg11[%c0_18, %c0_19], %35 {strides = array<i32>} : memref<8x128xf32, #tpu.memory_space<vmem>>, vector<8x128xf32>,
    %c1_i32 = arith.constant 1 : i32
    %40 = arith.index_cast %c1_i32 : i32 to index
    %c0_20 = arith.constant 0 : index
    %c0_21 = arith.constant 0 : index
    %41 = vector.load %arg2[%40, %c0_20, %c0_21] : memref<6x8x128xf32, #tpu.memory_space<vmem>>, vector<1x8x128xf32>
    %42 = vector.shape_cast %41 : vector<1x8x128xf32> to vector<8x128xf32>
    %c0_22 = arith.constant 0 : index
    %c0_23 = arith.constant 0 : index
    %43 = vector.load %arg10[%c0_22, %c0_23] : memref<8x128xf32, #tpu.memory_space<vmem>>, vector<8x128xf32>
    %44 = arith.addf %43, %42 : vector<8x128xf32>
    %45 = arith.truncf %44 : vector<8x128xf32> to vector<8x128xbf16>
    %c0_24 = arith.constant 0 : index
    %c0_25 = arith.constant 0 : index
    %46 = vector.load %arg4[%c0_24, %c0_25] : memref<128x512xbf16, #tpu.memory_space<vmem>>, vector<128x512xbf16>
    %cst_26 = arith.constant dense<0.000000e+00> : vector<8x512xf32>
    %47 = tpu.matmul %45, %46, %cst_26 {dimension_numbers = #tpu.dot_dimension_numbers<[1], [0], [0], [1], [0, 0, 1, 1], [], []>} : vector<8x128xbf16>, vector<128x512xbf16>, vector<8x512xf32> -> vector<8x512xf32>
    %48 = vector.extract_strided_slice %47 {offsets = [0, 0], sizes = [8, 128], strides = [1, 1]} : vector<8x512xf32> to vector<8x128xf32>
    %49 = arith.negf %48 : vector<8x128xf32>
    %50 = math.exp %49 : vector<8x128xf32>
    %cst_27 = arith.constant 1.000000e+00 : f32
    %51 = vector.broadcast %cst_27 : f32 to vector<8x128xf32>
    %52 = arith.addf %51, %50 : vector<8x128xf32>
    %53 = arith.divf %51, %52 : vector<8x128xf32>
    %54 = vector.extract_strided_slice %47 {offsets = [0, 128], sizes = [8, 128], strides = [1, 1]} : vector<8x512xf32> to vector<8x128xf32>
    %55 = arith.negf %54 : vector<8x128xf32>
    %56 = math.exp %55 : vector<8x128xf32>
    %cst_28 = arith.constant 1.000000e+00 : f32
    %57 = vector.broadcast %cst_28 : f32 to vector<8x128xf32>
    %58 = arith.addf %57, %56 : vector<8x128xf32>
    %59 = arith.divf %57, %58 : vector<8x128xf32>
    %60 = vector.extract_strided_slice %47 {offsets = [0, 256], sizes = [8, 128], strides = [1, 1]} : vector<8x512xf32> to vector<8x128xf32>
    %61 = math.tanh %60 : vector<8x128xf32>
    %62 = vector.extract_strided_slice %47 {offsets = [0, 384], sizes = [8, 128], strides = [1, 1]} : vector<8x512xf32> to vector<8x128xf32>
    %63 = arith.negf %62 : vector<8x128xf32>
    %64 = math.exp %63 : vector<8x128xf32>
    %cst_29 = arith.constant 1.000000e+00 : f32
    %65 = vector.broadcast %cst_29 : f32 to vector<8x128xf32>
    %66 = arith.addf %65, %64 : vector<8x128xf32>
    %67 = arith.divf %65, %66 : vector<8x128xf32>
    %c0_30 = arith.constant 0 : index
    %c0_31 = arith.constant 0 : index
    %68 = vector.load %arg11[%c0_30, %c0_31] : memref<8x128xf32, #tpu.memory_space<vmem>>, vector<8x128xf32>
    %69 = arith.mulf %59, %68 : vector<8x128xf32>
    %70 = arith.mulf %53, %61 : vector<8x128xf32>
    %71 = arith.addf %69, %70 : vector<8x128xf32>
    %72 = math.tanh %71 : vector<8x128xf32>
    %73 = arith.mulf %67, %72 : vector<8x128xf32>
    %c0_32 = arith.constant 0 : index
    %c0_33 = arith.constant 0 : index
    %74 = vector.load %arg10[%c0_32, %c0_33] : memref<8x128xf32, #tpu.memory_space<vmem>>, vector<8x128xf32>
    tpu.vector_store %arg10[%c0_32, %c0_33], %73 {strides = array<i32>} : memref<8x128xf32, #tpu.memory_space<vmem>>, vector<8x128xf32>,
    %c0_34 = arith.constant 0 : index
    %c0_35 = arith.constant 0 : index
    %75 = vector.load %arg11[%c0_34, %c0_35] : memref<8x128xf32, #tpu.memory_space<vmem>>, vector<8x128xf32>
    tpu.vector_store %arg11[%c0_34, %c0_35], %71 {strides = array<i32>} : memref<8x128xf32, #tpu.memory_space<vmem>>, vector<8x128xf32>,
    %c2_i32 = arith.constant 2 : i32
    %76 = arith.index_cast %c2_i32 : i32 to index
    %c0_36 = arith.constant 0 : index
    %c0_37 = arith.constant 0 : index
    %77 = vector.load %arg2[%76, %c0_36, %c0_37] : memref<6x8x128xf32, #tpu.memory_space<vmem>>, vector<1x8x128xf32>
    %78 = vector.shape_cast %77 : vector<1x8x128xf32> to vector<8x128xf32>
    %c0_38 = arith.constant 0 : index
    %c0_39 = arith.constant 0 : index
    %79 = vector.load %arg10[%c0_38, %c0_39] : memref<8x128xf32, #tpu.memory_space<vmem>>, vector<8x128xf32>
    %80 = arith.addf %79, %78 : vector<8x128xf32>
    %81 = arith.truncf %80 : vector<8x128xf32> to vector<8x128xbf16>
    %c0_40 = arith.constant 0 : index
    %c0_41 = arith.constant 0 : index
    %82 = vector.load %arg4[%c0_40, %c0_41] : memref<128x512xbf16, #tpu.memory_space<vmem>>, vector<128x512xbf16>
    %cst_42 = arith.constant dense<0.000000e+00> : vector<8x512xf32>
    %83 = tpu.matmul %81, %82, %cst_42 {dimension_numbers = #tpu.dot_dimension_numbers<[1], [0], [0], [1], [0, 0, 1, 1], [], []>} : vector<8x128xbf16>, vector<128x512xbf16>, vector<8x512xf32> -> vector<8x512xf32>
    %84 = vector.extract_strided_slice %83 {offsets = [0, 0], sizes = [8, 128], strides = [1, 1]} : vector<8x512xf32> to vector<8x128xf32>
    %85 = arith.negf %84 : vector<8x128xf32>
    %86 = math.exp %85 : vector<8x128xf32>
    %cst_43 = arith.constant 1.000000e+00 : f32
    %87 = vector.broadcast %cst_43 : f32 to vector<8x128xf32>
    %88 = arith.addf %87, %86 : vector<8x128xf32>
    %89 = arith.divf %87, %88 : vector<8x128xf32>
    %90 = vector.extract_strided_slice %83 {offsets = [0, 128], sizes = [8, 128], strides = [1, 1]} : vector<8x512xf32> to vector<8x128xf32>
    %91 = arith.negf %90 : vector<8x128xf32>
    %92 = math.exp %91 : vector<8x128xf32>
    %cst_44 = arith.constant 1.000000e+00 : f32
    %93 = vector.broadcast %cst_44 : f32 to vector<8x128xf32>
    %94 = arith.addf %93, %92 : vector<8x128xf32>
    %95 = arith.divf %93, %94 : vector<8x128xf32>
    %96 = vector.extract_strided_slice %83 {offsets = [0, 256], sizes = [8, 128], strides = [1, 1]} : vector<8x512xf32> to vector<8x128xf32>
    %97 = math.tanh %96 : vector<8x128xf32>
    %98 = vector.extract_strided_slice %83 {offsets = [0, 384], sizes = [8, 128], strides = [1, 1]} : vector<8x512xf32> to vector<8x128xf32>
    %99 = arith.negf %98 : vector<8x128xf32>
    %100 = math.exp %99 : vector<8x128xf32>
    %cst_45 = arith.constant 1.000000e+00 : f32
    %101 = vector.broadcast %cst_45 : f32 to vector<8x128xf32>
    %102 = arith.addf %101, %100 : vector<8x128xf32>
    %103 = arith.divf %101, %102 : vector<8x128xf32>
    %c0_46 = arith.constant 0 : index
    %c0_47 = arith.constant 0 : index
    %104 = vector.load %arg11[%c0_46, %c0_47] : memref<8x128xf32, #tpu.memory_space<vmem>>, vector<8x128xf32>
    %105 = arith.mulf %95, %104 : vector<8x128xf32>
    %106 = arith.mulf %89, %97 : vector<8x128xf32>
    %107 = arith.addf %105, %106 : vector<8x128xf32>
    %108 = math.tanh %107 : vector<8x128xf32>
    %109 = arith.mulf %103, %108 : vector<8x128xf32>
    %c0_48 = arith.constant 0 : index
    %c0_49 = arith.constant 0 : index
    %110 = vector.load %arg10[%c0_48, %c0_49] : memref<8x128xf32, #tpu.memory_space<vmem>>, vector<8x128xf32>
    tpu.vector_store %arg10[%c0_48, %c0_49], %109 {strides = array<i32>} : memref<8x128xf32, #tpu.memory_space<vmem>>, vector<8x128xf32>,
    %c0_50 = arith.constant 0 : index
    %c0_51 = arith.constant 0 : index
    %111 = vector.load %arg11[%c0_50, %c0_51] : memref<8x128xf32, #tpu.memory_space<vmem>>, vector<8x128xf32>
    tpu.vector_store %arg11[%c0_50, %c0_51], %107 {strides = array<i32>} : memref<8x128xf32, #tpu.memory_space<vmem>>, vector<8x128xf32>,
    %c3_i32 = arith.constant 3 : i32
    %112 = arith.index_cast %c3_i32 : i32 to index
    %c0_52 = arith.constant 0 : index
    %c0_53 = arith.constant 0 : index
    %113 = vector.load %arg2[%112, %c0_52, %c0_53] : memref<6x8x128xf32, #tpu.memory_space<vmem>>, vector<1x8x128xf32>
    %114 = vector.shape_cast %113 : vector<1x8x128xf32> to vector<8x128xf32>
    %c0_54 = arith.constant 0 : index
    %c0_55 = arith.constant 0 : index
    %115 = vector.load %arg10[%c0_54, %c0_55] : memref<8x128xf32, #tpu.memory_space<vmem>>, vector<8x128xf32>
    %116 = arith.addf %115, %114 : vector<8x128xf32>
    %117 = arith.truncf %116 : vector<8x128xf32> to vector<8x128xbf16>
    %c0_56 = arith.constant 0 : index
    %c0_57 = arith.constant 0 : index
    %118 = vector.load %arg4[%c0_56, %c0_57] : memref<128x512xbf16, #tpu.memory_space<vmem>>, vector<128x512xbf16>
    %cst_58 = arith.constant dense<0.000000e+00> : vector<8x512xf32>
    %119 = tpu.matmul %117, %118, %cst_58 {dimension_numbers = #tpu.dot_dimension_numbers<[1], [0], [0], [1], [0, 0, 1, 1], [], []>} : vector<8x128xbf16>, vector<128x512xbf16>, vector<8x512xf32> -> vector<8x512xf32>
    %120 = vector.extract_strided_slice %119 {offsets = [0, 0], sizes = [8, 128], strides = [1, 1]} : vector<8x512xf32> to vector<8x128xf32>
    %121 = arith.negf %120 : vector<8x128xf32>
    %122 = math.exp %121 : vector<8x128xf32>
    %cst_59 = arith.constant 1.000000e+00 : f32
    %123 = vector.broadcast %cst_59 : f32 to vector<8x128xf32>
    %124 = arith.addf %123, %122 : vector<8x128xf32>
    %125 = arith.divf %123, %124 : vector<8x128xf32>
    %126 = vector.extract_strided_slice %119 {offsets = [0, 128], sizes = [8, 128], strides = [1, 1]} : vector<8x512xf32> to vector<8x128xf32>
    %127 = arith.negf %126 : vector<8x128xf32>
    %128 = math.exp %127 : vector<8x128xf32>
    %cst_60 = arith.constant 1.000000e+00 : f32
    %129 = vector.broadcast %cst_60 : f32 to vector<8x128xf32>
    %130 = arith.addf %129, %128 : vector<8x128xf32>
    %131 = arith.divf %129, %130 : vector<8x128xf32>
    %132 = vector.extract_strided_slice %119 {offsets = [0, 256], sizes = [8, 128], strides = [1, 1]} : vector<8x512xf32> to vector<8x128xf32>
    %133 = math.tanh %132 : vector<8x128xf32>
    %134 = vector.extract_strided_slice %119 {offsets = [0, 384], sizes = [8, 128], strides = [1, 1]} : vector<8x512xf32> to vector<8x128xf32>
    %135 = arith.negf %134 : vector<8x128xf32>
    %136 = math.exp %135 : vector<8x128xf32>
    %cst_61 = arith.constant 1.000000e+00 : f32
    %137 = vector.broadcast %cst_61 : f32 to vector<8x128xf32>
    %138 = arith.addf %137, %136 : vector<8x128xf32>
    %139 = arith.divf %137, %138 : vector<8x128xf32>
    %c0_62 = arith.constant 0 : index
    %c0_63 = arith.constant 0 : index
    %140 = vector.load %arg11[%c0_62, %c0_63] : memref<8x128xf32, #tpu.memory_space<vmem>>, vector<8x128xf32>
    %141 = arith.mulf %131, %140 : vector<8x128xf32>
    %142 = arith.mulf %125, %133 : vector<8x128xf32>
    %143 = arith.addf %141, %142 : vector<8x128xf32>
    %144 = math.tanh %143 : vector<8x128xf32>
    %145 = arith.mulf %139, %144 : vector<8x128xf32>
    %c0_64 = arith.constant 0 : index
    %c0_65 = arith.constant 0 : index
    %146 = vector.load %arg10[%c0_64, %c0_65] : memref<8x128xf32, #tpu.memory_space<vmem>>, vector<8x128xf32>
    tpu.vector_store %arg10[%c0_64, %c0_65], %145 {strides = array<i32>} : memref<8x128xf32, #tpu.memory_space<vmem>>, vector<8x128xf32>,
    %c0_66 = arith.constant 0 : index
    %c0_67 = arith.constant 0 : index
    %147 = vector.load %arg11[%c0_66, %c0_67] : memref<8x128xf32, #tpu.memory_space<vmem>>, vector<8x128xf32>
    tpu.vector_store %arg11[%c0_66, %c0_67], %143 {strides = array<i32>} : memref<8x128xf32, #tpu.memory_space<vmem>>, vector<8x128xf32>,
    %c4_i32 = arith.constant 4 : i32
    %148 = arith.index_cast %c4_i32 : i32 to index
    %c0_68 = arith.constant 0 : index
    %c0_69 = arith.constant 0 : index
    %149 = vector.load %arg2[%148, %c0_68, %c0_69] : memref<6x8x128xf32, #tpu.memory_space<vmem>>, vector<1x8x128xf32>
    %150 = vector.shape_cast %149 : vector<1x8x128xf32> to vector<8x128xf32>
    %c0_70 = arith.constant 0 : index
    %c0_71 = arith.constant 0 : index
    %151 = vector.load %arg10[%c0_70, %c0_71] : memref<8x128xf32, #tpu.memory_space<vmem>>, vector<8x128xf32>
    %152 = arith.addf %151, %150 : vector<8x128xf32>
    %153 = arith.truncf %152 : vector<8x128xf32> to vector<8x128xbf16>
    %c0_72 = arith.constant 0 : index
    %c0_73 = arith.constant 0 : index
    %154 = vector.load %arg4[%c0_72, %c0_73] : memref<128x512xbf16, #tpu.memory_space<vmem>>, vector<128x512xbf16>
    %cst_74 = arith.constant dense<0.000000e+00> : vector<8x512xf32>
    %155 = tpu.matmul %153, %154, %cst_74 {dimension_numbers = #tpu.dot_dimension_numbers<[1], [0], [0], [1], [0, 0, 1, 1], [], []>} : vector<8x128xbf16>, vector<128x512xbf16>, vector<8x512xf32> -> vector<8x512xf32>
    %156 = vector.extract_strided_slice %155 {offsets = [0, 0], sizes = [8, 128], strides = [1, 1]} : vector<8x512xf32> to vector<8x128xf32>
    %157 = arith.negf %156 : vector<8x128xf32>
    %158 = math.exp %157 : vector<8x128xf32>
    %cst_75 = arith.constant 1.000000e+00 : f32
    %159 = vector.broadcast %cst_75 : f32 to vector<8x128xf32>
    %160 = arith.addf %159, %158 : vector<8x128xf32>
    %161 = arith.divf %159, %160 : vector<8x128xf32>
    %162 = vector.extract_strided_slice %155 {offsets = [0, 128], sizes = [8, 128], strides = [1, 1]} : vector<8x512xf32> to vector<8x128xf32>
    %163 = arith.negf %162 : vector<8x128xf32>
    %164 = math.exp %163 : vector<8x128xf32>
    %cst_76 = arith.constant 1.000000e+00 : f32
    %165 = vector.broadcast %cst_76 : f32 to vector<8x128xf32>
    %166 = arith.addf %165, %164 : vector<8x128xf32>
    %167 = arith.divf %165, %166 : vector<8x128xf32>
    %168 = vector.extract_strided_slice %155 {offsets = [0, 256], sizes = [8, 128], strides = [1, 1]} : vector<8x512xf32> to vector<8x128xf32>
    %169 = math.tanh %168 : vector<8x128xf32>
    %170 = vector.extract_strided_slice %155 {offsets = [0, 384], sizes = [8, 128], strides = [1, 1]} : vector<8x512xf32> to vector<8x128xf32>
    %171 = arith.negf %170 : vector<8x128xf32>
    %172 = math.exp %171 : vector<8x128xf32>
    %cst_77 = arith.constant 1.000000e+00 : f32
    %173 = vector.broadcast %cst_77 : f32 to vector<8x128xf32>
    %174 = arith.addf %173, %172 : vector<8x128xf32>
    %175 = arith.divf %173, %174 : vector<8x128xf32>
    %c0_78 = arith.constant 0 : index
    %c0_79 = arith.constant 0 : index
    %176 = vector.load %arg11[%c0_78, %c0_79] : memref<8x128xf32, #tpu.memory_space<vmem>>, vector<8x128xf32>
    %177 = arith.mulf %167, %176 : vector<8x128xf32>
    %178 = arith.mulf %161, %169 : vector<8x128xf32>
    %179 = arith.addf %177, %178 : vector<8x128xf32>
    %180 = math.tanh %179 : vector<8x128xf32>
    %181 = arith.mulf %175, %180 : vector<8x128xf32>
    %c0_80 = arith.constant 0 : index
    %c0_81 = arith.constant 0 : index
    %182 = vector.load %arg10[%c0_80, %c0_81] : memref<8x128xf32, #tpu.memory_space<vmem>>, vector<8x128xf32>
    tpu.vector_store %arg10[%c0_80, %c0_81], %181 {strides = array<i32>} : memref<8x128xf32, #tpu.memory_space<vmem>>, vector<8x128xf32>,
    %c0_82 = arith.constant 0 : index
    %c0_83 = arith.constant 0 : index
    %183 = vector.load %arg11[%c0_82, %c0_83] : memref<8x128xf32, #tpu.memory_space<vmem>>, vector<8x128xf32>
    tpu.vector_store %arg11[%c0_82, %c0_83], %179 {strides = array<i32>} : memref<8x128xf32, #tpu.memory_space<vmem>>, vector<8x128xf32>,
    %c5_i32 = arith.constant 5 : i32
    %184 = arith.index_cast %c5_i32 : i32 to index
    %c0_84 = arith.constant 0 : index
    %c0_85 = arith.constant 0 : index
    %185 = vector.load %arg2[%184, %c0_84, %c0_85] : memref<6x8x128xf32, #tpu.memory_space<vmem>>, vector<1x8x128xf32>
    %186 = vector.shape_cast %185 : vector<1x8x128xf32> to vector<8x128xf32>
    %c0_86 = arith.constant 0 : index
    %c0_87 = arith.constant 0 : index
    %187 = vector.load %arg10[%c0_86, %c0_87] : memref<8x128xf32, #tpu.memory_space<vmem>>, vector<8x128xf32>
    %188 = arith.addf %187, %186 : vector<8x128xf32>
    %189 = arith.truncf %188 : vector<8x128xf32> to vector<8x128xbf16>
    %c0_88 = arith.constant 0 : index
    %c0_89 = arith.constant 0 : index
    %190 = vector.load %arg4[%c0_88, %c0_89] : memref<128x512xbf16, #tpu.memory_space<vmem>>, vector<128x512xbf16>
    %cst_90 = arith.constant dense<0.000000e+00> : vector<8x512xf32>
    %191 = tpu.matmul %189, %190, %cst_90 {dimension_numbers = #tpu.dot_dimension_numbers<[1], [0], [0], [1], [0, 0, 1, 1], [], []>} : vector<8x128xbf16>, vector<128x512xbf16>, vector<8x512xf32> -> vector<8x512xf32>
    %192 = vector.extract_strided_slice %191 {offsets = [0, 0], sizes = [8, 128], strides = [1, 1]} : vector<8x512xf32> to vector<8x128xf32>
    %193 = arith.negf %192 : vector<8x128xf32>
    %194 = math.exp %193 : vector<8x128xf32>
    %cst_91 = arith.constant 1.000000e+00 : f32
    %195 = vector.broadcast %cst_91 : f32 to vector<8x128xf32>
    %196 = arith.addf %195, %194 : vector<8x128xf32>
    %197 = arith.divf %195, %196 : vector<8x128xf32>
    %198 = vector.extract_strided_slice %191 {offsets = [0, 128], sizes = [8, 128], strides = [1, 1]} : vector<8x512xf32> to vector<8x128xf32>
    %199 = arith.negf %198 : vector<8x128xf32>
    %200 = math.exp %199 : vector<8x128xf32>
    %cst_92 = arith.constant 1.000000e+00 : f32
    %201 = vector.broadcast %cst_92 : f32 to vector<8x128xf32>
    %202 = arith.addf %201, %200 : vector<8x128xf32>
    %203 = arith.divf %201, %202 : vector<8x128xf32>
    %204 = vector.extract_strided_slice %191 {offsets = [0, 256], sizes = [8, 128], strides = [1, 1]} : vector<8x512xf32> to vector<8x128xf32>
    %205 = math.tanh %204 : vector<8x128xf32>
    %206 = vector.extract_strided_slice %191 {offsets = [0, 384], sizes = [8, 128], strides = [1, 1]} : vector<8x512xf32> to vector<8x128xf32>
    %207 = arith.negf %206 : vector<8x128xf32>
    %208 = math.exp %207 : vector<8x128xf32>
    %cst_93 = arith.constant 1.000000e+00 : f32
    %209 = vector.broadcast %cst_93 : f32 to vector<8x128xf32>
    %210 = arith.addf %209, %208 : vector<8x128xf32>
    %211 = arith.divf %209, %210 : vector<8x128xf32>
    %c0_94 = arith.constant 0 : index
    %c0_95 = arith.constant 0 : index
    %212 = vector.load %arg11[%c0_94, %c0_95] : memref<8x128xf32, #tpu.memory_space<vmem>>, vector<8x128xf32>
    %213 = arith.mulf %203, %212 : vector<8x128xf32>
    %214 = arith.mulf %197, %205 : vector<8x128xf32>
    %215 = arith.addf %213, %214 : vector<8x128xf32>
    %216 = math.tanh %215 : vector<8x128xf32>
    %217 = arith.mulf %211, %216 : vector<8x128xf32>
    %c0_96 = arith.constant 0 : index
    %c0_97 = arith.constant 0 : index
    %218 = vector.load %arg10[%c0_96, %c0_97] : memref<8x128xf32, #tpu.memory_space<vmem>>, vector<8x128xf32>
    tpu.vector_store %arg10[%c0_96, %c0_97], %217 {strides = array<i32>} : memref<8x128xf32, #tpu.memory_space<vmem>>, vector<8x128xf32>,
    %c0_98 = arith.constant 0 : index
    %c0_99 = arith.constant 0 : index
    %219 = vector.load %arg11[%c0_98, %c0_99] : memref<8x128xf32, #tpu.memory_space<vmem>>, vector<8x128xf32>
    tpu.vector_store %arg11[%c0_98, %c0_99], %215 {strides = array<i32>} : memref<8x128xf32, #tpu.memory_space<vmem>>, vector<8x128xf32>,
    %c6_i32 = arith.constant 6 : i32
    %c0_100 = arith.constant 0 : index
    %c0_101 = arith.constant 0 : index
    %220 = vector.load %arg7[%c0_100, %c0_101] : memref<1x128xf32, #tpu.memory_space<vmem>>, vector<1x128xf32>
    %221 = vector.shape_cast %220 : vector<1x128xf32> to vector<1x128xf32>
    %222 = vector.broadcast %221 : vector<1x128xf32> to vector<8x128xf32>
    %c0_i32_102 = arith.constant 0 : i32
    %c0_i32_103 = arith.constant 0 : i32
    %223 = arith.cmpi eq, %c0_i32_102, %c0_i32_103 : i32
    %224 = arith.index_cast %c0_i32_102 : i32 to index
    %225 = memref.load %arg1[%224] : memref<7xi32, #tpu.memory_space<smem>>
    %c0_i32_104 = arith.constant 0 : i32
    %226 = arith.cmpi ne, %225, %c0_i32_104 : i32
    %227 = arith.ori %223, %226 : i1
    %228 = arith.extui %227 : i1 to i32
    %c0_i32_105 = arith.constant 0 : i32
    %229 = arith.cmpi ne, %228, %c0_i32_105 : i32
    scf.if %229 {
      %571 = arith.index_cast %c0_i32_102 : i32 to index
      %c0_283 = arith.constant 0 : index
      %c0_284 = arith.constant 0 : index
      %572 = vector.load %arg3[%571, %c0_283, %c0_284] : memref<6x8x128xf32, #tpu.memory_space<vmem>>, vector<1x8x128xf32>
      %573 = vector.shape_cast %572 : vector<1x8x128xf32> to vector<8x128xf32>
      %c0_285 = arith.constant 0 : index
      %c0_286 = arith.constant 0 : index
      %574 = vector.load %arg12[%c0_285, %c0_286] : memref<8x128xf32, #tpu.memory_space<vmem>>, vector<8x128xf32>
      tpu.vector_store %arg12[%c0_285, %c0_286], %573 {strides = array<i32>} : memref<8x128xf32, #tpu.memory_space<vmem>>, vector<8x128xf32>,
    } else {
    }
    %c0_106 = arith.constant 0 : index
    %c0_107 = arith.constant 0 : index
    %230 = vector.load %arg12[%c0_106, %c0_107] : memref<8x128xf32, #tpu.memory_space<vmem>>, vector<8x128xf32>
    %c0_108 = arith.constant 0 : index
    %c0_109 = arith.constant 0 : index
    %231 = vector.load %arg10[%c0_108, %c0_109] : memref<8x128xf32, #tpu.memory_space<vmem>>, vector<8x128xf32>
    %232 = arith.addf %231, %230 : vector<8x128xf32>
    %233 = arith.truncf %232 : vector<8x128xf32> to vector<8x128xbf16>
    %c0_110 = arith.constant 0 : index
    %c0_111 = arith.constant 0 : index
    %234 = vector.load %arg5[%c0_110, %c0_111] : memref<128x512xbf16, #tpu.memory_space<vmem>>, vector<128x512xbf16>
    %cst_112 = arith.constant dense<0.000000e+00> : vector<8x512xf32>
    %235 = tpu.matmul %233, %234, %cst_112 {dimension_numbers = #tpu.dot_dimension_numbers<[1], [0], [0], [1], [0, 0, 1, 1], [], []>} : vector<8x128xbf16>, vector<128x512xbf16>, vector<8x512xf32> -> vector<8x512xf32>
    %236 = vector.extract_strided_slice %235 {offsets = [0, 0], sizes = [8, 128], strides = [1, 1]} : vector<8x512xf32> to vector<8x128xf32>
    %237 = arith.negf %236 : vector<8x128xf32>
    %238 = math.exp %237 : vector<8x128xf32>
    %cst_113 = arith.constant 1.000000e+00 : f32
    %239 = vector.broadcast %cst_113 : f32 to vector<8x128xf32>
    %240 = arith.addf %239, %238 : vector<8x128xf32>
    %241 = arith.divf %239, %240 : vector<8x128xf32>
    %242 = vector.extract_strided_slice %235 {offsets = [0, 128], sizes = [8, 128], strides = [1, 1]} : vector<8x512xf32> to vector<8x128xf32>
    %243 = arith.negf %242 : vector<8x128xf32>
    %244 = math.exp %243 : vector<8x128xf32>
    %cst_114 = arith.constant 1.000000e+00 : f32
    %245 = vector.broadcast %cst_114 : f32 to vector<8x128xf32>
    %246 = arith.addf %245, %244 : vector<8x128xf32>
    %247 = arith.divf %245, %246 : vector<8x128xf32>
    %248 = vector.extract_strided_slice %235 {offsets = [0, 256], sizes = [8, 128], strides = [1, 1]} : vector<8x512xf32> to vector<8x128xf32>
    %249 = math.tanh %248 : vector<8x128xf32>
    %250 = vector.extract_strided_slice %235 {offsets = [0, 384], sizes = [8, 128], strides = [1, 1]} : vector<8x512xf32> to vector<8x128xf32>
    %251 = arith.negf %250 : vector<8x128xf32>
    %252 = math.exp %251 : vector<8x128xf32>
    %cst_115 = arith.constant 1.000000e+00 : f32
    %253 = vector.broadcast %cst_115 : f32 to vector<8x128xf32>
    %254 = arith.addf %253, %252 : vector<8x128xf32>
    %255 = arith.divf %253, %254 : vector<8x128xf32>
    %c0_116 = arith.constant 0 : index
    %c0_117 = arith.constant 0 : index
    %256 = vector.load %arg11[%c0_116, %c0_117] : memref<8x128xf32, #tpu.memory_space<vmem>>, vector<8x128xf32>
    %257 = arith.mulf %247, %256 : vector<8x128xf32>
    %258 = arith.mulf %241, %249 : vector<8x128xf32>
    %259 = arith.addf %257, %258 : vector<8x128xf32>
    %260 = math.tanh %259 : vector<8x128xf32>
    %261 = arith.mulf %255, %260 : vector<8x128xf32>
    %c0_118 = arith.constant 0 : index
    %c0_119 = arith.constant 0 : index
    %262 = vector.load %arg10[%c0_118, %c0_119] : memref<8x128xf32, #tpu.memory_space<vmem>>, vector<8x128xf32>
    tpu.vector_store %arg10[%c0_118, %c0_119], %261 {strides = array<i32>} : memref<8x128xf32, #tpu.memory_space<vmem>>, vector<8x128xf32>,
    %c0_120 = arith.constant 0 : index
    %c0_121 = arith.constant 0 : index
    %263 = vector.load %arg11[%c0_120, %c0_121] : memref<8x128xf32, #tpu.memory_space<vmem>>, vector<8x128xf32>
    tpu.vector_store %arg11[%c0_120, %c0_121], %259 {strides = array<i32>} : memref<8x128xf32, #tpu.memory_space<vmem>>, vector<8x128xf32>,
    %264 = arith.truncf %261 : vector<8x128xf32> to vector<8x128xbf16>
    %c0_122 = arith.constant 0 : index
    %c0_123 = arith.constant 0 : index
    %265 = vector.load %arg6[%c0_122, %c0_123] : memref<128x128xbf16, #tpu.memory_space<vmem>>, vector<128x128xbf16>
    %cst_124 = arith.constant dense<0.000000e+00> : vector<8x128xf32>
    %266 = tpu.matmul %264, %265, %cst_124 {dimension_numbers = #tpu.dot_dimension_numbers<[1], [0], [0], [1], [0, 0, 1, 1], [], []>} : vector<8x128xbf16>, vector<128x128xbf16>, vector<8x128xf32> -> vector<8x128xf32>
    %267 = arith.addf %266, %222 : vector<8x128xf32>
    %268 = arith.index_cast %c0_i32_102 : i32 to index
    %c0_125 = arith.constant 0 : index
    %c0_126 = arith.constant 0 : index
    %269 = vector.load %arg9[%268, %c0_125, %c0_126] : memref<6x8x128xf32, #tpu.memory_space<vmem>>, vector<1x8x128xf32>
    %270 = vector.shape_cast %269 : vector<1x8x128xf32> to vector<8x128xf32>
    %271 = vector.shape_cast %267 : vector<8x128xf32> to vector<1x8x128xf32>
    tpu.vector_store %arg9[%268, %c0_125, %c0_126], %271 {strides = array<i32>} : memref<6x8x128xf32, #tpu.memory_space<vmem>>, vector<1x8x128xf32>,
    %c1_i32_127 = arith.constant 1 : i32
    %272 = arith.addi %c0_i32_102, %c1_i32_127 : i32
    %c6_i32_128 = arith.constant 6 : i32
    %273 = arith.cmpi slt, %272, %c6_i32_128 : i32
    %c1_i32_129 = arith.constant 1 : i32
    %274 = arith.addi %c0_i32_102, %c1_i32_129 : i32
    %275 = arith.index_cast %274 : i32 to index
    %276 = memref.load %arg1[%275] : memref<7xi32, #tpu.memory_space<smem>>
    %c0_i32_130 = arith.constant 0 : i32
    %277 = arith.cmpi eq, %276, %c0_i32_130 : i32
    %278 = arith.andi %273, %277 : i1
    %279 = arith.extui %278 : i1 to i32
    %c0_i32_131 = arith.constant 0 : i32
    %280 = arith.cmpi ne, %279, %c0_i32_131 : i32
    scf.if %280 {
      %571 = tpu.iota {dimensions = array<i32: 1>} : vector<8x128xi32>
      %572 = arith.sitofp %571 : vector<8x128xi32> to vector<8x128xf32>
      %cst_283 = arith.constant dense<0xFF800000> : vector<8xf32>
      %573 = vector.multi_reduction <maximumf>, %267, %cst_283 [1] : vector<8x128xf32> to vector<8xf32>
      %574 = vector.shape_cast %573 : vector<8xf32> to vector<8x1xf32>
      %575 = vector.broadcast %574 : vector<8x1xf32> to vector<8x128xf32>
      %576 = arith.cmpf oge, %267, %575 : vector<8x128xf32>
      %cst_284 = arith.constant 1.280000e+02 : f32
      %577 = vector.broadcast %cst_284 : f32 to vector<8x128xf32>
      %578 = arith.select %576, %572, %577 : vector<8x128xi1>, vector<8x128xf32>
      %cst_285 = arith.constant dense<0x7F800000> : vector<8xf32>
      %579 = vector.multi_reduction <minimumf>, %578, %cst_285 [1] : vector<8x128xf32> to vector<8xf32>
      %580 = vector.shape_cast %579 : vector<8xf32> to vector<8x1xf32>
      %581 = vector.broadcast %580 : vector<8x1xf32> to vector<8x128xf32>
      %582 = arith.cmpf oeq, %572, %581 : vector<8x128xf32>
      %583 = arith.extui %582 : vector<8x128xi1> to vector<8x128xi32>
      %584 = arith.sitofp %583 : vector<8x128xi32> to vector<8x128xf32>
      %585 = arith.truncf %584 : vector<8x128xf32> to vector<8x128xbf16>
      %c0_286 = arith.constant 0 : index
      %c0_287 = arith.constant 0 : index
      %586 = vector.load %arg8[%c0_286, %c0_287] : memref<128x128xbf16, #tpu.memory_space<vmem>>, vector<128x128xbf16>
      %cst_288 = arith.constant dense<0.000000e+00> : vector<8x128xf32>
      %587 = tpu.matmul %585, %586, %cst_288 {dimension_numbers = #tpu.dot_dimension_numbers<[1], [0], [0], [1], [0, 0, 1, 1], [], []>} : vector<8x128xbf16>, vector<128x128xbf16>, vector<8x128xf32> -> vector<8x128xf32>
      %c0_289 = arith.constant 0 : index
      %c0_290 = arith.constant 0 : index
      %588 = vector.load %arg12[%c0_289, %c0_290] : memref<8x128xf32, #tpu.memory_space<vmem>>, vector<8x128xf32>
      tpu.vector_store %arg12[%c0_289, %c0_290], %587 {strides = array<i32>} : memref<8x128xf32, #tpu.memory_space<vmem>>, vector<8x128xf32>,
    } else {
    }
    %c1_i32_132 = arith.constant 1 : i32
    %c0_i32_133 = arith.constant 0 : i32
    %281 = arith.cmpi eq, %c1_i32_132, %c0_i32_133 : i32
    %282 = arith.index_cast %c1_i32_132 : i32 to index
    %283 = memref.load %arg1[%282] : memref<7xi32, #tpu.memory_space<smem>>
    %c0_i32_134 = arith.constant 0 : i32
    %284 = arith.cmpi ne, %283, %c0_i32_134 : i32
    %285 = arith.ori %281, %284 : i1
    %286 = arith.extui %285 : i1 to i32
    %c0_i32_135 = arith.constant 0 : i32
    %287 = arith.cmpi ne, %286, %c0_i32_135 : i32
    scf.if %287 {
      %571 = arith.index_cast %c1_i32_132 : i32 to index
      %c0_283 = arith.constant 0 : index
      %c0_284 = arith.constant 0 : index
      %572 = vector.load %arg3[%571, %c0_283, %c0_284] : memref<6x8x128xf32, #tpu.memory_space<vmem>>, vector<1x8x128xf32>
      %573 = vector.shape_cast %572 : vector<1x8x128xf32> to vector<8x128xf32>
      %c0_285 = arith.constant 0 : index
      %c0_286 = arith.constant 0 : index
      %574 = vector.load %arg12[%c0_285, %c0_286] : memref<8x128xf32, #tpu.memory_space<vmem>>, vector<8x128xf32>
      tpu.vector_store %arg12[%c0_285, %c0_286], %573 {strides = array<i32>} : memref<8x128xf32, #tpu.memory_space<vmem>>, vector<8x128xf32>,
    } else {
    }
    %c0_136 = arith.constant 0 : index
    %c0_137 = arith.constant 0 : index
    %288 = vector.load %arg12[%c0_136, %c0_137] : memref<8x128xf32, #tpu.memory_space<vmem>>, vector<8x128xf32>
    %c0_138 = arith.constant 0 : index
    %c0_139 = arith.constant 0 : index
    %289 = vector.load %arg10[%c0_138, %c0_139] : memref<8x128xf32, #tpu.memory_space<vmem>>, vector<8x128xf32>
    %290 = arith.addf %289, %288 : vector<8x128xf32>
    %291 = arith.truncf %290 : vector<8x128xf32> to vector<8x128xbf16>
    %c0_140 = arith.constant 0 : index
    %c0_141 = arith.constant 0 : index
    %292 = vector.load %arg5[%c0_140, %c0_141] : memref<128x512xbf16, #tpu.memory_space<vmem>>, vector<128x512xbf16>
    %cst_142 = arith.constant dense<0.000000e+00> : vector<8x512xf32>
    %293 = tpu.matmul %291, %292, %cst_142 {dimension_numbers = #tpu.dot_dimension_numbers<[1], [0], [0], [1], [0, 0, 1, 1], [], []>} : vector<8x128xbf16>, vector<128x512xbf16>, vector<8x512xf32> -> vector<8x512xf32>
    %294 = vector.extract_strided_slice %293 {offsets = [0, 0], sizes = [8, 128], strides = [1, 1]} : vector<8x512xf32> to vector<8x128xf32>
    %295 = arith.negf %294 : vector<8x128xf32>
    %296 = math.exp %295 : vector<8x128xf32>
    %cst_143 = arith.constant 1.000000e+00 : f32
    %297 = vector.broadcast %cst_143 : f32 to vector<8x128xf32>
    %298 = arith.addf %297, %296 : vector<8x128xf32>
    %299 = arith.divf %297, %298 : vector<8x128xf32>
    %300 = vector.extract_strided_slice %293 {offsets = [0, 128], sizes = [8, 128], strides = [1, 1]} : vector<8x512xf32> to vector<8x128xf32>
    %301 = arith.negf %300 : vector<8x128xf32>
    %302 = math.exp %301 : vector<8x128xf32>
    %cst_144 = arith.constant 1.000000e+00 : f32
    %303 = vector.broadcast %cst_144 : f32 to vector<8x128xf32>
    %304 = arith.addf %303, %302 : vector<8x128xf32>
    %305 = arith.divf %303, %304 : vector<8x128xf32>
    %306 = vector.extract_strided_slice %293 {offsets = [0, 256], sizes = [8, 128], strides = [1, 1]} : vector<8x512xf32> to vector<8x128xf32>
    %307 = math.tanh %306 : vector<8x128xf32>
    %308 = vector.extract_strided_slice %293 {offsets = [0, 384], sizes = [8, 128], strides = [1, 1]} : vector<8x512xf32> to vector<8x128xf32>
    %309 = arith.negf %308 : vector<8x128xf32>
    %310 = math.exp %309 : vector<8x128xf32>
    %cst_145 = arith.constant 1.000000e+00 : f32
    %311 = vector.broadcast %cst_145 : f32 to vector<8x128xf32>
    %312 = arith.addf %311, %310 : vector<8x128xf32>
    %313 = arith.divf %311, %312 : vector<8x128xf32>
    %c0_146 = arith.constant 0 : index
    %c0_147 = arith.constant 0 : index
    %314 = vector.load %arg11[%c0_146, %c0_147] : memref<8x128xf32, #tpu.memory_space<vmem>>, vector<8x128xf32>
    %315 = arith.mulf %305, %314 : vector<8x128xf32>
    %316 = arith.mulf %299, %307 : vector<8x128xf32>
    %317 = arith.addf %315, %316 : vector<8x128xf32>
    %318 = math.tanh %317 : vector<8x128xf32>
    %319 = arith.mulf %313, %318 : vector<8x128xf32>
    %c0_148 = arith.constant 0 : index
    %c0_149 = arith.constant 0 : index
    %320 = vector.load %arg10[%c0_148, %c0_149] : memref<8x128xf32, #tpu.memory_space<vmem>>, vector<8x128xf32>
    tpu.vector_store %arg10[%c0_148, %c0_149], %319 {strides = array<i32>} : memref<8x128xf32, #tpu.memory_space<vmem>>, vector<8x128xf32>,
    %c0_150 = arith.constant 0 : index
    %c0_151 = arith.constant 0 : index
    %321 = vector.load %arg11[%c0_150, %c0_151] : memref<8x128xf32, #tpu.memory_space<vmem>>, vector<8x128xf32>
    tpu.vector_store %arg11[%c0_150, %c0_151], %317 {strides = array<i32>} : memref<8x128xf32, #tpu.memory_space<vmem>>, vector<8x128xf32>,
    %322 = arith.truncf %319 : vector<8x128xf32> to vector<8x128xbf16>
    %c0_152 = arith.constant 0 : index
    %c0_153 = arith.constant 0 : index
    %323 = vector.load %arg6[%c0_152, %c0_153] : memref<128x128xbf16, #tpu.memory_space<vmem>>, vector<128x128xbf16>
    %cst_154 = arith.constant dense<0.000000e+00> : vector<8x128xf32>
    %324 = tpu.matmul %322, %323, %cst_154 {dimension_numbers = #tpu.dot_dimension_numbers<[1], [0], [0], [1], [0, 0, 1, 1], [], []>} : vector<8x128xbf16>, vector<128x128xbf16>, vector<8x128xf32> -> vector<8x128xf32>
    %325 = arith.addf %324, %222 : vector<8x128xf32>
    %326 = arith.index_cast %c1_i32_132 : i32 to index
    %c0_155 = arith.constant 0 : index
    %c0_156 = arith.constant 0 : index
    %327 = vector.load %arg9[%326, %c0_155, %c0_156] : memref<6x8x128xf32, #tpu.memory_space<vmem>>, vector<1x8x128xf32>
    %328 = vector.shape_cast %327 : vector<1x8x128xf32> to vector<8x128xf32>
    %329 = vector.shape_cast %325 : vector<8x128xf32> to vector<1x8x128xf32>
    tpu.vector_store %arg9[%326, %c0_155, %c0_156], %329 {strides = array<i32>} : memref<6x8x128xf32, #tpu.memory_space<vmem>>, vector<1x8x128xf32>,
    %c1_i32_157 = arith.constant 1 : i32
    %330 = arith.addi %c1_i32_132, %c1_i32_157 : i32
    %c6_i32_158 = arith.constant 6 : i32
    %331 = arith.cmpi slt, %330, %c6_i32_158 : i32
    %c1_i32_159 = arith.constant 1 : i32
    %332 = arith.addi %c1_i32_132, %c1_i32_159 : i32
    %333 = arith.index_cast %332 : i32 to index
    %334 = memref.load %arg1[%333] : memref<7xi32, #tpu.memory_space<smem>>
    %c0_i32_160 = arith.constant 0 : i32
    %335 = arith.cmpi eq, %334, %c0_i32_160 : i32
    %336 = arith.andi %331, %335 : i1
    %337 = arith.extui %336 : i1 to i32
    %c0_i32_161 = arith.constant 0 : i32
    %338 = arith.cmpi ne, %337, %c0_i32_161 : i32
    scf.if %338 {
      %571 = tpu.iota {dimensions = array<i32: 1>} : vector<8x128xi32>
      %572 = arith.sitofp %571 : vector<8x128xi32> to vector<8x128xf32>
      %cst_283 = arith.constant dense<0xFF800000> : vector<8xf32>
      %573 = vector.multi_reduction <maximumf>, %325, %cst_283 [1] : vector<8x128xf32> to vector<8xf32>
      %574 = vector.shape_cast %573 : vector<8xf32> to vector<8x1xf32>
      %575 = vector.broadcast %574 : vector<8x1xf32> to vector<8x128xf32>
      %576 = arith.cmpf oge, %325, %575 : vector<8x128xf32>
      %cst_284 = arith.constant 1.280000e+02 : f32
      %577 = vector.broadcast %cst_284 : f32 to vector<8x128xf32>
      %578 = arith.select %576, %572, %577 : vector<8x128xi1>, vector<8x128xf32>
      %cst_285 = arith.constant dense<0x7F800000> : vector<8xf32>
      %579 = vector.multi_reduction <minimumf>, %578, %cst_285 [1] : vector<8x128xf32> to vector<8xf32>
      %580 = vector.shape_cast %579 : vector<8xf32> to vector<8x1xf32>
      %581 = vector.broadcast %580 : vector<8x1xf32> to vector<8x128xf32>
      %582 = arith.cmpf oeq, %572, %581 : vector<8x128xf32>
      %583 = arith.extui %582 : vector<8x128xi1> to vector<8x128xi32>
      %584 = arith.sitofp %583 : vector<8x128xi32> to vector<8x128xf32>
      %585 = arith.truncf %584 : vector<8x128xf32> to vector<8x128xbf16>
      %c0_286 = arith.constant 0 : index
      %c0_287 = arith.constant 0 : index
      %586 = vector.load %arg8[%c0_286, %c0_287] : memref<128x128xbf16, #tpu.memory_space<vmem>>, vector<128x128xbf16>
      %cst_288 = arith.constant dense<0.000000e+00> : vector<8x128xf32>
      %587 = tpu.matmul %585, %586, %cst_288 {dimension_numbers = #tpu.dot_dimension_numbers<[1], [0], [0], [1], [0, 0, 1, 1], [], []>} : vector<8x128xbf16>, vector<128x128xbf16>, vector<8x128xf32> -> vector<8x128xf32>
      %c0_289 = arith.constant 0 : index
      %c0_290 = arith.constant 0 : index
      %588 = vector.load %arg12[%c0_289, %c0_290] : memref<8x128xf32, #tpu.memory_space<vmem>>, vector<8x128xf32>
      tpu.vector_store %arg12[%c0_289, %c0_290], %587 {strides = array<i32>} : memref<8x128xf32, #tpu.memory_space<vmem>>, vector<8x128xf32>,
    } else {
    }
    %c2_i32_162 = arith.constant 2 : i32
    %c0_i32_163 = arith.constant 0 : i32
    %339 = arith.cmpi eq, %c2_i32_162, %c0_i32_163 : i32
    %340 = arith.index_cast %c2_i32_162 : i32 to index
    %341 = memref.load %arg1[%340] : memref<7xi32, #tpu.memory_space<smem>>
    %c0_i32_164 = arith.constant 0 : i32
    %342 = arith.cmpi ne, %341, %c0_i32_164 : i32
    %343 = arith.ori %339, %342 : i1
    %344 = arith.extui %343 : i1 to i32
    %c0_i32_165 = arith.constant 0 : i32
    %345 = arith.cmpi ne, %344, %c0_i32_165 : i32
    scf.if %345 {
      %571 = arith.index_cast %c2_i32_162 : i32 to index
      %c0_283 = arith.constant 0 : index
      %c0_284 = arith.constant 0 : index
      %572 = vector.load %arg3[%571, %c0_283, %c0_284] : memref<6x8x128xf32, #tpu.memory_space<vmem>>, vector<1x8x128xf32>
      %573 = vector.shape_cast %572 : vector<1x8x128xf32> to vector<8x128xf32>
      %c0_285 = arith.constant 0 : index
      %c0_286 = arith.constant 0 : index
      %574 = vector.load %arg12[%c0_285, %c0_286] : memref<8x128xf32, #tpu.memory_space<vmem>>, vector<8x128xf32>
      tpu.vector_store %arg12[%c0_285, %c0_286], %573 {strides = array<i32>} : memref<8x128xf32, #tpu.memory_space<vmem>>, vector<8x128xf32>,
    } else {
    }
    %c0_166 = arith.constant 0 : index
    %c0_167 = arith.constant 0 : index
    %346 = vector.load %arg12[%c0_166, %c0_167] : memref<8x128xf32, #tpu.memory_space<vmem>>, vector<8x128xf32>
    %c0_168 = arith.constant 0 : index
    %c0_169 = arith.constant 0 : index
    %347 = vector.load %arg10[%c0_168, %c0_169] : memref<8x128xf32, #tpu.memory_space<vmem>>, vector<8x128xf32>
    %348 = arith.addf %347, %346 : vector<8x128xf32>
    %349 = arith.truncf %348 : vector<8x128xf32> to vector<8x128xbf16>
    %c0_170 = arith.constant 0 : index
    %c0_171 = arith.constant 0 : index
    %350 = vector.load %arg5[%c0_170, %c0_171] : memref<128x512xbf16, #tpu.memory_space<vmem>>, vector<128x512xbf16>
    %cst_172 = arith.constant dense<0.000000e+00> : vector<8x512xf32>
    %351 = tpu.matmul %349, %350, %cst_172 {dimension_numbers = #tpu.dot_dimension_numbers<[1], [0], [0], [1], [0, 0, 1, 1], [], []>} : vector<8x128xbf16>, vector<128x512xbf16>, vector<8x512xf32> -> vector<8x512xf32>
    %352 = vector.extract_strided_slice %351 {offsets = [0, 0], sizes = [8, 128], strides = [1, 1]} : vector<8x512xf32> to vector<8x128xf32>
    %353 = arith.negf %352 : vector<8x128xf32>
    %354 = math.exp %353 : vector<8x128xf32>
    %cst_173 = arith.constant 1.000000e+00 : f32
    %355 = vector.broadcast %cst_173 : f32 to vector<8x128xf32>
    %356 = arith.addf %355, %354 : vector<8x128xf32>
    %357 = arith.divf %355, %356 : vector<8x128xf32>
    %358 = vector.extract_strided_slice %351 {offsets = [0, 128], sizes = [8, 128], strides = [1, 1]} : vector<8x512xf32> to vector<8x128xf32>
    %359 = arith.negf %358 : vector<8x128xf32>
    %360 = math.exp %359 : vector<8x128xf32>
    %cst_174 = arith.constant 1.000000e+00 : f32
    %361 = vector.broadcast %cst_174 : f32 to vector<8x128xf32>
    %362 = arith.addf %361, %360 : vector<8x128xf32>
    %363 = arith.divf %361, %362 : vector<8x128xf32>
    %364 = vector.extract_strided_slice %351 {offsets = [0, 256], sizes = [8, 128], strides = [1, 1]} : vector<8x512xf32> to vector<8x128xf32>
    %365 = math.tanh %364 : vector<8x128xf32>
    %366 = vector.extract_strided_slice %351 {offsets = [0, 384], sizes = [8, 128], strides = [1, 1]} : vector<8x512xf32> to vector<8x128xf32>
    %367 = arith.negf %366 : vector<8x128xf32>
    %368 = math.exp %367 : vector<8x128xf32>
    %cst_175 = arith.constant 1.000000e+00 : f32
    %369 = vector.broadcast %cst_175 : f32 to vector<8x128xf32>
    %370 = arith.addf %369, %368 : vector<8x128xf32>
    %371 = arith.divf %369, %370 : vector<8x128xf32>
    %c0_176 = arith.constant 0 : index
    %c0_177 = arith.constant 0 : index
    %372 = vector.load %arg11[%c0_176, %c0_177] : memref<8x128xf32, #tpu.memory_space<vmem>>, vector<8x128xf32>
    %373 = arith.mulf %363, %372 : vector<8x128xf32>
    %374 = arith.mulf %357, %365 : vector<8x128xf32>
    %375 = arith.addf %373, %374 : vector<8x128xf32>
    %376 = math.tanh %375 : vector<8x128xf32>
    %377 = arith.mulf %371, %376 : vector<8x128xf32>
    %c0_178 = arith.constant 0 : index
    %c0_179 = arith.constant 0 : index
    %378 = vector.load %arg10[%c0_178, %c0_179] : memref<8x128xf32, #tpu.memory_space<vmem>>, vector<8x128xf32>
    tpu.vector_store %arg10[%c0_178, %c0_179], %377 {strides = array<i32>} : memref<8x128xf32, #tpu.memory_space<vmem>>, vector<8x128xf32>,
    %c0_180 = arith.constant 0 : index
    %c0_181 = arith.constant 0 : index
    %379 = vector.load %arg11[%c0_180, %c0_181] : memref<8x128xf32, #tpu.memory_space<vmem>>, vector<8x128xf32>
    tpu.vector_store %arg11[%c0_180, %c0_181], %375 {strides = array<i32>} : memref<8x128xf32, #tpu.memory_space<vmem>>, vector<8x128xf32>,
    %380 = arith.truncf %377 : vector<8x128xf32> to vector<8x128xbf16>
    %c0_182 = arith.constant 0 : index
    %c0_183 = arith.constant 0 : index
    %381 = vector.load %arg6[%c0_182, %c0_183] : memref<128x128xbf16, #tpu.memory_space<vmem>>, vector<128x128xbf16>
    %cst_184 = arith.constant dense<0.000000e+00> : vector<8x128xf32>
    %382 = tpu.matmul %380, %381, %cst_184 {dimension_numbers = #tpu.dot_dimension_numbers<[1], [0], [0], [1], [0, 0, 1, 1], [], []>} : vector<8x128xbf16>, vector<128x128xbf16>, vector<8x128xf32> -> vector<8x128xf32>
    %383 = arith.addf %382, %222 : vector<8x128xf32>
    %384 = arith.index_cast %c2_i32_162 : i32 to index
    %c0_185 = arith.constant 0 : index
    %c0_186 = arith.constant 0 : index
    %385 = vector.load %arg9[%384, %c0_185, %c0_186] : memref<6x8x128xf32, #tpu.memory_space<vmem>>, vector<1x8x128xf32>
    %386 = vector.shape_cast %385 : vector<1x8x128xf32> to vector<8x128xf32>
    %387 = vector.shape_cast %383 : vector<8x128xf32> to vector<1x8x128xf32>
    tpu.vector_store %arg9[%384, %c0_185, %c0_186], %387 {strides = array<i32>} : memref<6x8x128xf32, #tpu.memory_space<vmem>>, vector<1x8x128xf32>,
    %c1_i32_187 = arith.constant 1 : i32
    %388 = arith.addi %c2_i32_162, %c1_i32_187 : i32
    %c6_i32_188 = arith.constant 6 : i32
    %389 = arith.cmpi slt, %388, %c6_i32_188 : i32
    %c1_i32_189 = arith.constant 1 : i32
    %390 = arith.addi %c2_i32_162, %c1_i32_189 : i32
    %391 = arith.index_cast %390 : i32 to index
    %392 = memref.load %arg1[%391] : memref<7xi32, #tpu.memory_space<smem>>
    %c0_i32_190 = arith.constant 0 : i32
    %393 = arith.cmpi eq, %392, %c0_i32_190 : i32
    %394 = arith.andi %389, %393 : i1
    %395 = arith.extui %394 : i1 to i32
    %c0_i32_191 = arith.constant 0 : i32
    %396 = arith.cmpi ne, %395, %c0_i32_191 : i32
    scf.if %396 {
      %571 = tpu.iota {dimensions = array<i32: 1>} : vector<8x128xi32>
      %572 = arith.sitofp %571 : vector<8x128xi32> to vector<8x128xf32>
      %cst_283 = arith.constant dense<0xFF800000> : vector<8xf32>
      %573 = vector.multi_reduction <maximumf>, %383, %cst_283 [1] : vector<8x128xf32> to vector<8xf32>
      %574 = vector.shape_cast %573 : vector<8xf32> to vector<8x1xf32>
      %575 = vector.broadcast %574 : vector<8x1xf32> to vector<8x128xf32>
      %576 = arith.cmpf oge, %383, %575 : vector<8x128xf32>
      %cst_284 = arith.constant 1.280000e+02 : f32
      %577 = vector.broadcast %cst_284 : f32 to vector<8x128xf32>
      %578 = arith.select %576, %572, %577 : vector<8x128xi1>, vector<8x128xf32>
      %cst_285 = arith.constant dense<0x7F800000> : vector<8xf32>
      %579 = vector.multi_reduction <minimumf>, %578, %cst_285 [1] : vector<8x128xf32> to vector<8xf32>
      %580 = vector.shape_cast %579 : vector<8xf32> to vector<8x1xf32>
      %581 = vector.broadcast %580 : vector<8x1xf32> to vector<8x128xf32>
      %582 = arith.cmpf oeq, %572, %581 : vector<8x128xf32>
      %583 = arith.extui %582 : vector<8x128xi1> to vector<8x128xi32>
      %584 = arith.sitofp %583 : vector<8x128xi32> to vector<8x128xf32>
      %585 = arith.truncf %584 : vector<8x128xf32> to vector<8x128xbf16>
      %c0_286 = arith.constant 0 : index
      %c0_287 = arith.constant 0 : index
      %586 = vector.load %arg8[%c0_286, %c0_287] : memref<128x128xbf16, #tpu.memory_space<vmem>>, vector<128x128xbf16>
      %cst_288 = arith.constant dense<0.000000e+00> : vector<8x128xf32>
      %587 = tpu.matmul %585, %586, %cst_288 {dimension_numbers = #tpu.dot_dimension_numbers<[1], [0], [0], [1], [0, 0, 1, 1], [], []>} : vector<8x128xbf16>, vector<128x128xbf16>, vector<8x128xf32> -> vector<8x128xf32>
      %c0_289 = arith.constant 0 : index
      %c0_290 = arith.constant 0 : index
      %588 = vector.load %arg12[%c0_289, %c0_290] : memref<8x128xf32, #tpu.memory_space<vmem>>, vector<8x128xf32>
      tpu.vector_store %arg12[%c0_289, %c0_290], %587 {strides = array<i32>} : memref<8x128xf32, #tpu.memory_space<vmem>>, vector<8x128xf32>,
    } else {
    }
    %c3_i32_192 = arith.constant 3 : i32
    %c0_i32_193 = arith.constant 0 : i32
    %397 = arith.cmpi eq, %c3_i32_192, %c0_i32_193 : i32
    %398 = arith.index_cast %c3_i32_192 : i32 to index
    %399 = memref.load %arg1[%398] : memref<7xi32, #tpu.memory_space<smem>>
    %c0_i32_194 = arith.constant 0 : i32
    %400 = arith.cmpi ne, %399, %c0_i32_194 : i32
    %401 = arith.ori %397, %400 : i1
    %402 = arith.extui %401 : i1 to i32
    %c0_i32_195 = arith.constant 0 : i32
    %403 = arith.cmpi ne, %402, %c0_i32_195 : i32
    scf.if %403 {
      %571 = arith.index_cast %c3_i32_192 : i32 to index
      %c0_283 = arith.constant 0 : index
      %c0_284 = arith.constant 0 : index
      %572 = vector.load %arg3[%571, %c0_283, %c0_284] : memref<6x8x128xf32, #tpu.memory_space<vmem>>, vector<1x8x128xf32>
      %573 = vector.shape_cast %572 : vector<1x8x128xf32> to vector<8x128xf32>
      %c0_285 = arith.constant 0 : index
      %c0_286 = arith.constant 0 : index
      %574 = vector.load %arg12[%c0_285, %c0_286] : memref<8x128xf32, #tpu.memory_space<vmem>>, vector<8x128xf32>
      tpu.vector_store %arg12[%c0_285, %c0_286], %573 {strides = array<i32>} : memref<8x128xf32, #tpu.memory_space<vmem>>, vector<8x128xf32>,
    } else {
    }
    %c0_196 = arith.constant 0 : index
    %c0_197 = arith.constant 0 : index
    %404 = vector.load %arg12[%c0_196, %c0_197] : memref<8x128xf32, #tpu.memory_space<vmem>>, vector<8x128xf32>
    %c0_198 = arith.constant 0 : index
    %c0_199 = arith.constant 0 : index
    %405 = vector.load %arg10[%c0_198, %c0_199] : memref<8x128xf32, #tpu.memory_space<vmem>>, vector<8x128xf32>
    %406 = arith.addf %405, %404 : vector<8x128xf32>
    %407 = arith.truncf %406 : vector<8x128xf32> to vector<8x128xbf16>
    %c0_200 = arith.constant 0 : index
    %c0_201 = arith.constant 0 : index
    %408 = vector.load %arg5[%c0_200, %c0_201] : memref<128x512xbf16, #tpu.memory_space<vmem>>, vector<128x512xbf16>
    %cst_202 = arith.constant dense<0.000000e+00> : vector<8x512xf32>
    %409 = tpu.matmul %407, %408, %cst_202 {dimension_numbers = #tpu.dot_dimension_numbers<[1], [0], [0], [1], [0, 0, 1, 1], [], []>} : vector<8x128xbf16>, vector<128x512xbf16>, vector<8x512xf32> -> vector<8x512xf32>
    %410 = vector.extract_strided_slice %409 {offsets = [0, 0], sizes = [8, 128], strides = [1, 1]} : vector<8x512xf32> to vector<8x128xf32>
    %411 = arith.negf %410 : vector<8x128xf32>
    %412 = math.exp %411 : vector<8x128xf32>
    %cst_203 = arith.constant 1.000000e+00 : f32
    %413 = vector.broadcast %cst_203 : f32 to vector<8x128xf32>
    %414 = arith.addf %413, %412 : vector<8x128xf32>
    %415 = arith.divf %413, %414 : vector<8x128xf32>
    %416 = vector.extract_strided_slice %409 {offsets = [0, 128], sizes = [8, 128], strides = [1, 1]} : vector<8x512xf32> to vector<8x128xf32>
    %417 = arith.negf %416 : vector<8x128xf32>
    %418 = math.exp %417 : vector<8x128xf32>
    %cst_204 = arith.constant 1.000000e+00 : f32
    %419 = vector.broadcast %cst_204 : f32 to vector<8x128xf32>
    %420 = arith.addf %419, %418 : vector<8x128xf32>
    %421 = arith.divf %419, %420 : vector<8x128xf32>
    %422 = vector.extract_strided_slice %409 {offsets = [0, 256], sizes = [8, 128], strides = [1, 1]} : vector<8x512xf32> to vector<8x128xf32>
    %423 = math.tanh %422 : vector<8x128xf32>
    %424 = vector.extract_strided_slice %409 {offsets = [0, 384], sizes = [8, 128], strides = [1, 1]} : vector<8x512xf32> to vector<8x128xf32>
    %425 = arith.negf %424 : vector<8x128xf32>
    %426 = math.exp %425 : vector<8x128xf32>
    %cst_205 = arith.constant 1.000000e+00 : f32
    %427 = vector.broadcast %cst_205 : f32 to vector<8x128xf32>
    %428 = arith.addf %427, %426 : vector<8x128xf32>
    %429 = arith.divf %427, %428 : vector<8x128xf32>
    %c0_206 = arith.constant 0 : index
    %c0_207 = arith.constant 0 : index
    %430 = vector.load %arg11[%c0_206, %c0_207] : memref<8x128xf32, #tpu.memory_space<vmem>>, vector<8x128xf32>
    %431 = arith.mulf %421, %430 : vector<8x128xf32>
    %432 = arith.mulf %415, %423 : vector<8x128xf32>
    %433 = arith.addf %431, %432 : vector<8x128xf32>
    %434 = math.tanh %433 : vector<8x128xf32>
    %435 = arith.mulf %429, %434 : vector<8x128xf32>
    %c0_208 = arith.constant 0 : index
    %c0_209 = arith.constant 0 : index
    %436 = vector.load %arg10[%c0_208, %c0_209] : memref<8x128xf32, #tpu.memory_space<vmem>>, vector<8x128xf32>
    tpu.vector_store %arg10[%c0_208, %c0_209], %435 {strides = array<i32>} : memref<8x128xf32, #tpu.memory_space<vmem>>, vector<8x128xf32>,
    %c0_210 = arith.constant 0 : index
    %c0_211 = arith.constant 0 : index
    %437 = vector.load %arg11[%c0_210, %c0_211] : memref<8x128xf32, #tpu.memory_space<vmem>>, vector<8x128xf32>
    tpu.vector_store %arg11[%c0_210, %c0_211], %433 {strides = array<i32>} : memref<8x128xf32, #tpu.memory_space<vmem>>, vector<8x128xf32>,
    %438 = arith.truncf %435 : vector<8x128xf32> to vector<8x128xbf16>
    %c0_212 = arith.constant 0 : index
    %c0_213 = arith.constant 0 : index
    %439 = vector.load %arg6[%c0_212, %c0_213] : memref<128x128xbf16, #tpu.memory_space<vmem>>, vector<128x128xbf16>
    %cst_214 = arith.constant dense<0.000000e+00> : vector<8x128xf32>
    %440 = tpu.matmul %438, %439, %cst_214 {dimension_numbers = #tpu.dot_dimension_numbers<[1], [0], [0], [1], [0, 0, 1, 1], [], []>} : vector<8x128xbf16>, vector<128x128xbf16>, vector<8x128xf32> -> vector<8x128xf32>
    %441 = arith.addf %440, %222 : vector<8x128xf32>
    %442 = arith.index_cast %c3_i32_192 : i32 to index
    %c0_215 = arith.constant 0 : index
    %c0_216 = arith.constant 0 : index
    %443 = vector.load %arg9[%442, %c0_215, %c0_216] : memref<6x8x128xf32, #tpu.memory_space<vmem>>, vector<1x8x128xf32>
    %444 = vector.shape_cast %443 : vector<1x8x128xf32> to vector<8x128xf32>
    %445 = vector.shape_cast %441 : vector<8x128xf32> to vector<1x8x128xf32>
    tpu.vector_store %arg9[%442, %c0_215, %c0_216], %445 {strides = array<i32>} : memref<6x8x128xf32, #tpu.memory_space<vmem>>, vector<1x8x128xf32>,
    %c1_i32_217 = arith.constant 1 : i32
    %446 = arith.addi %c3_i32_192, %c1_i32_217 : i32
    %c6_i32_218 = arith.constant 6 : i32
    %447 = arith.cmpi slt, %446, %c6_i32_218 : i32
    %c1_i32_219 = arith.constant 1 : i32
    %448 = arith.addi %c3_i32_192, %c1_i32_219 : i32
    %449 = arith.index_cast %448 : i32 to index
    %450 = memref.load %arg1[%449] : memref<7xi32, #tpu.memory_space<smem>>
    %c0_i32_220 = arith.constant 0 : i32
    %451 = arith.cmpi eq, %450, %c0_i32_220 : i32
    %452 = arith.andi %447, %451 : i1
    %453 = arith.extui %452 : i1 to i32
    %c0_i32_221 = arith.constant 0 : i32
    %454 = arith.cmpi ne, %453, %c0_i32_221 : i32
    scf.if %454 {
      %571 = tpu.iota {dimensions = array<i32: 1>} : vector<8x128xi32>
      %572 = arith.sitofp %571 : vector<8x128xi32> to vector<8x128xf32>
      %cst_283 = arith.constant dense<0xFF800000> : vector<8xf32>
      %573 = vector.multi_reduction <maximumf>, %441, %cst_283 [1] : vector<8x128xf32> to vector<8xf32>
      %574 = vector.shape_cast %573 : vector<8xf32> to vector<8x1xf32>
      %575 = vector.broadcast %574 : vector<8x1xf32> to vector<8x128xf32>
      %576 = arith.cmpf oge, %441, %575 : vector<8x128xf32>
      %cst_284 = arith.constant 1.280000e+02 : f32
      %577 = vector.broadcast %cst_284 : f32 to vector<8x128xf32>
      %578 = arith.select %576, %572, %577 : vector<8x128xi1>, vector<8x128xf32>
      %cst_285 = arith.constant dense<0x7F800000> : vector<8xf32>
      %579 = vector.multi_reduction <minimumf>, %578, %cst_285 [1] : vector<8x128xf32> to vector<8xf32>
      %580 = vector.shape_cast %579 : vector<8xf32> to vector<8x1xf32>
      %581 = vector.broadcast %580 : vector<8x1xf32> to vector<8x128xf32>
      %582 = arith.cmpf oeq, %572, %581 : vector<8x128xf32>
      %583 = arith.extui %582 : vector<8x128xi1> to vector<8x128xi32>
      %584 = arith.sitofp %583 : vector<8x128xi32> to vector<8x128xf32>
      %585 = arith.truncf %584 : vector<8x128xf32> to vector<8x128xbf16>
      %c0_286 = arith.constant 0 : index
      %c0_287 = arith.constant 0 : index
      %586 = vector.load %arg8[%c0_286, %c0_287] : memref<128x128xbf16, #tpu.memory_space<vmem>>, vector<128x128xbf16>
      %cst_288 = arith.constant dense<0.000000e+00> : vector<8x128xf32>
      %587 = tpu.matmul %585, %586, %cst_288 {dimension_numbers = #tpu.dot_dimension_numbers<[1], [0], [0], [1], [0, 0, 1, 1], [], []>} : vector<8x128xbf16>, vector<128x128xbf16>, vector<8x128xf32> -> vector<8x128xf32>
      %c0_289 = arith.constant 0 : index
      %c0_290 = arith.constant 0 : index
      %588 = vector.load %arg12[%c0_289, %c0_290] : memref<8x128xf32, #tpu.memory_space<vmem>>, vector<8x128xf32>
      tpu.vector_store %arg12[%c0_289, %c0_290], %587 {strides = array<i32>} : memref<8x128xf32, #tpu.memory_space<vmem>>, vector<8x128xf32>,
    } else {
    }
    %c4_i32_222 = arith.constant 4 : i32
    %c0_i32_223 = arith.constant 0 : i32
    %455 = arith.cmpi eq, %c4_i32_222, %c0_i32_223 : i32
    %456 = arith.index_cast %c4_i32_222 : i32 to index
    %457 = memref.load %arg1[%456] : memref<7xi32, #tpu.memory_space<smem>>
    %c0_i32_224 = arith.constant 0 : i32
    %458 = arith.cmpi ne, %457, %c0_i32_224 : i32
    %459 = arith.ori %455, %458 : i1
    %460 = arith.extui %459 : i1 to i32
    %c0_i32_225 = arith.constant 0 : i32
    %461 = arith.cmpi ne, %460, %c0_i32_225 : i32
    scf.if %461 {
      %571 = arith.index_cast %c4_i32_222 : i32 to index
      %c0_283 = arith.constant 0 : index
      %c0_284 = arith.constant 0 : index
      %572 = vector.load %arg3[%571, %c0_283, %c0_284] : memref<6x8x128xf32, #tpu.memory_space<vmem>>, vector<1x8x128xf32>
      %573 = vector.shape_cast %572 : vector<1x8x128xf32> to vector<8x128xf32>
      %c0_285 = arith.constant 0 : index
      %c0_286 = arith.constant 0 : index
      %574 = vector.load %arg12[%c0_285, %c0_286] : memref<8x128xf32, #tpu.memory_space<vmem>>, vector<8x128xf32>
      tpu.vector_store %arg12[%c0_285, %c0_286], %573 {strides = array<i32>} : memref<8x128xf32, #tpu.memory_space<vmem>>, vector<8x128xf32>,
    } else {
    }
    %c0_226 = arith.constant 0 : index
    %c0_227 = arith.constant 0 : index
    %462 = vector.load %arg12[%c0_226, %c0_227] : memref<8x128xf32, #tpu.memory_space<vmem>>, vector<8x128xf32>
    %c0_228 = arith.constant 0 : index
    %c0_229 = arith.constant 0 : index
    %463 = vector.load %arg10[%c0_228, %c0_229] : memref<8x128xf32, #tpu.memory_space<vmem>>, vector<8x128xf32>
    %464 = arith.addf %463, %462 : vector<8x128xf32>
    %465 = arith.truncf %464 : vector<8x128xf32> to vector<8x128xbf16>
    %c0_230 = arith.constant 0 : index
    %c0_231 = arith.constant 0 : index
    %466 = vector.load %arg5[%c0_230, %c0_231] : memref<128x512xbf16, #tpu.memory_space<vmem>>, vector<128x512xbf16>
    %cst_232 = arith.constant dense<0.000000e+00> : vector<8x512xf32>
    %467 = tpu.matmul %465, %466, %cst_232 {dimension_numbers = #tpu.dot_dimension_numbers<[1], [0], [0], [1], [0, 0, 1, 1], [], []>} : vector<8x128xbf16>, vector<128x512xbf16>, vector<8x512xf32> -> vector<8x512xf32>
    %468 = vector.extract_strided_slice %467 {offsets = [0, 0], sizes = [8, 128], strides = [1, 1]} : vector<8x512xf32> to vector<8x128xf32>
    %469 = arith.negf %468 : vector<8x128xf32>
    %470 = math.exp %469 : vector<8x128xf32>
    %cst_233 = arith.constant 1.000000e+00 : f32
    %471 = vector.broadcast %cst_233 : f32 to vector<8x128xf32>
    %472 = arith.addf %471, %470 : vector<8x128xf32>
    %473 = arith.divf %471, %472 : vector<8x128xf32>
    %474 = vector.extract_strided_slice %467 {offsets = [0, 128], sizes = [8, 128], strides = [1, 1]} : vector<8x512xf32> to vector<8x128xf32>
    %475 = arith.negf %474 : vector<8x128xf32>
    %476 = math.exp %475 : vector<8x128xf32>
    %cst_234 = arith.constant 1.000000e+00 : f32
    %477 = vector.broadcast %cst_234 : f32 to vector<8x128xf32>
    %478 = arith.addf %477, %476 : vector<8x128xf32>
    %479 = arith.divf %477, %478 : vector<8x128xf32>
    %480 = vector.extract_strided_slice %467 {offsets = [0, 256], sizes = [8, 128], strides = [1, 1]} : vector<8x512xf32> to vector<8x128xf32>
    %481 = math.tanh %480 : vector<8x128xf32>
    %482 = vector.extract_strided_slice %467 {offsets = [0, 384], sizes = [8, 128], strides = [1, 1]} : vector<8x512xf32> to vector<8x128xf32>
    %483 = arith.negf %482 : vector<8x128xf32>
    %484 = math.exp %483 : vector<8x128xf32>
    %cst_235 = arith.constant 1.000000e+00 : f32
    %485 = vector.broadcast %cst_235 : f32 to vector<8x128xf32>
    %486 = arith.addf %485, %484 : vector<8x128xf32>
    %487 = arith.divf %485, %486 : vector<8x128xf32>
    %c0_236 = arith.constant 0 : index
    %c0_237 = arith.constant 0 : index
    %488 = vector.load %arg11[%c0_236, %c0_237] : memref<8x128xf32, #tpu.memory_space<vmem>>, vector<8x128xf32>
    %489 = arith.mulf %479, %488 : vector<8x128xf32>
    %490 = arith.mulf %473, %481 : vector<8x128xf32>
    %491 = arith.addf %489, %490 : vector<8x128xf32>
    %492 = math.tanh %491 : vector<8x128xf32>
    %493 = arith.mulf %487, %492 : vector<8x128xf32>
    %c0_238 = arith.constant 0 : index
    %c0_239 = arith.constant 0 : index
    %494 = vector.load %arg10[%c0_238, %c0_239] : memref<8x128xf32, #tpu.memory_space<vmem>>, vector<8x128xf32>
    tpu.vector_store %arg10[%c0_238, %c0_239], %493 {strides = array<i32>} : memref<8x128xf32, #tpu.memory_space<vmem>>, vector<8x128xf32>,
    %c0_240 = arith.constant 0 : index
    %c0_241 = arith.constant 0 : index
    %495 = vector.load %arg11[%c0_240, %c0_241] : memref<8x128xf32, #tpu.memory_space<vmem>>, vector<8x128xf32>
    tpu.vector_store %arg11[%c0_240, %c0_241], %491 {strides = array<i32>} : memref<8x128xf32, #tpu.memory_space<vmem>>, vector<8x128xf32>,
    %496 = arith.truncf %493 : vector<8x128xf32> to vector<8x128xbf16>
    %c0_242 = arith.constant 0 : index
    %c0_243 = arith.constant 0 : index
    %497 = vector.load %arg6[%c0_242, %c0_243] : memref<128x128xbf16, #tpu.memory_space<vmem>>, vector<128x128xbf16>
    %cst_244 = arith.constant dense<0.000000e+00> : vector<8x128xf32>
    %498 = tpu.matmul %496, %497, %cst_244 {dimension_numbers = #tpu.dot_dimension_numbers<[1], [0], [0], [1], [0, 0, 1, 1], [], []>} : vector<8x128xbf16>, vector<128x128xbf16>, vector<8x128xf32> -> vector<8x128xf32>
    %499 = arith.addf %498, %222 : vector<8x128xf32>
    %500 = arith.index_cast %c4_i32_222 : i32 to index
    %c0_245 = arith.constant 0 : index
    %c0_246 = arith.constant 0 : index
    %501 = vector.load %arg9[%500, %c0_245, %c0_246] : memref<6x8x128xf32, #tpu.memory_space<vmem>>, vector<1x8x128xf32>
    %502 = vector.shape_cast %501 : vector<1x8x128xf32> to vector<8x128xf32>
    %503 = vector.shape_cast %499 : vector<8x128xf32> to vector<1x8x128xf32>
    tpu.vector_store %arg9[%500, %c0_245, %c0_246], %503 {strides = array<i32>} : memref<6x8x128xf32, #tpu.memory_space<vmem>>, vector<1x8x128xf32>,
    %c1_i32_247 = arith.constant 1 : i32
    %504 = arith.addi %c4_i32_222, %c1_i32_247 : i32
    %c6_i32_248 = arith.constant 6 : i32
    %505 = arith.cmpi slt, %504, %c6_i32_248 : i32
    %c1_i32_249 = arith.constant 1 : i32
    %506 = arith.addi %c4_i32_222, %c1_i32_249 : i32
    %507 = arith.index_cast %506 : i32 to index
    %508 = memref.load %arg1[%507] : memref<7xi32, #tpu.memory_space<smem>>
    %c0_i32_250 = arith.constant 0 : i32
    %509 = arith.cmpi eq, %508, %c0_i32_250 : i32
    %510 = arith.andi %505, %509 : i1
    %511 = arith.extui %510 : i1 to i32
    %c0_i32_251 = arith.constant 0 : i32
    %512 = arith.cmpi ne, %511, %c0_i32_251 : i32
    scf.if %512 {
      %571 = tpu.iota {dimensions = array<i32: 1>} : vector<8x128xi32>
      %572 = arith.sitofp %571 : vector<8x128xi32> to vector<8x128xf32>
      %cst_283 = arith.constant dense<0xFF800000> : vector<8xf32>
      %573 = vector.multi_reduction <maximumf>, %499, %cst_283 [1] : vector<8x128xf32> to vector<8xf32>
      %574 = vector.shape_cast %573 : vector<8xf32> to vector<8x1xf32>
      %575 = vector.broadcast %574 : vector<8x1xf32> to vector<8x128xf32>
      %576 = arith.cmpf oge, %499, %575 : vector<8x128xf32>
      %cst_284 = arith.constant 1.280000e+02 : f32
      %577 = vector.broadcast %cst_284 : f32 to vector<8x128xf32>
      %578 = arith.select %576, %572, %577 : vector<8x128xi1>, vector<8x128xf32>
      %cst_285 = arith.constant dense<0x7F800000> : vector<8xf32>
      %579 = vector.multi_reduction <minimumf>, %578, %cst_285 [1] : vector<8x128xf32> to vector<8xf32>
      %580 = vector.shape_cast %579 : vector<8xf32> to vector<8x1xf32>
      %581 = vector.broadcast %580 : vector<8x1xf32> to vector<8x128xf32>
      %582 = arith.cmpf oeq, %572, %581 : vector<8x128xf32>
      %583 = arith.extui %582 : vector<8x128xi1> to vector<8x128xi32>
      %584 = arith.sitofp %583 : vector<8x128xi32> to vector<8x128xf32>
      %585 = arith.truncf %584 : vector<8x128xf32> to vector<8x128xbf16>
      %c0_286 = arith.constant 0 : index
      %c0_287 = arith.constant 0 : index
      %586 = vector.load %arg8[%c0_286, %c0_287] : memref<128x128xbf16, #tpu.memory_space<vmem>>, vector<128x128xbf16>
      %cst_288 = arith.constant dense<0.000000e+00> : vector<8x128xf32>
      %587 = tpu.matmul %585, %586, %cst_288 {dimension_numbers = #tpu.dot_dimension_numbers<[1], [0], [0], [1], [0, 0, 1, 1], [], []>} : vector<8x128xbf16>, vector<128x128xbf16>, vector<8x128xf32> -> vector<8x128xf32>
      %c0_289 = arith.constant 0 : index
      %c0_290 = arith.constant 0 : index
      %588 = vector.load %arg12[%c0_289, %c0_290] : memref<8x128xf32, #tpu.memory_space<vmem>>, vector<8x128xf32>
      tpu.vector_store %arg12[%c0_289, %c0_290], %587 {strides = array<i32>} : memref<8x128xf32, #tpu.memory_space<vmem>>, vector<8x128xf32>,
    } else {
    }
    %c5_i32_252 = arith.constant 5 : i32
    %c0_i32_253 = arith.constant 0 : i32
    %513 = arith.cmpi eq, %c5_i32_252, %c0_i32_253 : i32
    %514 = arith.index_cast %c5_i32_252 : i32 to index
    %515 = memref.load %arg1[%514] : memref<7xi32, #tpu.memory_space<smem>>
    %c0_i32_254 = arith.constant 0 : i32
    %516 = arith.cmpi ne, %515, %c0_i32_254 : i32
    %517 = arith.ori %513, %516 : i1
    %518 = arith.extui %517 : i1 to i32
    %c0_i32_255 = arith.constant 0 : i32
    %519 = arith.cmpi ne, %518, %c0_i32_255 : i32
    scf.if %519 {
      %571 = arith.index_cast %c5_i32_252 : i32 to index
      %c0_283 = arith.constant 0 : index
      %c0_284 = arith.constant 0 : index
      %572 = vector.load %arg3[%571, %c0_283, %c0_284] : memref<6x8x128xf32, #tpu.memory_space<vmem>>, vector<1x8x128xf32>
      %573 = vector.shape_cast %572 : vector<1x8x128xf32> to vector<8x128xf32>
      %c0_285 = arith.constant 0 : index
      %c0_286 = arith.constant 0 : index
      %574 = vector.load %arg12[%c0_285, %c0_286] : memref<8x128xf32, #tpu.memory_space<vmem>>, vector<8x128xf32>
      tpu.vector_store %arg12[%c0_285, %c0_286], %573 {strides = array<i32>} : memref<8x128xf32, #tpu.memory_space<vmem>>, vector<8x128xf32>,
    } else {
    }
    %c0_256 = arith.constant 0 : index
    %c0_257 = arith.constant 0 : index
    %520 = vector.load %arg12[%c0_256, %c0_257] : memref<8x128xf32, #tpu.memory_space<vmem>>, vector<8x128xf32>
    %c0_258 = arith.constant 0 : index
    %c0_259 = arith.constant 0 : index
    %521 = vector.load %arg10[%c0_258, %c0_259] : memref<8x128xf32, #tpu.memory_space<vmem>>, vector<8x128xf32>
    %522 = arith.addf %521, %520 : vector<8x128xf32>
    %523 = arith.truncf %522 : vector<8x128xf32> to vector<8x128xbf16>
    %c0_260 = arith.constant 0 : index
    %c0_261 = arith.constant 0 : index
    %524 = vector.load %arg5[%c0_260, %c0_261] : memref<128x512xbf16, #tpu.memory_space<vmem>>, vector<128x512xbf16>
    %cst_262 = arith.constant dense<0.000000e+00> : vector<8x512xf32>
    %525 = tpu.matmul %523, %524, %cst_262 {dimension_numbers = #tpu.dot_dimension_numbers<[1], [0], [0], [1], [0, 0, 1, 1], [], []>} : vector<8x128xbf16>, vector<128x512xbf16>, vector<8x512xf32> -> vector<8x512xf32>
    %526 = vector.extract_strided_slice %525 {offsets = [0, 0], sizes = [8, 128], strides = [1, 1]} : vector<8x512xf32> to vector<8x128xf32>
    %527 = arith.negf %526 : vector<8x128xf32>
    %528 = math.exp %527 : vector<8x128xf32>
    %cst_263 = arith.constant 1.000000e+00 : f32
    %529 = vector.broadcast %cst_263 : f32 to vector<8x128xf32>
    %530 = arith.addf %529, %528 : vector<8x128xf32>
    %531 = arith.divf %529, %530 : vector<8x128xf32>
    %532 = vector.extract_strided_slice %525 {offsets = [0, 128], sizes = [8, 128], strides = [1, 1]} : vector<8x512xf32> to vector<8x128xf32>
    %533 = arith.negf %532 : vector<8x128xf32>
    %534 = math.exp %533 : vector<8x128xf32>
    %cst_264 = arith.constant 1.000000e+00 : f32
    %535 = vector.broadcast %cst_264 : f32 to vector<8x128xf32>
    %536 = arith.addf %535, %534 : vector<8x128xf32>
    %537 = arith.divf %535, %536 : vector<8x128xf32>
    %538 = vector.extract_strided_slice %525 {offsets = [0, 256], sizes = [8, 128], strides = [1, 1]} : vector<8x512xf32> to vector<8x128xf32>
    %539 = math.tanh %538 : vector<8x128xf32>
    %540 = vector.extract_strided_slice %525 {offsets = [0, 384], sizes = [8, 128], strides = [1, 1]} : vector<8x512xf32> to vector<8x128xf32>
    %541 = arith.negf %540 : vector<8x128xf32>
    %542 = math.exp %541 : vector<8x128xf32>
    %cst_265 = arith.constant 1.000000e+00 : f32
    %543 = vector.broadcast %cst_265 : f32 to vector<8x128xf32>
    %544 = arith.addf %543, %542 : vector<8x128xf32>
    %545 = arith.divf %543, %544 : vector<8x128xf32>
    %c0_266 = arith.constant 0 : index
    %c0_267 = arith.constant 0 : index
    %546 = vector.load %arg11[%c0_266, %c0_267] : memref<8x128xf32, #tpu.memory_space<vmem>>, vector<8x128xf32>
    %547 = arith.mulf %537, %546 : vector<8x128xf32>
    %548 = arith.mulf %531, %539 : vector<8x128xf32>
    %549 = arith.addf %547, %548 : vector<8x128xf32>
    %550 = math.tanh %549 : vector<8x128xf32>
    %551 = arith.mulf %545, %550 : vector<8x128xf32>
    %c0_268 = arith.constant 0 : index
    %c0_269 = arith.constant 0 : index
    %552 = vector.load %arg10[%c0_268, %c0_269] : memref<8x128xf32, #tpu.memory_space<vmem>>, vector<8x128xf32>
    tpu.vector_store %arg10[%c0_268, %c0_269], %551 {strides = array<i32>} : memref<8x128xf32, #tpu.memory_space<vmem>>, vector<8x128xf32>,
    %c0_270 = arith.constant 0 : index
    %c0_271 = arith.constant 0 : index
    %553 = vector.load %arg11[%c0_270, %c0_271] : memref<8x128xf32, #tpu.memory_space<vmem>>, vector<8x128xf32>
    tpu.vector_store %arg11[%c0_270, %c0_271], %549 {strides = array<i32>} : memref<8x128xf32, #tpu.memory_space<vmem>>, vector<8x128xf32>,
    %554 = arith.truncf %551 : vector<8x128xf32> to vector<8x128xbf16>
    %c0_272 = arith.constant 0 : index
    %c0_273 = arith.constant 0 : index
    %555 = vector.load %arg6[%c0_272, %c0_273] : memref<128x128xbf16, #tpu.memory_space<vmem>>, vector<128x128xbf16>
    %cst_274 = arith.constant dense<0.000000e+00> : vector<8x128xf32>
    %556 = tpu.matmul %554, %555, %cst_274 {dimension_numbers = #tpu.dot_dimension_numbers<[1], [0], [0], [1], [0, 0, 1, 1], [], []>} : vector<8x128xbf16>, vector<128x128xbf16>, vector<8x128xf32> -> vector<8x128xf32>
    %557 = arith.addf %556, %222 : vector<8x128xf32>
    %558 = arith.index_cast %c5_i32_252 : i32 to index
    %c0_275 = arith.constant 0 : index
    %c0_276 = arith.constant 0 : index
    %559 = vector.load %arg9[%558, %c0_275, %c0_276] : memref<6x8x128xf32, #tpu.memory_space<vmem>>, vector<1x8x128xf32>
    %560 = vector.shape_cast %559 : vector<1x8x128xf32> to vector<8x128xf32>
    %561 = vector.shape_cast %557 : vector<8x128xf32> to vector<1x8x128xf32>
    tpu.vector_store %arg9[%558, %c0_275, %c0_276], %561 {strides = array<i32>} : memref<6x8x128xf32, #tpu.memory_space<vmem>>, vector<1x8x128xf32>,
    %c1_i32_277 = arith.constant 1 : i32
    %562 = arith.addi %c5_i32_252, %c1_i32_277 : i32
    %c6_i32_278 = arith.constant 6 : i32
    %563 = arith.cmpi slt, %562, %c6_i32_278 : i32
    %c1_i32_279 = arith.constant 1 : i32
    %564 = arith.addi %c5_i32_252, %c1_i32_279 : i32
    %565 = arith.index_cast %564 : i32 to index
    %566 = memref.load %arg1[%565] : memref<7xi32, #tpu.memory_space<smem>>
    %c0_i32_280 = arith.constant 0 : i32
    %567 = arith.cmpi eq, %566, %c0_i32_280 : i32
    %568 = arith.andi %563, %567 : i1
    %569 = arith.extui %568 : i1 to i32
    %c0_i32_281 = arith.constant 0 : i32
    %570 = arith.cmpi ne, %569, %c0_i32_281 : i32
    scf.if %570 {
      %571 = tpu.iota {dimensions = array<i32: 1>} : vector<8x128xi32>
      %572 = arith.sitofp %571 : vector<8x128xi32> to vector<8x128xf32>
      %cst_283 = arith.constant dense<0xFF800000> : vector<8xf32>
      %573 = vector.multi_reduction <maximumf>, %557, %cst_283 [1] : vector<8x128xf32> to vector<8xf32>
      %574 = vector.shape_cast %573 : vector<8xf32> to vector<8x1xf32>
      %575 = vector.broadcast %574 : vector<8x1xf32> to vector<8x128xf32>
      %576 = arith.cmpf oge, %557, %575 : vector<8x128xf32>
      %cst_284 = arith.constant 1.280000e+02 : f32
      %577 = vector.broadcast %cst_284 : f32 to vector<8x128xf32>
      %578 = arith.select %576, %572, %577 : vector<8x128xi1>, vector<8x128xf32>
      %cst_285 = arith.constant dense<0x7F800000> : vector<8xf32>
      %579 = vector.multi_reduction <minimumf>, %578, %cst_285 [1] : vector<8x128xf32> to vector<8xf32>
      %580 = vector.shape_cast %579 : vector<8xf32> to vector<8x1xf32>
      %581 = vector.broadcast %580 : vector<8x1xf32> to vector<8x128xf32>
      %582 = arith.cmpf oeq, %572, %581 : vector<8x128xf32>
      %583 = arith.extui %582 : vector<8x128xi1> to vector<8x128xi32>
      %584 = arith.sitofp %583 : vector<8x128xi32> to vector<8x128xf32>
      %585 = arith.truncf %584 : vector<8x128xf32> to vector<8x128xbf16>
      %c0_286 = arith.constant 0 : index
      %c0_287 = arith.constant 0 : index
      %586 = vector.load %arg8[%c0_286, %c0_287] : memref<128x128xbf16, #tpu.memory_space<vmem>>, vector<128x128xbf16>
      %cst_288 = arith.constant dense<0.000000e+00> : vector<8x128xf32>
      %587 = tpu.matmul %585, %586, %cst_288 {dimension_numbers = #tpu.dot_dimension_numbers<[1], [0], [0], [1], [0, 0, 1, 1], [], []>} : vector<8x128xbf16>, vector<128x128xbf16>, vector<8x128xf32> -> vector<8x128xf32>
      %c0_289 = arith.constant 0 : index
      %c0_290 = arith.constant 0 : index
      %588 = vector.load %arg12[%c0_289, %c0_290] : memref<8x128xf32, #tpu.memory_space<vmem>>, vector<8x128xf32>
      tpu.vector_store %arg12[%c0_289, %c0_290], %587 {strides = array<i32>} : memref<8x128xf32, #tpu.memory_space<vmem>>, vector<8x128xf32>,
    } else {
    }
    %c6_i32_282 = arith.constant 6 : i32
    return
  }
  func.func @transform_0(%arg0: i32, %arg1: memref<7xi32, #tpu.memory_space<smem>>) -> (i32, i32, i32) {
    %c0_i32 = arith.constant 0 : i32
    %c0_i32_0 = arith.constant 0 : i32
    %c0_i32_1 = arith.constant 0 : i32
    %c0_i32_2 = arith.constant 0 : i32
    return %c0_i32, %c0_i32_0, %c0_i32_1 : i32, i32, i32
  }
  func.func @transform_1(%arg0: i32, %arg1: memref<7xi32, #tpu.memory_space<smem>>) -> (i32, i32, i32) {
    %c0_i32 = arith.constant 0 : i32
    %c0_i32_0 = arith.constant 0 : i32
    %c0_i32_1 = arith.constant 0 : i32
    %c0_i32_2 = arith.constant 0 : i32
    return %c0_i32, %c0_i32_0, %c0_i32_1 : i32, i32, i32
  }
  func.func @transform_2(%arg0: i32, %arg1: memref<7xi32, #tpu.memory_space<smem>>) -> (i32, i32) {
    %c0_i32 = arith.constant 0 : i32
    %c0_i32_0 = arith.constant 0 : i32
    %c0_i32_1 = arith.constant 0 : i32
    return %c0_i32, %c0_i32_0 : i32, i32
  }
  func.func @transform_3(%arg0: i32, %arg1: memref<7xi32, #tpu.memory_space<smem>>) -> (i32, i32) {
    %c0_i32 = arith.constant 0 : i32
    %c0_i32_0 = arith.constant 0 : i32
    %c0_i32_1 = arith.constant 0 : i32
    return %c0_i32, %c0_i32_0 : i32, i32
  }
  func.func @transform_4(%arg0: i32, %arg1: memref<7xi32, #tpu.memory_space<smem>>) -> (i32, i32) {
    %c0_i32 = arith.constant 0 : i32
    %c0_i32_0 = arith.constant 0 : i32
    %c0_i32_1 = arith.constant 0 : i32
    return %c0_i32, %c0_i32_0 : i32, i32
  }
  func.func @transform_5(%arg0: i32, %arg1: memref<7xi32, #tpu.memory_space<smem>>) -> (i32, i32) {
    %c0_i32 = arith.constant 0 : i32
    %c0_i32_0 = arith.constant 0 : i32
    %c0_i32_1 = arith.constant 0 : i32
    return %c0_i32, %c0_i32_0 : i32, i32
  }
  func.func @transform_6(%arg0: i32, %arg1: memref<7xi32, #tpu.memory_space<smem>>) -> (i32, i32) {
    %c0_i32 = arith.constant 0 : i32
    %c0_i32_0 = arith.constant 0 : i32
    %c0_i32_1 = arith.constant 0 : i32
    return %c0_i32, %c0_i32_0 : i32, i32
  }
  func.func @transform_7(%arg0: i32, %arg1: memref<7xi32, #tpu.memory_space<smem>>) -> (i32, i32, i32) {
    %c0_i32 = arith.constant 0 : i32
    %c0_i32_0 = arith.constant 0 : i32
    %c0_i32_1 = arith.constant 0 : i32
    %c0_i32_2 = arith.constant 0 : i32
    return %c0_i32, %c0_i32_0, %c0_i32_1 : i32, i32, i32
  }
}

</mosaic_0001>

<bundles_post_ra>
// kernel: seq2seq_forward.1
= control target key start
LH: loop header
LB: loop body
LE: loop exit
PB: predicated region body
PF: predicated region fallthrough
CT: control target
= control target key end

     0   :  { %s8173_s0 = inlined_call_operand.vmem [shape: s32[7], index: 0, kind: input, shape index: {}]   ;;  %s8174_s1 = inlined_call_operand.vmem [shape: f32[6,8,128], index: 1, kind: input, shape index: {}]   ;;  %s8175_s2 = inlined_call_operand.vmem [shape: f32[6,8,128], index: 2, kind: input, shape index: {}]   ;;  %s8176_s3 = inlined_call_operand.vmem [shape: bf16[128,512], index: 3, kind: input, shape index: {}]   ;;  %s8177_s4 = inlined_call_operand.vmem [shape: bf16[128,512], index: 4, kind: input, shape index: {}]   ;;  %s8178_s5 = inlined_call_operand.vmem [shape: bf16[128,128], index: 5, kind: input, shape index: {}]   ;;  %s8179_s6 = inlined_call_operand.vmem [shape: f32[1,128], index: 6, kind: input, shape index: {}]   ;;  %s8180_s7 = inlined_call_operand.vmem [shape: bf16[128,128], index: 7, kind: input, shape index: {}]   ;;  %s8181_s8 = inlined_call_operand.vmem [shape: f32[6,8,128], index: 8, kind: output, shape index: {}]  }
   0x1   :  { %s13_s29 = sshll.u32 %s8173_s0, 4  ;;  %s14_s29 = int_to_ptr.vmem [resolvable:$true] %s13_s29 }
   0x2   :  { %s6571_s30 = scalar_lea.vmem %s14_s29, 16  ;;  %p6576_p1 = scmp.lt.s32.totalorder %s14_s29, %s14_s29 }
   0x3   :  { %p6572_p0 = scmp.ne.s32.totalorder %s14_s29, %s6571_s30  ;;  %p6577_p2 = scmp.lt.s32.totalorder %s6571_s30, %s6571_s30 }
   0x5   :  { %p6578_p3 = por %p6577_p2, %p6576_p1 }
   0x7   :  { %p6579_p4 = pnand %p6578_p3, %p6572_p0 }
   0x9   :  { %6582 = shalt.err (!%p6579_p4)  }
   0xa   :  { %s6585_s9 = smov [#allocation6]  }
   0xb   :  { %16 = dma.vmem_to_smem %s14_s29, 16, %s6585_s9, [#allocation5] }
   0xc   :  { %6583 = dma.done.wait [#allocation5], 16 }
   0xd   :  { %6584 = vsyncadd [#allocation5], 4294967280 }
   0xe   :  { %18 = sfence }
   0xf   :  { %v6655_v0 = vld [vmem:[%s8176_s3 + $0x4] ss:$16 sps:$4 sm:$0xff]   ;;  %v6660_v1 = vld [vmem:[%s8176_s3] ss:$16 sps:$4 sm:$0xff]   ;;  %v6586_v2 = vmov 0   ;;  %v5045_v60 = vld [vmem:[%s8174_s1 + $0x8] sm:$0xff] }
  0x10   :  { %264 = vmatprep.mubr.bf16.mxu0 %v6586_v2  ;;  %305 = vmatprep.mubr.bf16.mxu1 %v6586_v2  ;;  %v6668_v3 = vld [vmem:[%s8176_s3 + $0x24] ss:$16 sps:$4 sm:$0xff]   ;;  %v6674_v4 = vld [vmem:[%s8176_s3 + $0x20] ss:$16 sps:$4 sm:$0xff]   ;;  %v6685_v6 = vld [vmem:[%s8176_s3 + $0xc] ss:$16 sps:$4 sm:$0xff]  }
  0x11   :  { %232 = vmatprep.subr.bf16.mxu0 %v6655_v0  ;;  %v6680_v5 = vld [vmem:[%s8176_s3 + $0x44] ss:$16 sps:$4 sm:$0xff]   ;;  %v6690_v7 = vld [vmem:[%s8176_s3 + $0x8] ss:$16 sps:$4 sm:$0xff]   ;;  %v6696_v8 = vld [vmem:[%s8176_s3 + $0x40] ss:$16 sps:$4 sm:$0xff]   ;;  %273 = vmatprep.subr.bf16.mxu1 %v6685_v6 }
  0x12   :  { %233 = vmatpush1.bf16.msra.mxu0 %v6660_v1  ;;  %v6703_v9 = vld [vmem:[%s8176_s3 + $0x64] ss:$16 sps:$4 sm:$0xff]   ;;  %274 = vmatpush1.bf16.msra.mxu1 %v6690_v7  ;;  %v6709_v10 = vld [vmem:[%s8176_s3 + $0x2c] ss:$16 sps:$4 sm:$0xff]   ;;  %v6714_v11 = vld [vmem:[%s8176_s3 + $0x28] ss:$16 sps:$4 sm:$0xff]  }
  0x13   :  { %234 = vmatprep.subr.bf16.mxu0 %v6668_v3  ;;  %275 = vmatprep.subr.bf16.mxu1 %v6709_v10  ;;  %v6721_v12 = vld [vmem:[%s8176_s3 + $0x60] ss:$16 sps:$4 sm:$0xff]   ;;  %v6726_v13 = vld [vmem:[%s8176_s3 + $0x84] ss:$16 sps:$4 sm:$0xff]   ;;  %v6731_v14 = vld [vmem:[%s8176_s3 + $0x4c] ss:$16 sps:$4 sm:$0xff]  }
  0x14   :  { %v6738_v15 = vld [vmem:[%s8176_s3 + $0x48] ss:$16 sps:$4 sm:$0xff]   ;;  %v6744_v16 = vld [vmem:[%s8176_s3 + $0x6c] ss:$16 sps:$4 sm:$0xff]   ;;  %v6750_v17 = vld [vmem:[%s8176_s3 + $0x80] ss:$16 sps:$4 sm:$0xff]  }
  0x15   :  { %v6756_v18 = vld [vmem:[%s8176_s3 + $0xa4] ss:$16 sps:$4 sm:$0xff]   ;;  %v6762_v19 = vld [vmem:[%s8176_s3 + $0x68] ss:$16 sps:$4 sm:$0xff]   ;;  %v6768_v20 = vld [vmem:[%s8176_s3 + $0x8c] ss:$16 sps:$4 sm:$0xff]  }
  0x16   :  { %235 = vmatpush1.bf16.msra.mxu0 %v6674_v4  ;;  %276 = vmatpush1.bf16.msra.mxu1 %v6714_v11  ;;  %v6773_v21 = vld [vmem:[%s8176_s3 + $0xa0] ss:$16 sps:$4 sm:$0xff]   ;;  %v6779_v22 = vld [vmem:[%s8176_s3 + $0xc4] ss:$16 sps:$4 sm:$0xff]   ;;  %v6786_v23 = vld [vmem:[%s8176_s3 + $0x88] ss:$16 sps:$4 sm:$0xff]  }
  0x17   :  { %236 = vmatprep.subr.bf16.mxu0 %v6680_v5  ;;  %277 = vmatprep.subr.bf16.mxu1 %v6731_v14  ;;  %v6791_v24 = vld [vmem:[%s8176_s3 + $0xc0] ss:$16 sps:$4 sm:$0xff]   ;;  %v6800_v26 = vld [vmem:[%s8176_s3 + $0xac] ss:$16 sps:$4 sm:$0xff]   ;;  %v6805_v27 = vld [vmem:[%s8176_s3 + $0xe4] ss:$16 sps:$4 sm:$0xff]  }
  0x18   :  { %v36_v25 = vld [vmem:[%s8174_s1] sm:$0xff]  ;;  %v6810_v28 = vld [vmem:[%s8176_s3 + $0xa8] ss:$16 sps:$4 sm:$0xff]   ;;  %v6816_v29 = vld [vmem:[%s8176_s3 + $0xcc] ss:$16 sps:$4 sm:$0xff]   ;;  %vm6588_vm0 = vmmov 0  }
  0x19   :  { %v6823_v30 = vld [vmem:[%s8176_s3 + $0xe0] ss:$16 sps:$4 sm:$0xff]   ;;  %v6829_v31 = vld [vmem:[%s8176_s3 + $0xc8] ss:$16 sps:$4 sm:$0xff]   ;;  %v6835_v32 = vld [vmem:[%s8176_s3 + $0xec] ss:$16 sps:$4 sm:$0xff]   ;;  %v39_v33 = vpack.c.bf16 %v36_v25, %v36_v25 }
  0x1a   :  { %237 = vmatpush1.bf16.msra.mxu0 %v6696_v8  ;;  %278 = vmatpush1.bf16.msra.mxu1 %v6738_v15  ;;  %v6843_v34 = vld [vmem:[%s8176_s3 + $0xe8] ss:$16 sps:$4 sm:$0xff]   ;;  %s5269_s16 = sld [smem:[#allocation6 + $0x1]] }
  0x1b   :  { %238 = vmatprep.subr.bf16.mxu0 %v6703_v9  ;;  %279 = vmatprep.subr.bf16.mxu1 %v6744_v16 }
  0x1e   :  { %239 = vmatpush1.bf16.msra.mxu0 %v6721_v12  ;;  %280 = vmatpush1.bf16.msra.mxu1 %v6762_v19 }
  0x1f   :  { %240 = vmatprep.subr.bf16.mxu0 %v6726_v13  ;;  %281 = vmatprep.subr.bf16.mxu1 %v6768_v20 }
  0x20   :  { %p5270_p5 = scmp.ne.s32.totalorder %s5269_s16, 0 }
  0x21   :  { %vm6590_vm2 = vmmov (!%p5270_p5), 0  }
  0x22   :  { %241 = vmatpush1.bf16.msra.mxu0 %v6750_v17  ;;  %282 = vmatpush1.bf16.msra.mxu1 %v6786_v23 }
  0x23   :  { %242 = vmatprep.subr.bf16.mxu0 %v6756_v18  ;;  %283 = vmatprep.subr.bf16.mxu1 %v6800_v26 }
  0x26   :  { %243 = vmatpush1.bf16.msra.mxu0 %v6773_v21  ;;  %284 = vmatpush1.bf16.msra.mxu1 %v6810_v28 }
  0x27   :  { %244 = vmatprep.subr.bf16.mxu0 %v6779_v22  ;;  %285 = vmatprep.subr.bf16.mxu1 %v6816_v29 }
  0x2a   :  { %245 = vmatpush1.bf16.msra.mxu0 %v6791_v24  ;;  %286 = vmatpush1.bf16.msra.mxu1 %v6829_v31 }
  0x2b   :  { %246 = vmatprep.subr.bf16.mxu0 %v6805_v27  ;;  %287 = vmatprep.subr.bf16.mxu1 %v6835_v32 }
  0x2e   :  { %247 = vmatpush1.bf16.msra.mxu0 %v6823_v30  ;;  %288 = vmatpush1.bf16.msra.mxu1 %v6843_v34 }
  0x2f   :  { %538 = vmatprep.subr.bf16.mxu0 %v6655_v0  ;;  %579 = vmatprep.subr.bf16.mxu1 %v6685_v6 }
  0x31   :  { %265 = vmatmul.mubr.bf16.vlgmr.msra.gmra.mrb[0].mxu0 %v39_v33  ;;  %306 = vmatmul.mubr.bf16.vlgmr.msra.gmra.mrb[0].mxu1 %v39_v33 }
  0x32   :  { %539 = vmatpush1.bf16.msra.mxu0 %v6660_v1  ;;  %570 = vmatprep.mubr.bf16.mxu0 %v6586_v2 }
  0x33   :  { %540 = vmatprep.subr.bf16.mxu0 %v6668_v3  ;;  %580 = vmatpush1.bf16.msra.mxu1 %v6690_v7 }
  0x34   :  { %581 = vmatprep.subr.bf16.mxu1 %v6709_v10  ;;  %611 = vmatprep.mubr.bf16.mxu1 %v6586_v2 }
  0x36   :  { %541 = vmatpush1.bf16.msra.mxu0 %v6674_v4 }
  0x37   :  { %542 = vmatprep.subr.bf16.mxu0 %v6680_v5  ;;  %582 = vmatpush1.bf16.msra.mxu1 %v6714_v11 }
  0x38   :  { %583 = vmatprep.subr.bf16.mxu1 %v6731_v14 }
  0x3a   :  { %543 = vmatpush1.bf16.msra.mxu0 %v6696_v8 }
  0x3b   :  { %544 = vmatprep.subr.bf16.mxu0 %v6703_v9  ;;  %584 = vmatpush1.bf16.msra.mxu1 %v6738_v15 }
  0x3c   :  { %585 = vmatprep.subr.bf16.mxu1 %v6744_v16 }
  0x3e   :  { %545 = vmatpush1.bf16.msra.mxu0 %v6721_v12 }
  0x3f   :  { %546 = vmatprep.subr.bf16.mxu0 %v6726_v13  ;;  %586 = vmatpush1.bf16.msra.mxu1 %v6762_v19 }
  0x40   :  { %587 = vmatprep.subr.bf16.mxu1 %v6768_v20 }
  0x42   :  { %547 = vmatpush1.bf16.msra.mxu0 %v6750_v17 }
  0x43   :  { %548 = vmatprep.subr.bf16.mxu0 %v6756_v18  ;;  %588 = vmatpush1.bf16.msra.mxu1 %v6786_v23 }
  0x44   :  { %589 = vmatprep.subr.bf16.mxu1 %v6800_v26 }
  0x46   :  { %549 = vmatpush1.bf16.msra.mxu0 %v6773_v21 }
  0x47   :  { %550 = vmatprep.subr.bf16.mxu0 %v6779_v22  ;;  %590 = vmatpush1.bf16.msra.mxu1 %v6810_v28 }
  0x48   :  { %591 = vmatprep.subr.bf16.mxu1 %v6816_v29 }
  0x4a   :  { %551 = vmatpush1.bf16.msra.mxu0 %v6791_v24 }
  0x4b   :  { %552 = vmatprep.subr.bf16.mxu0 %v6805_v27  ;;  %592 = vmatpush1.bf16.msra.mxu1 %v6829_v31 }
  0x4c   :  { %593 = vmatprep.subr.bf16.mxu1 %v6835_v32 }
  0x4e   :  { %553 = vmatpush1.bf16.msra.mxu0 %v6823_v30 }
  0x4f   :  { %844 = vmatprep.subr.bf16.mxu0 %v6655_v0  ;;  %594 = vmatpush1.bf16.msra.mxu1 %v6843_v34 }
  0x50   :  { %885 = vmatprep.subr.bf16.mxu1 %v6685_v6 }
 0x104   :  { %v266_v35 = vpop.f32.mrb[0].mxu0  ;;  %v307_v41 = vpop.f32.mrb[0].mxu1 }
 0x105   :  { %v5042_v36 = vmul.f32 -1.442695, %v266_v35  ;;  %v268_v37 = vpop.f32.mrb[1].mxu0  ;;  %v309_v42 = vpop.f32.mrb[1].mxu1 }
 0x106   :  { %v5043_v38 = vmul.f32 -1.442695, %v268_v37  ;;  %v270_v39 = vpop.f32.mrb[2].mxu0  ;;  %v311_v43 = vpop.f32.mrb[2].mxu1  ;;  %v5044_v45 = vmul.f32 -1.442695, %v309_v42 }
 0x107   :  { %6059 = vpow2.f32 %v5042_v36  ;;  %v271_v40 = vpop.f32.mrb[3].mxu0  ;;  %v312_v44 = vpop.f32.mrb[3].mxu1 }
 0x108   :  { %6061 = vpow2.f32 %v5043_v38 }
 0x109   :  { %6063 = vpow2.f32 %v5044_v45 }
 0x10a   :  { %6065 = vtanh.f32 %v307_v41 }
 0x111   :  { %v6060_v46 = vpop.eup %6059 }
 0x112   :  { %v6062_v47 = vpop.eup %6061  ;;  %v317_v48 = vadd.f32 1.0, %v6060_v46 }
 0x113   :  { %v323_v49 = vadd.f32 1.0, %v6062_v47  ;;  %v6064_v50 = vpop.eup %6063 }
 0x114   :  { %6067 = vrcp.f32 %v317_v48  ;;  %v6066_v51 = vpop.eup %6065  ;;  %v330_v53 = vadd.f32 1.0, %v6064_v50 }
 0x115   :  { %6069 = vrcp.f32 %v323_v49 }
 0x116   :  { %6071 = vrcp.f32 %v330_v53 }
 0x11e   :  { %v6068_v52 = vpop.eup %6067 }
 0x11f   :  { %v6070_v54 = vpop.eup %6069  ;;  %v335_v55 = vmul.f32 %v6068_v52, %v6066_v51 }
 0x120   :  { %v334_v56 = vmul.f32 0.0, %v6070_v54  ;;  %v6072_v58 = vpop.eup %6071 }
 0x122   :  { %v6885_v57 = vadd.f32 %v335_v55, %v334_v56  ;;  %v5081_v56 = vld [vmem:[%s8174_s1 + $0x10] sm:$0xff] }
 0x124   :  { %6073 = vtanh.f32 %v6885_v57 }
 0x12e   :  { %v6074_v59 = vpop.eup %6073 }
 0x12f   :  { %v338_v61 = vmul.f32 %v6074_v59, %v6072_v58 }
 0x131   :  { %v344_v62 = vadd.f32 %v5045_v60, %v338_v61  ;;  %v6986_v61 = vld [vmem:[%s8176_s3] ss:$16 sps:$4 sm:$0xff]  }
 0x133   :  { %v345_v63 = vpack.c.bf16 %v344_v62, %v344_v62  ;;  %v6991_v62 = vld [vmem:[%s8176_s3 + $0x8] ss:$16 sps:$4 sm:$0xff]  }
 0x135   :  { %571 = vmatmul.mubr.bf16.vlgmr.msra.gmra.mrb[4].mxu0 %v345_v63  ;;  %612 = vmatmul.mubr.bf16.vlgmr.msra.gmra.mrb[4].mxu1 %v345_v63  ;;  %v7000_v63 = vld [vmem:[%s8176_s3 + $0x24] ss:$16 sps:$4 sm:$0xff]  }
 0x136   :  { %845 = vmatpush1.bf16.msra.mxu0 %v6660_v1  ;;  %886 = vmatpush1.bf16.msra.mxu1 %v6690_v7 }
 0x137   :  { %846 = vmatprep.subr.bf16.mxu0 %v6668_v3  ;;  %887 = vmatprep.subr.bf16.mxu1 %v6709_v10 }
 0x138   :  { %876 = vmatprep.mubr.bf16.mxu0 %v6586_v2  ;;  %917 = vmatprep.mubr.bf16.mxu1 %v6586_v2 }
 0x13a   :  { %847 = vmatpush1.bf16.msra.mxu0 %v6674_v4  ;;  %888 = vmatpush1.bf16.msra.mxu1 %v6714_v11 }
 0x13b   :  { %848 = vmatprep.subr.bf16.mxu0 %v6680_v5  ;;  %889 = vmatprep.subr.bf16.mxu1 %v6731_v14 }
 0x13e   :  { %849 = vmatpush1.bf16.msra.mxu0 %v6696_v8  ;;  %890 = vmatpush1.bf16.msra.mxu1 %v6738_v15 }
 0x13f   :  { %850 = vmatprep.subr.bf16.mxu0 %v6703_v9  ;;  %891 = vmatprep.subr.bf16.mxu1 %v6744_v16 }
 0x142   :  { %851 = vmatpush1.bf16.msra.mxu0 %v6721_v12  ;;  %892 = vmatpush1.bf16.msra.mxu1 %v6762_v19 }
 0x143   :  { %852 = vmatprep.subr.bf16.mxu0 %v6726_v13  ;;  %893 = vmatprep.subr.bf16.mxu1 %v6768_v20 }
 0x146   :  { %853 = vmatpush1.bf16.msra.mxu0 %v6750_v17  ;;  %894 = vmatpush1.bf16.msra.mxu1 %v6786_v23 }
 0x147   :  { %854 = vmatprep.subr.bf16.mxu0 %v6756_v18  ;;  %895 = vmatprep.subr.bf16.mxu1 %v6800_v26 }
 0x14a   :  { %855 = vmatpush1.bf16.msra.mxu0 %v6773_v21  ;;  %896 = vmatpush1.bf16.msra.mxu1 %v6810_v28 }
 0x14b   :  { %856 = vmatprep.subr.bf16.mxu0 %v6779_v22  ;;  %897 = vmatprep.subr.bf16.mxu1 %v6816_v29 }
 0x14e   :  { %857 = vmatpush1.bf16.msra.mxu0 %v6791_v24  ;;  %898 = vmatpush1.bf16.msra.mxu1 %v6829_v31 }
 0x14f   :  { %858 = vmatprep.subr.bf16.mxu0 %v6805_v27  ;;  %899 = vmatprep.subr.bf16.mxu1 %v6835_v32 }
 0x152   :  { %859 = vmatpush1.bf16.msra.mxu0 %v6823_v30  ;;  %900 = vmatpush1.bf16.msra.mxu1 %v6843_v34 }
 0x153   :  { %1150 = vmatprep.subr.bf16.mxu0 %v6655_v0  ;;  %1191 = vmatprep.subr.bf16.mxu1 %v6685_v6 }
 0x208   :  { %v572_v25 = vpop.f32.mrb[4].mxu0  ;;  %v613_v33 = vpop.f32.mrb[4].mxu1 }
 0x209   :  { %v5078_v35 = vmul.f32 -1.442695, %v572_v25  ;;  %v574_v36 = vpop.f32.mrb[5].mxu0  ;;  %v615_v37 = vpop.f32.mrb[5].mxu1  ;;  %v7005_v25 = vld [vmem:[%s8176_s3 + $0x2c] ss:$16 sps:$4 sm:$0xff]  }
 0x20a   :  { %v5079_v38 = vmul.f32 -1.442695, %v574_v36  ;;  %v576_v39 = vpop.f32.mrb[6].mxu0  ;;  %v617_v40 = vpop.f32.mrb[6].mxu1  ;;  %v5080_v43 = vmul.f32 -1.442695, %v615_v37 }
 0x20b   :  { %6075 = vpow2.f32 %v5078_v35  ;;  %v577_v41 = vpop.f32.mrb[7].mxu0  ;;  %v618_v42 = vpop.f32.mrb[7].mxu1  ;;  %v7015_v35 = vld [vmem:[%s8176_s3 + $0x28] ss:$16 sps:$4 sm:$0xff]   ;;  %v7024_v36 = vld [vmem:[%s8176_s3 + $0x44] ss:$16 sps:$4 sm:$0xff]  }
 0x20c   :  { %6077 = vpow2.f32 %v5079_v38  ;;  %v7029_v37 = vld [vmem:[%s8176_s3 + $0x4c] ss:$16 sps:$4 sm:$0xff]   ;;  %v7034_v38 = vld [vmem:[%s8176_s3 + $0x40] ss:$16 sps:$4 sm:$0xff]   ;;  %v7039_v39 = vld [vmem:[%s8176_s3 + $0x48] ss:$16 sps:$4 sm:$0xff]  }
 0x20d   :  { %6079 = vpow2.f32 %v5080_v43  ;;  %v7048_v40 = vld [vmem:[%s8176_s3 + $0x64] ss:$16 sps:$4 sm:$0xff]   ;;  %v7053_v41 = vld [vmem:[%s8176_s3 + $0x6c] ss:$16 sps:$4 sm:$0xff]   ;;  %v7058_v42 = vld [vmem:[%s8176_s3 + $0x60] ss:$16 sps:$4 sm:$0xff]  }
 0x20e   :  { %6081 = vtanh.f32 %v613_v33  ;;  %v7010_v33 = vld [vmem:[%s8176_s3 + $0x20] ss:$16 sps:$4 sm:$0xff]   ;;  %v7063_v43 = vld [vmem:[%s8176_s3 + $0x68] ss:$16 sps:$4 sm:$0xff]  }
 0x215   :  { %v6076_v44 = vpop.eup %6075 }
 0x216   :  { %v6078_v45 = vpop.eup %6077  ;;  %v623_v46 = vadd.f32 1.0, %v6076_v44  ;;  %v7072_v44 = vld [vmem:[%s8176_s3 + $0x84] ss:$16 sps:$4 sm:$0xff]  }
 0x217   :  { %v629_v0 = vadd.f32 1.0, %v6078_v45  ;;  %v6080_v6 = vpop.eup %6079  ;;  %v7077_v45 = vld [vmem:[%s8176_s3 + $0x8c] ss:$16 sps:$4 sm:$0xff]  }
 0x218   :  { %6083 = vrcp.f32 %v623_v46  ;;  %v6082_v47 = vpop.eup %6081  ;;  %v636_v51 = vadd.f32 1.0, %v6080_v6  ;;  %v7082_v46 = vld [vmem:[%s8176_s3 + $0x80] ss:$16 sps:$4 sm:$0xff]   ;;  %v7096_v6 = vld [vmem:[%s8176_s3 + $0xa4] ss:$16 sps:$4 sm:$0xff]  }
 0x219   :  { %6085 = vrcp.f32 %v629_v0  ;;  %v7087_v0 = vld [vmem:[%s8176_s3 + $0x88] ss:$16 sps:$4 sm:$0xff]  }
 0x21a   :  { %6087 = vrcp.f32 %v636_v51  ;;  %v7125_v51 = vld [vmem:[%s8176_s3 + $0xcc] ss:$16 sps:$4 sm:$0xff]  }
 0x222   :  { %v6084_v48 = vpop.eup %6083 }
 0x223   :  { %v6086_v49 = vpop.eup %6085  ;;  %v641_v50 = vmul.f32 %v6084_v48, %v6082_v47  ;;  %v7101_v47 = vld [vmem:[%s8176_s3 + $0xac] ss:$16 sps:$4 sm:$0xff]   ;;  %v7106_v48 = vld [vmem:[%s8176_s3 + $0xa0] ss:$16 sps:$4 sm:$0xff]  }
 0x224   :  { %v640_v52 = vmul.f32 %v6086_v49, %v6885_v57  ;;  %v6088_v54 = vpop.eup %6087  ;;  %v6981_v57 = vld [vmem:[%s8176_s3 + $0xc] ss:$16 sps:$4 sm:$0xff]   ;;  %v7111_v49 = vld [vmem:[%s8176_s3 + $0xa8] ss:$16 sps:$4 sm:$0xff]  }
 0x226   :  { %v6926_v53 = vadd.f32 %v641_v50, %v640_v52  ;;  %v7120_v50 = vld [vmem:[%s8176_s3 + $0xc4] ss:$16 sps:$4 sm:$0xff]   ;;  %v7130_v52 = vld [vmem:[%s8176_s3 + $0xc0] ss:$16 sps:$4 sm:$0xff]  }
 0x228   :  { %6089 = vtanh.f32 %v6926_v53 }
 0x232   :  { %v6090_v55 = vpop.eup %6089 }
 0x233   :  { %v644_v58 = vmul.f32 %v6090_v55, %v6088_v54  ;;  %v7144_v54 = vld [vmem:[%s8176_s3 + $0xe0] ss:$16 sps:$4 sm:$0xff]   ;;  %v7149_v55 = vld [vmem:[%s8176_s3 + $0xe4] ss:$16 sps:$4 sm:$0xff]  }
 0x235   :  { %v650_v59 = vadd.f32 %v5081_v56, %v644_v58  ;;  %v7154_v56 = vld [vmem:[%s8176_s3 + $0xe8] ss:$16 sps:$4 sm:$0xff]   ;;  %v7159_v58 = vld [vmem:[%s8176_s3 + $0xec] ss:$16 sps:$4 sm:$0xff]  }
 0x237   :  { %v651_v60 = vpack.c.bf16 %v650_v59, %v650_v59 }
 0x239   :  { %877 = vmatmul.mubr.bf16.vlgmr.msra.gmra.mrb[8].mxu0 %v651_v60  ;;  %918 = vmatmul.mubr.bf16.vlgmr.msra.gmra.mrb[8].mxu1 %v651_v60 }
 0x23a   :  { %1151 = vmatpush1.bf16.msra.mxu0 %v6660_v1  ;;  %1192 = vmatpush1.bf16.msra.mxu1 %v6690_v7 }
 0x23b   :  { %1152 = vmatprep.subr.bf16.mxu0 %v6668_v3  ;;  %1193 = vmatprep.subr.bf16.mxu1 %v6709_v10 }
 0x23c   :  { %1182 = vmatprep.mubr.bf16.mxu0 %v6586_v2  ;;  %1223 = vmatprep.mubr.bf16.mxu1 %v6586_v2 }
 0x23e   :  { %1153 = vmatpush1.bf16.msra.mxu0 %v6674_v4  ;;  %1194 = vmatpush1.bf16.msra.mxu1 %v6714_v11 }
 0x23f   :  { %1154 = vmatprep.subr.bf16.mxu0 %v6680_v5  ;;  %1195 = vmatprep.subr.bf16.mxu1 %v6731_v14 }
 0x242   :  { %1155 = vmatpush1.bf16.msra.mxu0 %v6696_v8  ;;  %1196 = vmatpush1.bf16.msra.mxu1 %v6738_v15 }
 0x243   :  { %1156 = vmatprep.subr.bf16.mxu0 %v6703_v9  ;;  %1197 = vmatprep.subr.bf16.mxu1 %v6744_v16 }
 0x246   :  { %1157 = vmatpush1.bf16.msra.mxu0 %v6721_v12  ;;  %1198 = vmatpush1.bf16.msra.mxu1 %v6762_v19 }
 0x247   :  { %1158 = vmatprep.subr.bf16.mxu0 %v6726_v13  ;;  %1199 = vmatprep.subr.bf16.mxu1 %v6768_v20 }
 0x24a   :  { %1159 = vmatpush1.bf16.msra.mxu0 %v6750_v17  ;;  %1200 = vmatpush1.bf16.msra.mxu1 %v6786_v23 }
 0x24b   :  { %1160 = vmatprep.subr.bf16.mxu0 %v6756_v18  ;;  %1201 = vmatprep.subr.bf16.mxu1 %v6800_v26 }
 0x24e   :  { %1161 = vmatpush1.bf16.msra.mxu0 %v6773_v21  ;;  %1202 = vmatpush1.bf16.msra.mxu1 %v6810_v28 }
 0x24f   :  { %1162 = vmatprep.subr.bf16.mxu0 %v6779_v22  ;;  %1203 = vmatprep.subr.bf16.mxu1 %v6816_v29  ;;  %v5117_v29 = vld [vmem:[%s8174_s1 + $0x18] sm:$0xff] }
 0x252   :  { %1163 = vmatpush1.bf16.msra.mxu0 %v6791_v24  ;;  %1204 = vmatpush1.bf16.msra.mxu1 %v6829_v31 }
 0x253   :  { %1164 = vmatprep.subr.bf16.mxu0 %v6805_v27  ;;  %1205 = vmatprep.subr.bf16.mxu1 %v6835_v32 }
 0x256   :  { %1165 = vmatpush1.bf16.msra.mxu0 %v6823_v30  ;;  %1206 = vmatpush1.bf16.msra.mxu1 %v6843_v34  ;;  %v6976_v34 = vld [vmem:[%s8176_s3 + $0x4] ss:$16 sps:$4 sm:$0xff]  }
 0x257   :  { %1456 = vmatprep.subr.bf16.mxu0 %v6976_v34  ;;  %1497 = vmatprep.subr.bf16.mxu1 %v6981_v57 }
 0x30c   :  { %v878_v1 = vpop.f32.mrb[8].mxu0  ;;  %v919_v3 = vpop.f32.mrb[8].mxu1 }
 0x30d   :  { %v5114_v4 = vmul.f32 -1.442695, %v878_v1  ;;  %v880_v5 = vpop.f32.mrb[9].mxu0  ;;  %v921_v7 = vpop.f32.mrb[9].mxu1 }
 0x30e   :  { %v5115_v8 = vmul.f32 -1.442695, %v880_v5  ;;  %v882_v9 = vpop.f32.mrb[10].mxu0  ;;  %v923_v10 = vpop.f32.mrb[10].mxu1  ;;  %v5116_v13 = vmul.f32 -1.442695, %v921_v7 }
 0x30f   :  { %6091 = vpow2.f32 %v5114_v4  ;;  %v883_v11 = vpop.f32.mrb[11].mxu0  ;;  %v924_v12 = vpop.f32.mrb[11].mxu1 }
 0x310   :  { %6093 = vpow2.f32 %v5115_v8 }
 0x311   :  { %6095 = vpow2.f32 %v5116_v13 }
 0x312   :  { %6097 = vtanh.f32 %v919_v3 }
 0x319   :  { %v6092_v14 = vpop.eup %6091 }
 0x31a   :  { %v6094_v15 = vpop.eup %6093  ;;  %v929_v16 = vadd.f32 1.0, %v6092_v14 }
 0x31b   :  { %v935_v17 = vadd.f32 1.0, %v6094_v15  ;;  %v6096_v18 = vpop.eup %6095 }
 0x31c   :  { %6099 = vrcp.f32 %v929_v16  ;;  %v6098_v19 = vpop.eup %6097  ;;  %v942_v23 = vadd.f32 1.0, %v6096_v18 }
 0x31d   :  { %6101 = vrcp.f32 %v935_v17 }
 0x31e   :  { %6103 = vrcp.f32 %v942_v23 }
 0x326   :  { %v6100_v20 = vpop.eup %6099 }
 0x327   :  { %v6102_v21 = vpop.eup %6101  ;;  %v947_v22 = vmul.f32 %v6100_v20, %v6098_v19 }
 0x328   :  { %v946_v24 = vmul.f32 %v6102_v21, %v6926_v53  ;;  %v6104_v27 = vpop.eup %6103  ;;  %v7135_v53 = vld [vmem:[%s8176_s3 + $0xc8] ss:$16 sps:$4 sm:$0xff]  }
 0x32a   :  { %v6965_v26 = vadd.f32 %v947_v22, %v946_v24 }
 0x32c   :  { %6105 = vtanh.f32 %v6965_v26 }
 0x336   :  { %v6106_v28 = vpop.eup %6105 }
 0x337   :  { %v950_v30 = vmul.f32 %v6106_v28, %v6104_v27  ;;  %v5153_v28 = vld [vmem:[%s8174_s1 + $0x20] sm:$0xff] }
 0x339   :  { %v956_v31 = vadd.f32 %v5117_v29, %v950_v30 }
 0x33b   :  { %v957_v32 = vpack.c.bf16 %v956_v31, %v956_v31 }
 0x33d   :  { %1183 = vmatmul.mubr.bf16.vlgmr.msra.gmra.mrb[12].mxu0 %v957_v32  ;;  %1224 = vmatmul.mubr.bf16.vlgmr.msra.gmra.mrb[12].mxu1 %v957_v32 }
 0x33e   :  { %1488 = vmatprep.mubr.bf16.mxu0 %v6586_v2  ;;  %1529 = vmatprep.mubr.bf16.mxu1 %v6586_v2 }
 0x33f   :  { %1457 = vmatpush1.bf16.msra.mxu0 %v6986_v61  ;;  %1498 = vmatpush1.bf16.msra.mxu1 %v6991_v62 }
 0x340   :  { %1458 = vmatprep.subr.bf16.mxu0 %v7000_v63  ;;  %1499 = vmatprep.subr.bf16.mxu1 %v7005_v25 }
 0x343   :  { %1459 = vmatpush1.bf16.msra.mxu0 %v7010_v33  ;;  %1500 = vmatpush1.bf16.msra.mxu1 %v7015_v35 }
 0x344   :  { %1460 = vmatprep.subr.bf16.mxu0 %v7024_v36  ;;  %1501 = vmatprep.subr.bf16.mxu1 %v7029_v37 }
 0x347   :  { %1461 = vmatpush1.bf16.msra.mxu0 %v7034_v38  ;;  %1502 = vmatpush1.bf16.msra.mxu1 %v7039_v39 }
 0x348   :  { %1462 = vmatprep.subr.bf16.mxu0 %v7048_v40  ;;  %1503 = vmatprep.subr.bf16.mxu1 %v7053_v41 }
 0x34b   :  { %1463 = vmatpush1.bf16.msra.mxu0 %v7058_v42  ;;  %1504 = vmatpush1.bf16.msra.mxu1 %v7063_v43 }
 0x34c   :  { %1464 = vmatprep.subr.bf16.mxu0 %v7072_v44  ;;  %1505 = vmatprep.subr.bf16.mxu1 %v7077_v45 }
 0x34f   :  { %1465 = vmatpush1.bf16.msra.mxu0 %v7082_v46  ;;  %1506 = vmatpush1.bf16.msra.mxu1 %v7087_v0 }
 0x350   :  { %1466 = vmatprep.subr.bf16.mxu0 %v7096_v6  ;;  %1507 = vmatprep.subr.bf16.mxu1 %v7101_v47 }
 0x353   :  { %1467 = vmatpush1.bf16.msra.mxu0 %v7106_v48  ;;  %1508 = vmatpush1.bf16.msra.mxu1 %v7111_v49 }
 0x354   :  { %1468 = vmatprep.subr.bf16.mxu0 %v7120_v50  ;;  %1509 = vmatprep.subr.bf16.mxu1 %v7125_v51 }
 0x357   :  { %1469 = vmatpush1.bf16.msra.mxu0 %v7130_v52  ;;  %1510 = vmatpush1.bf16.msra.mxu1 %v7135_v53 }
 0x358   :  { %1470 = vmatprep.subr.bf16.mxu0 %v7149_v55  ;;  %1511 = vmatprep.subr.bf16.mxu1 %v7159_v58 }
 0x35b   :  { %1471 = vmatpush1.bf16.msra.mxu0 %v7144_v54  ;;  %1512 = vmatpush1.bf16.msra.mxu1 %v7154_v56 }
 0x35c   :  { %1762 = vmatprep.subr.bf16.mxu0 %v6976_v34  ;;  %1803 = vmatprep.subr.bf16.mxu1 %v6981_v57 }
 0x410   :  { %v1184_v59 = vpop.f32.mrb[12].mxu0  ;;  %v1225_v60 = vpop.f32.mrb[12].mxu1 }
 0x411   :  { %v5150_v1 = vmul.f32 -1.442695, %v1184_v59  ;;  %v1186_v3 = vpop.f32.mrb[13].mxu0  ;;  %v1227_v4 = vpop.f32.mrb[13].mxu1  ;;  %v6014_v59 = vld [vmem:[%s8177_s4 + $0x2c] ss:$16 sps:$4 sm:$0xff]  }
 0x412   :  { %v5151_v5 = vmul.f32 -1.442695, %v1186_v3  ;;  %v1188_v7 = vpop.f32.mrb[14].mxu0  ;;  %v1229_v8 = vpop.f32.mrb[14].mxu1  ;;  %v5152_v11 = vmul.f32 -1.442695, %v1227_v4 }
 0x413   :  { %6107 = vpow2.f32 %v5150_v1  ;;  %v1189_v9 = vpop.f32.mrb[15].mxu0  ;;  %v1230_v10 = vpop.f32.mrb[15].mxu1  ;;  %v6012_v1 = vld [vmem:[%s8177_s4 + $0x28] ss:$16 sps:$4 sm:$0xff]   ;;  %v6017_v3 = vld [vmem:[%s8177_s4 + $0x44] ss:$16 sps:$4 sm:$0xff]  }
 0x414   :  { %6109 = vpow2.f32 %v5151_v5  ;;  %v6020_v4 = vld [vmem:[%s8177_s4 + $0x4c] ss:$16 sps:$4 sm:$0xff]   ;;  %v6015_v5 = vld [vmem:[%s8177_s4 + $0x40] ss:$16 sps:$4 sm:$0xff]   ;;  %v6018_v7 = vld [vmem:[%s8177_s4 + $0x48] ss:$16 sps:$4 sm:$0xff]  }
 0x415   :  { %6111 = vpow2.f32 %v5152_v11  ;;  %v6023_v8 = vld [vmem:[%s8177_s4 + $0x64] ss:$16 sps:$4 sm:$0xff]   ;;  %v6026_v9 = vld [vmem:[%s8177_s4 + $0x6c] ss:$16 sps:$4 sm:$0xff]   ;;  %v6021_v10 = vld [vmem:[%s8177_s4 + $0x60] ss:$16 sps:$4 sm:$0xff]  }
 0x416   :  { %6113 = vtanh.f32 %v1225_v60  ;;  %v6009_v60 = vld [vmem:[%s8177_s4 + $0x20] ss:$16 sps:$4 sm:$0xff]   ;;  %v6024_v11 = vld [vmem:[%s8177_s4 + $0x68] ss:$16 sps:$4 sm:$0xff]  }
 0x41d   :  { %v6108_v12 = vpop.eup %6107 }
 0x41e   :  { %v6110_v13 = vpop.eup %6109  ;;  %v1235_v14 = vadd.f32 1.0, %v6108_v12  ;;  %v6029_v12 = vld [vmem:[%s8177_s4 + $0x84] ss:$16 sps:$4 sm:$0xff]  }
 0x41f   :  { %v1241_v15 = vadd.f32 1.0, %v6110_v13  ;;  %v6112_v16 = vpop.eup %6111  ;;  %v6032_v13 = vld [vmem:[%s8177_s4 + $0x8c] ss:$16 sps:$4 sm:$0xff]  }
 0x420   :  { %6115 = vrcp.f32 %v1235_v14  ;;  %v6114_v17 = vpop.eup %6113  ;;  %v1248_v21 = vadd.f32 1.0, %v6112_v16  ;;  %v6027_v14 = vld [vmem:[%s8177_s4 + $0x80] ss:$16 sps:$4 sm:$0xff]   ;;  %v6035_v16 = vld [vmem:[%s8177_s4 + $0xa4] ss:$16 sps:$4 sm:$0xff]  }
 0x421   :  { %6117 = vrcp.f32 %v1241_v15  ;;  %v6030_v15 = vld [vmem:[%s8177_s4 + $0x88] ss:$16 sps:$4 sm:$0xff]  }
 0x422   :  { %6119 = vrcp.f32 %v1248_v21  ;;  %v6044_v21 = vld [vmem:[%s8177_s4 + $0xcc] ss:$16 sps:$4 sm:$0xff]  }
 0x42a   :  { %v6116_v18 = vpop.eup %6115 }
 0x42b   :  { %v6118_v19 = vpop.eup %6117  ;;  %v1253_v20 = vmul.f32 %v6116_v18, %v6114_v17  ;;  %v6038_v17 = vld [vmem:[%s8177_s4 + $0xac] ss:$16 sps:$4 sm:$0xff]   ;;  %v6033_v18 = vld [vmem:[%s8177_s4 + $0xa0] ss:$16 sps:$4 sm:$0xff]  }
 0x42c   :  { %v1252_v22 = vmul.f32 %v6118_v19, %v6965_v26  ;;  %v6120_v24 = vpop.eup %6119  ;;  %v6036_v19 = vld [vmem:[%s8177_s4 + $0xa8] ss:$16 sps:$4 sm:$0xff]  }
 0x42e   :  { %v7168_v23 = vadd.f32 %v1253_v20, %v1252_v22  ;;  %v6041_v20 = vld [vmem:[%s8177_s4 + $0xc4] ss:$16 sps:$4 sm:$0xff]   ;;  %v6039_v22 = vld [vmem:[%s8177_s4 + $0xc0] ss:$16 sps:$4 sm:$0xff]  }
 0x430   :  { %6121 = vtanh.f32 %v7168_v23 }
 0x43a   :  { %v6122_v27 = vpop.eup %6121 }
 0x43b   :  { %v1256_v29 = vmul.f32 %v6122_v27, %v6120_v24  ;;  %v6045_v24 = vld [vmem:[%s8177_s4 + $0xe0] ss:$16 sps:$4 sm:$0xff]   ;;  %v6047_v27 = vld [vmem:[%s8177_s4 + $0xe4] ss:$16 sps:$4 sm:$0xff]  }
 0x43d   :  { %v1262_v30 = vadd.f32 %v5153_v28, %v1256_v29  ;;  %v6048_v28 = vld [vmem:[%s8177_s4 + $0xe8] ss:$16 sps:$4 sm:$0xff]   ;;  %v6050_v29 = vld [vmem:[%s8177_s4 + $0xec] ss:$16 sps:$4 sm:$0xff]  }
 0x43f   :  { %v1263_v31 = vpack.c.bf16 %v1262_v30, %v1262_v30  ;;  %v1878_v30 = vld [vmem:[%s8175_s2] sm:$0xff] }
 0x440   :  { %1879 = vst [vmem:[#allocation4] sm:$0xff] %v1878_v30 }
 0x441   :  { %1489 = vmatmul.mubr.bf16.vlgmr.msra.gmra.mrb[16].mxu0 %v1263_v31  ;;  %1530 = vmatmul.mubr.bf16.vlgmr.msra.gmra.mrb[16].mxu1 %v1263_v31  ;;  %v6587_v31 = vmov 0.0  }
 0x442   :  { %1763 = vmatpush1.bf16.msra.mxu0 %v6986_v61  ;;  %1804 = vmatpush1.bf16.msra.mxu1 %v6991_v62 }
 0x443   :  { %1764 = vmatprep.subr.bf16.mxu0 %v7000_v63  ;;  %1805 = vmatprep.subr.bf16.mxu1 %v7005_v25 }
 0x444   :  { %1794 = vmatprep.mubr.bf16.mxu0 %v6586_v2  ;;  %1835 = vmatprep.mubr.bf16.mxu1 %v6586_v2 }
 0x446   :  { %1765 = vmatpush1.bf16.msra.mxu0 %v7010_v33  ;;  %1806 = vmatpush1.bf16.msra.mxu1 %v7015_v35 }
 0x447   :  { %1766 = vmatprep.subr.bf16.mxu0 %v7024_v36  ;;  %1807 = vmatprep.subr.bf16.mxu1 %v7029_v37 }
 0x44a   :  { %1767 = vmatpush1.bf16.msra.mxu0 %v7034_v38  ;;  %1808 = vmatpush1.bf16.msra.mxu1 %v7039_v39 }
 0x44b   :  { %1768 = vmatprep.subr.bf16.mxu0 %v7048_v40  ;;  %1809 = vmatprep.subr.bf16.mxu1 %v7053_v41 }
 0x44e   :  { %1769 = vmatpush1.bf16.msra.mxu0 %v7058_v42  ;;  %1810 = vmatpush1.bf16.msra.mxu1 %v7063_v43 }
 0x44f   :  { %1770 = vmatprep.subr.bf16.mxu0 %v7072_v44  ;;  %1811 = vmatprep.subr.bf16.mxu1 %v7077_v45 }
 0x452   :  { %1771 = vmatpush1.bf16.msra.mxu0 %v7082_v46  ;;  %1812 = vmatpush1.bf16.msra.mxu1 %v7087_v0 }
 0x453   :  { %1772 = vmatprep.subr.bf16.mxu0 %v7096_v6  ;;  %1813 = vmatprep.subr.bf16.mxu1 %v7101_v47 }
 0x456   :  { %1773 = vmatpush1.bf16.msra.mxu0 %v7106_v48  ;;  %1814 = vmatpush1.bf16.msra.mxu1 %v7111_v49  ;;  %v5189_v49 = vld [vmem:[%s8174_s1 + $0x28] sm:$0xff] }
 0x457   :  { %1774 = vmatprep.subr.bf16.mxu0 %v7120_v50  ;;  %1815 = vmatprep.subr.bf16.mxu1 %v7125_v51 }
 0x45a   :  { %1775 = vmatpush1.bf16.msra.mxu0 %v7130_v52  ;;  %1816 = vmatpush1.bf16.msra.mxu1 %v7135_v53  ;;  %v6005_v53 = vld [vmem:[%s8177_s4 + $0x4] ss:$16 sps:$4 sm:$0xff]  }
 0x45b   :  { %1776 = vmatprep.subr.bf16.mxu0 %v7149_v55  ;;  %1817 = vmatprep.subr.bf16.mxu1 %v7159_v58  ;;  %v6003_v55 = vld [vmem:[%s8177_s4] ss:$16 sps:$4 sm:$0xff]   ;;  %v6011_v58 = vld [vmem:[%s8177_s4 + $0x24] ss:$16 sps:$4 sm:$0xff]  }
 0x45e   :  { %1777 = vmatpush1.bf16.msra.mxu0 %v7144_v54  ;;  %1818 = vmatpush1.bf16.msra.mxu1 %v7154_v56  ;;  %v6008_v54 = vld [vmem:[%s8177_s4 + $0xc] ss:$16 sps:$4 sm:$0xff]   ;;  %v6006_v56 = vld [vmem:[%s8177_s4 + $0x8] ss:$16 sps:$4 sm:$0xff]  }
 0x45f   :  { %2076 = vmatprep.subr.bf16.mxu0 %v6005_v53  ;;  %2117 = vmatprep.subr.bf16.mxu1 %v6008_v54  ;;  %v6051_v53 = vld [vmem:[%s8178_s5] sm:$0xff]   ;;  %v6053_v54 = vld [vmem:[%s8178_s5 + $0x10] sm:$0xff]  }
 0x514   :  { %v1490_v26 = vpop.f32.mrb[16].mxu0  ;;  %v1531_v32 = vpop.f32.mrb[16].mxu1 }
 0x515   :  { %v5186_v34 = vmul.f32 -1.442695, %v1490_v26  ;;  %v1492_v57 = vpop.f32.mrb[17].mxu0  ;;  %v1533_v61 = vpop.f32.mrb[17].mxu1 }
 0x516   :  { %v5187_v62 = vmul.f32 -1.442695, %v1492_v57  ;;  %v1494_v63 = vpop.f32.mrb[18].mxu0  ;;  %v1535_v25 = vpop.f32.mrb[18].mxu1  ;;  %v5188_v36 = vmul.f32 -1.442695, %v1533_v61 }
 0x517   :  { %6123 = vpow2.f32 %v5186_v34  ;;  %v1495_v33 = vpop.f32.mrb[19].mxu0  ;;  %v1536_v35 = vpop.f32.mrb[19].mxu1 }
 0x518   :  { %6125 = vpow2.f32 %v5187_v62 }
 0x519   :  { %6127 = vpow2.f32 %v5188_v36 }
 0x51a   :  { %6129 = vtanh.f32 %v1531_v32 }
 0x521   :  { %v6124_v37 = vpop.eup %6123 }
 0x522   :  { %v6126_v38 = vpop.eup %6125  ;;  %v1541_v39 = vadd.f32 1.0, %v6124_v37 }
 0x523   :  { %v1547_v40 = vadd.f32 1.0, %v6126_v38  ;;  %v6128_v41 = vpop.eup %6127 }
 0x524   :  { %6131 = vrcp.f32 %v1541_v39  ;;  %v6130_v42 = vpop.eup %6129  ;;  %v1554_v46 = vadd.f32 1.0, %v6128_v41 }
 0x525   :  { %6133 = vrcp.f32 %v1547_v40 }
 0x526   :  { %6135 = vrcp.f32 %v1554_v46 }
 0x52e   :  { %v6132_v43 = vpop.eup %6131 }
 0x52f   :  { %v6134_v44 = vpop.eup %6133  ;;  %v1559_v45 = vmul.f32 %v6132_v43, %v6130_v42 }
 0x530   :  { %v1558_v0 = vmul.f32 %v6134_v44, %v7168_v23  ;;  %v6136_v47 = vpop.eup %6135  ;;  %v6042_v23 = vld [vmem:[%s8177_s4 + $0xc8] ss:$16 sps:$4 sm:$0xff]  }
 0x532   :  { %v7207_v6 = vadd.f32 %v1559_v45, %v1558_v0 }
 0x534   :  { %6137 = vtanh.f32 %v7207_v6 }
 0x53e   :  { %v6138_v48 = vpop.eup %6137 }
 0x53f   :  { %v1562_v50 = vmul.f32 %v6138_v48, %v6136_v47 }
 0x541   :  { %v1568_v51 = vadd.f32 %v5189_v49, %v1562_v50 }
 0x543   :  { %v1569_v52 = vpack.c.bf16 %v1568_v51, %v1568_v51 }
 0x545   :  { %1795 = vmatmul.mubr.bf16.vlgmr.msra.gmra.mrb[20].mxu0 %v1569_v52  ;;  %1836 = vmatmul.mubr.bf16.vlgmr.msra.gmra.mrb[20].mxu1 %v1569_v52 }
 0x546   :  { %2108 = vmatprep.mubr.bf16.mxu0 %v6586_v2  ;;  %2149 = vmatprep.mubr.bf16.mxu1 %v6586_v2 }
 0x547   :  { %2077 = vmatpush1.bf16.msra.mxu0 %v6003_v55  ;;  %2118 = vmatpush1.bf16.msra.mxu1 %v6006_v56  ;;  %v6054_v55 = vld [vmem:[%s8178_s5 + $0x18] sm:$0xff]   ;;  %v6055_v56 = vld [vmem:[%s8178_s5 + $0x20] sm:$0xff]  }
 0x548   :  { %2078 = vmatprep.subr.bf16.mxu0 %v6011_v58  ;;  %2119 = vmatprep.subr.bf16.mxu1 %v6014_v59  ;;  %v6056_v58 = vld [vmem:[%s8178_s5 + $0x28] sm:$0xff]   ;;  %v6057_v59 = vld [vmem:[%s8178_s5 + $0x30] sm:$0xff]  }
 0x54b   :  { %2079 = vmatpush1.bf16.msra.mxu0 %v6009_v60  ;;  %2120 = vmatpush1.bf16.msra.mxu1 %v6012_v1  ;;  %v6058_v60 = vld [vmem:[%s8178_s5 + $0x38] sm:$0xff]  }
 0x54c   :  { %2080 = vmatprep.subr.bf16.mxu0 %v6017_v3  ;;  %2121 = vmatprep.subr.bf16.mxu1 %v6020_v4 }
 0x54f   :  { %2081 = vmatpush1.bf16.msra.mxu0 %v6015_v5  ;;  %2122 = vmatpush1.bf16.msra.mxu1 %v6018_v7 }
 0x550   :  { %2082 = vmatprep.subr.bf16.mxu0 %v6023_v8  ;;  %2123 = vmatprep.subr.bf16.mxu1 %v6026_v9 }
 0x553   :  { %2083 = vmatpush1.bf16.msra.mxu0 %v6021_v10  ;;  %2124 = vmatpush1.bf16.msra.mxu1 %v6024_v11 }
 0x554   :  { %2084 = vmatprep.subr.bf16.mxu0 %v6029_v12  ;;  %2125 = vmatprep.subr.bf16.mxu1 %v6032_v13 }
 0x557   :  { %2085 = vmatpush1.bf16.msra.mxu0 %v6027_v14  ;;  %2126 = vmatpush1.bf16.msra.mxu1 %v6030_v15 }
 0x558   :  { %2086 = vmatprep.subr.bf16.mxu0 %v6035_v16  ;;  %2127 = vmatprep.subr.bf16.mxu1 %v6038_v17 }
 0x55b   :  { %2087 = vmatpush1.bf16.msra.mxu0 %v6033_v18  ;;  %2128 = vmatpush1.bf16.msra.mxu1 %v6036_v19 }
 0x55c   :  { %2088 = vmatprep.subr.bf16.mxu0 %v6041_v20  ;;  %2129 = vmatprep.subr.bf16.mxu1 %v6044_v21 }
 0x55f   :  { %2089 = vmatpush1.bf16.msra.mxu0 %v6039_v22  ;;  %2130 = vmatpush1.bf16.msra.mxu1 %v6042_v23 }
 0x560   :  { %2090 = vmatprep.subr.bf16.mxu0 %v6047_v27  ;;  %2131 = vmatprep.subr.bf16.mxu1 %v6050_v29 }
 0x563   :  { %2091 = vmatpush1.bf16.msra.mxu0 %v6045_v24  ;;  %2132 = vmatpush1.bf16.msra.mxu1 %v6048_v28 }
 0x564   :  { %5668 = vmatprep.subr.bf16.mxu0 %v6587_v31 }
 0x618   :  { %v1796_v26 = vpop.f32.mrb[20].mxu0  ;;  %v1837_v32 = vpop.f32.mrb[20].mxu1 }
 0x619   :  { %v5222_v34 = vmul.f32 -1.442695, %v1796_v26  ;;  %v1798_v57 = vpop.f32.mrb[21].mxu0  ;;  %v1839_v61 = vpop.f32.mrb[21].mxu1 }
 0x61a   :  { %v5223_v62 = vmul.f32 -1.442695, %v1798_v57  ;;  %v1800_v63 = vpop.f32.mrb[22].mxu0  ;;  %v1841_v25 = vpop.f32.mrb[22].mxu1  ;;  %v5224_v36 = vmul.f32 -1.442695, %v1839_v61 }
 0x61b   :  { %6139 = vpow2.f32 %v5222_v34  ;;  %v1801_v33 = vpop.f32.mrb[23].mxu0  ;;  %v1842_v35 = vpop.f32.mrb[23].mxu1  ;;  %v6171_v25 = vld [vmem:[%s8180_s7] sm:$0xff] (!%p5270_p5)  }
 0x61c   :  { %6141 = vpow2.f32 %v5223_v62  ;;  %v6589_v33 = vmov (!%p5270_p5), 0.0   ;;  %v6172_v35 = vld [vmem:[%s8180_s7 + $0x8] sm:$0xff] (!%p5270_p5)  }
 0x61d   :  { %6143 = vpow2.f32 %v5224_v36  ;;  %v6173_v36 = vld [vmem:[%s8180_s7 + $0x10] sm:$0xff] (!%p5270_p5)  }
 0x61e   :  { %6145 = vtanh.f32 %v1837_v32  ;;  %v7352_v32 = vld [vmem:[%s8179_s6] ss:$0 sm:$0xff] }
 0x625   :  { %v6140_v37 = vpop.eup %6139 }
 0x626   :  { %v6142_v38 = vpop.eup %6141  ;;  %v1847_v39 = vadd.f32 1.0, %v6140_v37  ;;  %v6174_v37 = vld [vmem:[%s8180_s7 + $0x18] sm:$0xff] (!%p5270_p5)  }
 0x627   :  { %v1853_v40 = vadd.f32 1.0, %v6142_v38  ;;  %v6144_v41 = vpop.eup %6143  ;;  %v6175_v38 = vld [vmem:[%s8180_s7 + $0x20] sm:$0xff] (!%p5270_p5)  }
 0x628   :  { %6147 = vrcp.f32 %v1847_v39  ;;  %v6146_v42 = vpop.eup %6145  ;;  %v1860_v46 = vadd.f32 1.0, %v6144_v41  ;;  %v6176_v39 = vld [vmem:[%s8180_s7 + $0x28] sm:$0xff] (!%p5270_p5)   ;;  %v6178_v41 = vld [vmem:[%s8180_s7 + $0x38] sm:$0xff] (!%p5270_p5)  }
 0x629   :  { %6149 = vrcp.f32 %v1853_v40  ;;  %v6177_v40 = vld [vmem:[%s8180_s7 + $0x30] sm:$0xff] (!%p5270_p5)  }
 0x62a   :  { %6151 = vrcp.f32 %v1860_v46 }
 0x632   :  { %v6148_v43 = vpop.eup %6147 }
 0x633   :  { %v6150_v44 = vpop.eup %6149  ;;  %v1865_v45 = vmul.f32 %v6148_v43, %v6146_v42  ;;  %v2296_v42 = vlaneseq (!%p5270_p5) }
 0x634   :  { %v1864_v0 = vmul.f32 %v6150_v44, %v7207_v6  ;;  %v6152_v48 = vpop.eup %6151  ;;  %v6052_v6 = vld [vmem:[%s8178_s5 + $0x8] sm:$0xff]  }
 0x635   :  { %v2297_v43 = vand.u32 (!%p5270_p5), 127, %v2296_v42 }
 0x636   :  { %v1866_v47 = vadd.f32 %v1865_v45, %v1864_v0 }
 0x637   :  { %v2298_v44 = vcvt.s32.f32 (!%p5270_p5), %v2297_v43 }
 0x638   :  { %6153 = vtanh.f32 %v1866_v47 }
 0x642   :  { %v6154_v49 = vpop.eup %6153 }
 0x643   :  { %v1868_v50 = vmul.f32 %v6154_v49, %v6152_v48 }
 0x645   :  { %v1882_v51 = vadd.f32 %v1878_v30, %v1868_v50 }
 0x647   :  { %v1883_v52 = vpack.c.bf16 %v1882_v51, %v1882_v51 }
 0x649   :  { %2109 = vmatmul.mubr.bf16.vlgmr.msra.gmra.mrb[24].mxu0 %v1883_v52  ;;  %2150 = vmatmul.mubr.bf16.vlgmr.msra.gmra.mrb[24].mxu1 %v1883_v52 }
 0x64a   :  { %5669 = vmatpush3.bf16.msra.mxu0 %v6051_v53  ;;  %5684 = vmatprep.mubr.msk.bf16.mxu0 %vm6588_vm0, %v6587_v31 }
 0x64b   :  { %5670 = vmatprep.subr.bf16.mxu0 %v6587_v31 }
 0x64e   :  { %5671 = vmatpush3.bf16.msra.mxu0 %v6052_v6 }
 0x64f   :  { %5672 = vmatprep.subr.bf16.mxu0 %v6587_v31 }
 0x652   :  { %5673 = vmatpush3.bf16.msra.mxu0 %v6053_v54 }
 0x653   :  { %5674 = vmatprep.subr.bf16.mxu0 %v6587_v31 }
 0x656   :  { %5675 = vmatpush3.bf16.msra.mxu0 %v6054_v55 }
 0x657   :  { %5676 = vmatprep.subr.bf16.mxu0 %v6587_v31 }
 0x65a   :  { %5677 = vmatpush3.bf16.msra.mxu0 %v6055_v56 }
 0x65b   :  { %5678 = vmatprep.subr.bf16.mxu0 %v6587_v31 }
 0x65e   :  { %5679 = vmatpush3.bf16.msra.mxu0 %v6056_v58 }
 0x65f   :  { %5680 = vmatprep.subr.bf16.mxu0 %v6587_v31 }
 0x662   :  { %5681 = vmatpush3.bf16.msra.mxu0 %v6057_v59 }
 0x663   :  { %5682 = vmatprep.subr.bf16.mxu0 %v6587_v31 }
 0x666   :  { %5683 = vmatpush3.bf16.msra.mxu0 %v6058_v60 }
 0x667   :  { %5688 = vmatprep.subr.bf16.mxu0 (!%p5270_p5), %v6589_v33 }
 0x71c   :  { %v2110_v1 = vpop.f32.mrb[24].mxu0  ;;  %v2151_v3 = vpop.f32.mrb[24].mxu1 }
 0x71d   :  { %v5258_v4 = vmul.f32 -1.442695, %v2110_v1  ;;  %v2112_v5 = vpop.f32.mrb[25].mxu0  ;;  %v2153_v7 = vpop.f32.mrb[25].mxu1 }
 0x71e   :  { %v5259_v8 = vmul.f32 -1.442695, %v2112_v5  ;;  %v2114_v9 = vpop.f32.mrb[26].mxu0  ;;  %v2155_v10 = vpop.f32.mrb[26].mxu1  ;;  %v5260_v13 = vmul.f32 -1.442695, %v2153_v7 }
 0x71f   :  { %6155 = vpow2.f32 %v5258_v4  ;;  %v2115_v11 = vpop.f32.mrb[27].mxu0  ;;  %v2156_v12 = vpop.f32.mrb[27].mxu1 }
 0x720   :  { %6157 = vpow2.f32 %v5259_v8 }
 0x721   :  { %6159 = vpow2.f32 %v5260_v13 }
 0x722   :  { %6161 = vtanh.f32 %v2151_v3 }
 0x729   :  { %v6156_v14 = vpop.eup %6155 }
 0x72a   :  { %v6158_v15 = vpop.eup %6157  ;;  %v2161_v16 = vadd.f32 1.0, %v6156_v14 }
 0x72b   :  { %v2167_v17 = vadd.f32 1.0, %v6158_v15  ;;  %v6160_v18 = vpop.eup %6159 }
 0x72c   :  { %6163 = vrcp.f32 %v2161_v16  ;;  %v6162_v19 = vpop.eup %6161  ;;  %v2174_v23 = vadd.f32 1.0, %v6160_v18 }
 0x72d   :  { %6165 = vrcp.f32 %v2167_v17 }
 0x72e   :  { %6167 = vrcp.f32 %v2174_v23 }
 0x736   :  { %v6164_v20 = vpop.eup %6163 }
 0x737   :  { %v6166_v21 = vpop.eup %6165  ;;  %v2179_v22 = vmul.f32 %v6164_v20, %v6162_v19 }
 0x738   :  { %v2178_v24 = vmul.f32 %v6166_v21, %v1866_v47  ;;  %v6168_v28 = vpop.eup %6167  ;;  %v6591_v47 = vmov (!%p5270_p5), 1.0|1.0  }
 0x73a   :  { %v2180_v27 = vadd.f32 %v2179_v22, %v2178_v24 }
 0x73c   :  { %6169 = vtanh.f32 %v2180_v27  ;;  %2184 = vst [vmem:[#allocation3] sm:$0xff] %v2180_v27 }
 0x746   :  { %v6170_v29 = vpop.eup %6169 }
 0x747   :  { %v2182_v30 = vmul.f32 %v6170_v29, %v6168_v28 }
 0x749   :  { %2183 = vst [vmem:[#allocation2] sm:$0xff] %v2182_v30  ;;  %v2185_v26 = vpack.c.bf16 %v2182_v30, %v2182_v30 }
 0x74b   :  { %5685 = vmatmul.mubr.bf16.vlgmr.msra.gmra.mrb[28].mxu0 %v2185_v26 }
 0x74c   :  { %5689 = vmatpush3.bf16.msra.mxu0 (!%p5270_p5), %v6171_v25  ;;  %5704 = vmatprep.mubr.msk.bf16.mxu0 (!%p5270_p5), %vm6590_vm2, %v6589_v33 }
 0x74d   :  { %5690 = vmatprep.subr.bf16.mxu0 (!%p5270_p5), %v6589_v33 }
 0x750   :  { %5691 = vmatpush3.bf16.msra.mxu0 (!%p5270_p5), %v6172_v35 }
 0x751   :  { %5692 = vmatprep.subr.bf16.mxu0 (!%p5270_p5), %v6589_v33 }
 0x754   :  { %5693 = vmatpush3.bf16.msra.mxu0 (!%p5270_p5), %v6173_v36 }
 0x755   :  { %5694 = vmatprep.subr.bf16.mxu0 (!%p5270_p5), %v6589_v33 }
 0x758   :  { %5695 = vmatpush3.bf16.msra.mxu0 (!%p5270_p5), %v6174_v37 }
 0x759   :  { %5696 = vmatprep.subr.bf16.mxu0 (!%p5270_p5), %v6589_v33 }
 0x75c   :  { %5697 = vmatpush3.bf16.msra.mxu0 (!%p5270_p5), %v6175_v38 }
 0x75d   :  { %5698 = vmatprep.subr.bf16.mxu0 (!%p5270_p5), %v6589_v33 }
 0x760   :  { %5699 = vmatpush3.bf16.msra.mxu0 (!%p5270_p5), %v6176_v39 }
 0x761   :  { %5700 = vmatprep.subr.bf16.mxu0 (!%p5270_p5), %v6589_v33 }
 0x764   :  { %5701 = vmatpush3.bf16.msra.mxu0 (!%p5270_p5), %v6177_v40 }
 0x765   :  { %5702 = vmatprep.subr.bf16.mxu0 (!%p5270_p5), %v6589_v33 }
 0x768   :  { %5703 = vmatpush3.bf16.msra.mxu0 (!%p5270_p5), %v6178_v41 }
 0x81b   :  { %2295 = sbr.rel (%p5270_p5) target bundleno = 2584 (0xa18), region = 33 }
 0x81e   :  { %v2284_v34 = vpop.f32.mrb[28].mxu0 }
 0x81f   :  { %v2285_v57 = vadd.f32 %v7352_v32, %v2284_v34  ;;  %v5686_v61 = vpop.f32.mrb[29].mxu0 }
 0x820   :  { %v2287_v62 = vpop.f32.mrb[30].mxu0 }
 0x821   :  { %2290 = vst [vmem:[%s8181_s8] sm:$0xff] %v2285_v57  ;;  %v5687_v63 = vpop.f32.mrb[31].mxu0  ;;  %2299 = vmax.xlane.f32.xlu0 (!%p5270_p5), %v2285_v57 }
 0x8ae   :  { %v2300_v45 = vpop.xlane.xlu0 %2299 }
 0x8af   :  { %vm2301_vm1 = vcmp.ge.f32.partialorder %v2285_v57, %v2300_v45 }
 0x8b0   :  { %v2302_v46 = vsel %vm2301_vm1, %v2298_v44, 128.0 }
 0x8b1   :  { %2303 = vmin.xlane.f32.xlu0 %v2302_v46 }
 0x93e   :  { %v2304_v0 = vpop.xlane.xlu0 %2303 }
 0x93f   :  { %vm2305_vm3 = vcmp.eq.f32.partialorder %v2298_v44, %v2304_v0 }
 0x940   :  { %vm5280_vm4 = vmpackc.low %vm2305_vm3, %vm2305_vm3 }
 0x941   :  { %5705 = vmatmul.mubr.msk.bf16.vlgmr.msra.gmra.mrb[0].mxu0 %vm5280_vm4, %v6591_v47 }
 0xa14   :  { %v2407_v48 = vpop.f32.mrb[0].mxu0 }
 0xa15   :  { %2413 = vst [vmem:[#allocation4] sm:$0xff] %v2407_v48  ;;  %v5706_v49 = vpop.f32.mrb[1].mxu0 }
 0xa16   :  { %v2410_v50 = vpop.f32.mrb[2].mxu0 }
 0xa17   :  { %v5707_v51 = vpop.f32.mrb[3].mxu0 }
 0xa18 PF:  { %s5282_s0 = sld [smem:[#allocation6 + $0x1]] }
 0xa1e   :  { %p5283_p6 = scmp.eq.s32.totalorder %s5282_s0, 0 }
 0xa1f   :  { %v5284_v52 = vld [vmem:[%s8175_s2 + $0x8] sm:$0xff] (!%p5283_p6) }
 0xa20   :  { %2418 = sbr.rel (%p5283_p6) target bundleno = 2599 (0xa27), region = 37  ;;  %2421 = vst [vmem:[#allocation4] sm:$0xff] (!%p5283_p6), %v5284_v52 }
 0xa27 PF:  { %v6179_v53 = vld [vmem:[%s8177_s4 + $0x4] ss:$16 sps:$4 sm:$0xff]   ;;  %2650 = vmatprep.mubr.bf16.mxu0 %v6586_v2  ;;  %2691 = vmatprep.mubr.bf16.mxu1 %v6586_v2  ;;  %v6181_v6 = vld [vmem:[%s8177_s4] ss:$16 sps:$4 sm:$0xff]   ;;  %v6190_v58 = vld [vmem:[%s8177_s4 + $0xc] ss:$16 sps:$4 sm:$0xff]  }
 0xa28   :  { %2618 = vmatprep.subr.bf16.mxu0 %v6179_v53  ;;  %v6182_v54 = vld [vmem:[%s8177_s4 + $0x24] ss:$16 sps:$4 sm:$0xff]   ;;  %v6184_v55 = vld [vmem:[%s8177_s4 + $0x20] ss:$16 sps:$4 sm:$0xff]   ;;  %v6193_v59 = vld [vmem:[%s8177_s4 + $0x8] ss:$16 sps:$4 sm:$0xff]   ;;  %2659 = vmatprep.subr.bf16.mxu1 %v6190_v58 }
 0xa29   :  { %2619 = vmatpush1.bf16.msra.mxu0 %v6181_v6  ;;  %v6185_v56 = vld [vmem:[%s8177_s4 + $0x44] ss:$16 sps:$4 sm:$0xff]   ;;  %v6187_v60 = vld [vmem:[%s8177_s4 + $0x40] ss:$16 sps:$4 sm:$0xff]   ;;  %2660 = vmatpush1.bf16.msra.mxu1 %v6193_v59  ;;  %v6196_v3 = vld [vmem:[%s8177_s4 + $0x2c] ss:$16 sps:$4 sm:$0xff]  }
 0xa2a   :  { %2620 = vmatprep.subr.bf16.mxu0 %v6182_v54  ;;  %v6188_v1 = vld [vmem:[%s8177_s4 + $0x64] ss:$16 sps:$4 sm:$0xff]   ;;  %v6199_v4 = vld [vmem:[%s8177_s4 + $0x28] ss:$16 sps:$4 sm:$0xff]   ;;  %2661 = vmatprep.subr.bf16.mxu1 %v6196_v3  ;;  %v6192_v5 = vld [vmem:[%s8177_s4 + $0x60] ss:$16 sps:$4 sm:$0xff]  }
 0xa2b   :  { %v6194_v7 = vld [vmem:[%s8177_s4 + $0x84] ss:$16 sps:$4 sm:$0xff]   ;;  %v6202_v8 = vld [vmem:[%s8177_s4 + $0x4c] ss:$16 sps:$4 sm:$0xff]   ;;  %v6205_v9 = vld [vmem:[%s8177_s4 + $0x48] ss:$16 sps:$4 sm:$0xff]  }
 0xa2c   :  { %v6208_v10 = vld [vmem:[%s8177_s4 + $0x6c] ss:$16 sps:$4 sm:$0xff]   ;;  %v6198_v11 = vld [vmem:[%s8177_s4 + $0x80] ss:$16 sps:$4 sm:$0xff]   ;;  %v6200_v12 = vld [vmem:[%s8177_s4 + $0xa4] ss:$16 sps:$4 sm:$0xff]  }
 0xa2d   :  { %2621 = vmatpush1.bf16.msra.mxu0 %v6184_v55  ;;  %2662 = vmatpush1.bf16.msra.mxu1 %v6199_v4  ;;  %v6211_v13 = vld [vmem:[%s8177_s4 + $0x68] ss:$16 sps:$4 sm:$0xff]   ;;  %v6214_v14 = vld [vmem:[%s8177_s4 + $0x8c] ss:$16 sps:$4 sm:$0xff]   ;;  %v6204_v15 = vld [vmem:[%s8177_s4 + $0xa0] ss:$16 sps:$4 sm:$0xff]  }
 0xa2e   :  { %2622 = vmatprep.subr.bf16.mxu0 %v6185_v56  ;;  %2663 = vmatprep.subr.bf16.mxu1 %v6202_v8  ;;  %v6206_v16 = vld [vmem:[%s8177_s4 + $0xc4] ss:$16 sps:$4 sm:$0xff]   ;;  %v6217_v17 = vld [vmem:[%s8177_s4 + $0x88] ss:$16 sps:$4 sm:$0xff]   ;;  %v6210_v18 = vld [vmem:[%s8177_s4 + $0xc0] ss:$16 sps:$4 sm:$0xff]  }
 0xa2f   :  { %v2422_v19 = vld [vmem:[#allocation4] sm:$0xff]  ;;  %v2423_v20 = vld [vmem:[#allocation2] sm:$0xff]  ;;  %v6218_v21 = vld [vmem:[%s8177_s4 + $0xac] ss:$16 sps:$4 sm:$0xff]   ;;  %s5329_s16 = sld [smem:[#allocation6 + $0x2]] }
 0xa30   :  { %v6212_v22 = vld [vmem:[%s8177_s4 + $0xe4] ss:$16 sps:$4 sm:$0xff]   ;;  %v6220_v23 = vld [vmem:[%s8177_s4 + $0xa8] ss:$16 sps:$4 sm:$0xff]   ;;  %v6221_v24 = vld [vmem:[%s8177_s4 + $0xcc] ss:$16 sps:$4 sm:$0xff]   ;;  %v2424_v27 = vadd.f32 %v2423_v20, %v2422_v19 }
 0xa31   :  { %2623 = vmatpush1.bf16.msra.mxu0 %v6187_v60  ;;  %2664 = vmatpush1.bf16.msra.mxu1 %v6205_v9  ;;  %v6216_v28 = vld [vmem:[%s8177_s4 + $0xe0] ss:$16 sps:$4 sm:$0xff]   ;;  %v6223_v29 = vld [vmem:[%s8177_s4 + $0xc8] ss:$16 sps:$4 sm:$0xff]   ;;  %v6224_v30 = vld [vmem:[%s8177_s4 + $0xec] ss:$16 sps:$4 sm:$0xff]  }
 0xa32   :  { %2624 = vmatprep.subr.bf16.mxu0 %v6188_v1  ;;  %2665 = vmatprep.subr.bf16.mxu1 %v6208_v10  ;;  %v2425_v26 = vpack.c.bf16 %v2424_v27, %v2424_v27  ;;  %v6226_v34 = vld [vmem:[%s8177_s4 + $0xe8] ss:$16 sps:$4 sm:$0xff]   ;;  %v6227_v57 = vld [vmem:[%s8178_s5] sm:$0xff]   ;;  %v6229_v62 = vld [vmem:[%s8178_s5 + $0x10] sm:$0xff]  }
 0xa33   :  { %v6228_v61 = vld [vmem:[%s8178_s5 + $0x8] sm:$0xff]   ;;  %v6230_v63 = vld [vmem:[%s8178_s5 + $0x18] sm:$0xff]   ;;  %v6231_v25 = vld [vmem:[%s8178_s5 + $0x20] sm:$0xff]  }
 0xa34   :  { %v6232_v33 = vld [vmem:[%s8178_s5 + $0x28] sm:$0xff]   ;;  %v6233_v35 = vld [vmem:[%s8178_s5 + $0x30] sm:$0xff]   ;;  %v6234_v36 = vld [vmem:[%s8178_s5 + $0x38] sm:$0xff]  }
 0xa35   :  { %2625 = vmatpush1.bf16.msra.mxu0 %v6192_v5  ;;  %2666 = vmatpush1.bf16.msra.mxu1 %v6211_v13  ;;  %v2719_v53 = vld [vmem:[#allocation3] sm:$0xff]  ;;  %p5330_p7 = scmp.ne.s32.totalorder %s5329_s16, 0 }
 0xa36   :  { %2626 = vmatprep.subr.bf16.mxu0 %v6194_v7  ;;  %2667 = vmatprep.subr.bf16.mxu1 %v6214_v14  ;;  %v6252_v13 = vld [vmem:[%s8180_s7 + $0x8] sm:$0xff] (!%p5330_p7)   ;;  %v6253_v14 = vld [vmem:[%s8180_s7 + $0x10] sm:$0xff] (!%p5330_p7)   ;;  %v6258_v19 = vld [vmem:[%s8180_s7 + $0x38] sm:$0xff] (!%p5330_p7)   ;;  %v2839_v20 = vlaneseq (!%p5330_p7)  ;;  %vm6593_vm6 = vmmov (!%p5330_p7), 0  }
 0xa39   :  { %2627 = vmatpush1.bf16.msra.mxu0 %v6198_v11  ;;  %2668 = vmatpush1.bf16.msra.mxu1 %v6217_v17  ;;  %v6251_v11 = vld [vmem:[%s8180_s7] sm:$0xff] (!%p5330_p7)   ;;  %v6256_v17 = vld [vmem:[%s8180_s7 + $0x28] sm:$0xff] (!%p5330_p7)  }
 0xa3a   :  { %2628 = vmatprep.subr.bf16.mxu0 %v6200_v12  ;;  %2669 = vmatprep.subr.bf16.mxu1 %v6218_v21  ;;  %v6592_v12 = vmov (!%p5330_p7), 0.0   ;;  %v2840_v21 = vand.u32 (!%p5330_p7), 127, %v2839_v20 }
 0xa3d   :  { %2629 = vmatpush1.bf16.msra.mxu0 %v6204_v15  ;;  %2670 = vmatpush1.bf16.msra.mxu1 %v6220_v23  ;;  %v6254_v15 = vld [vmem:[%s8180_s7 + $0x18] sm:$0xff] (!%p5330_p7)  }
 0xa3e   :  { %2630 = vmatprep.subr.bf16.mxu0 %v6206_v16  ;;  %2671 = vmatprep.subr.bf16.mxu1 %v6221_v24  ;;  %v6255_v16 = vld [vmem:[%s8180_s7 + $0x20] sm:$0xff] (!%p5330_p7)  }
 0xa41   :  { %2631 = vmatpush1.bf16.msra.mxu0 %v6210_v18  ;;  %2672 = vmatpush1.bf16.msra.mxu1 %v6223_v29  ;;  %v6257_v18 = vld [vmem:[%s8180_s7 + $0x30] sm:$0xff] (!%p5330_p7)  }
 0xa42   :  { %2632 = vmatprep.subr.bf16.mxu0 %v6212_v22  ;;  %2673 = vmatprep.subr.bf16.mxu1 %v6224_v30  ;;  %v2841_v22 = vcvt.s32.f32 (!%p5330_p7), %v2840_v21 }
 0xa45   :  { %2633 = vmatpush1.bf16.msra.mxu0 %v6216_v28  ;;  %2674 = vmatpush1.bf16.msra.mxu1 %v6226_v34  ;;  %v6594_v28 = vmov (!%p5330_p7), 1.0|1.0  }
 0xa46   :  { %5708 = vmatprep.subr.bf16.mxu0 %v6587_v31 }
 0xa48   :  { %2651 = vmatmul.mubr.bf16.vlgmr.msra.gmra.mrb[0].mxu0 %v2425_v26  ;;  %2692 = vmatmul.mubr.bf16.vlgmr.msra.gmra.mrb[0].mxu1 %v2425_v26 }
 0xa49   :  { %5724 = vmatprep.mubr.msk.bf16.mxu0 %vm6588_vm0, %v6587_v31  ;;  %5709 = vmatpush3.bf16.msra.mxu0 %v6227_v57 }
 0xa4a   :  { %5710 = vmatprep.subr.bf16.mxu0 %v6587_v31 }
 0xa4d   :  { %5711 = vmatpush3.bf16.msra.mxu0 %v6228_v61 }
 0xa4e   :  { %5712 = vmatprep.subr.bf16.mxu0 %v6587_v31 }
 0xa51   :  { %5713 = vmatpush3.bf16.msra.mxu0 %v6229_v62 }
 0xa52   :  { %5714 = vmatprep.subr.bf16.mxu0 %v6587_v31 }
 0xa55   :  { %5715 = vmatpush3.bf16.msra.mxu0 %v6230_v63 }
 0xa56   :  { %5716 = vmatprep.subr.bf16.mxu0 %v6587_v31 }
 0xa59   :  { %5717 = vmatpush3.bf16.msra.mxu0 %v6231_v25 }
 0xa5a   :  { %5718 = vmatprep.subr.bf16.mxu0 %v6587_v31 }
 0xa5d   :  { %5719 = vmatpush3.bf16.msra.mxu0 %v6232_v33 }
 0xa5e   :  { %5720 = vmatprep.subr.bf16.mxu0 %v6587_v31 }
 0xa61   :  { %5721 = vmatpush3.bf16.msra.mxu0 %v6233_v35 }
 0xa62   :  { %5722 = vmatprep.subr.bf16.mxu0 %v6587_v31 }
 0xa65   :  { %5723 = vmatpush3.bf16.msra.mxu0 %v6234_v36 }
 0xa66   :  { %5728 = vmatprep.subr.bf16.mxu0 (!%p5330_p7), %v6592_v12 }
 0xb1b   :  { %v2652_v37 = vpop.f32.mrb[0].mxu0  ;;  %v2693_v43 = vpop.f32.mrb[0].mxu1 }
 0xb1c   :  { %v5317_v38 = vmul.f32 -1.442695, %v2652_v37  ;;  %v2654_v39 = vpop.f32.mrb[1].mxu0  ;;  %v2695_v44 = vpop.f32.mrb[1].mxu1 }
 0xb1d   :  { %v5318_v40 = vmul.f32 -1.442695, %v2654_v39  ;;  %v2656_v41 = vpop.f32.mrb[2].mxu0  ;;  %v2697_v45 = vpop.f32.mrb[2].mxu1  ;;  %v5319_v0 = vmul.f32 -1.442695, %v2695_v44 }
 0xb1e   :  { %6235 = vpow2.f32 %v5317_v38  ;;  %v2657_v42 = vpop.f32.mrb[3].mxu0  ;;  %v2698_v46 = vpop.f32.mrb[3].mxu1 }
 0xb1f   :  { %6237 = vpow2.f32 %v5318_v40 }
 0xb20   :  { %6239 = vpow2.f32 %v5319_v0 }
 0xb21   :  { %6241 = vtanh.f32 %v2693_v43 }
 0xb28   :  { %v6236_v47 = vpop.eup %6235 }
 0xb29   :  { %v6238_v48 = vpop.eup %6237  ;;  %v2703_v49 = vadd.f32 1.0, %v6236_v47 }
 0xb2a   :  { %v2709_v50 = vadd.f32 1.0, %v6238_v48  ;;  %v6240_v51 = vpop.eup %6239 }
 0xb2b   :  { %6243 = vrcp.f32 %v2703_v49  ;;  %v6242_v52 = vpop.eup %6241  ;;  %v2716_v54 = vadd.f32 1.0, %v6240_v51 }
 0xb2c   :  { %6245 = vrcp.f32 %v2709_v50 }
 0xb2d   :  { %6247 = vrcp.f32 %v2716_v54 }
 0xb35   :  { %v6244_v6 = vpop.eup %6243 }
 0xb36   :  { %v6246_v55 = vpop.eup %6245  ;;  %v2721_v56 = vmul.f32 %v6244_v6, %v6242_v52 }
 0xb37   :  { %v2720_v58 = vmul.f32 %v6246_v55, %v2719_v53  ;;  %v6248_v60 = vpop.eup %6247 }
 0xb39   :  { %v2722_v59 = vadd.f32 %v2721_v56, %v2720_v58 }
 0xb3b   :  { %6249 = vtanh.f32 %v2722_v59  ;;  %2726 = vst [vmem:[#allocation3] sm:$0xff] %v2722_v59 }
 0xb45   :  { %v6250_v1 = vpop.eup %6249 }
 0xb46   :  { %v2724_v3 = vmul.f32 %v6250_v1, %v6248_v60 }
 0xb48   :  { %2725 = vst [vmem:[#allocation2] sm:$0xff] %v2724_v3  ;;  %v2727_v4 = vpack.c.bf16 %v2724_v3, %v2724_v3 }
 0xb4a   :  { %5725 = vmatmul.mubr.bf16.vlgmr.msra.gmra.mrb[4].mxu0 %v2727_v4 }
 0xb4b   :  { %5729 = vmatpush3.bf16.msra.mxu0 (!%p5330_p7), %v6251_v11  ;;  %5744 = vmatprep.mubr.msk.bf16.mxu0 (!%p5330_p7), %vm6593_vm6, %v6592_v12 }
 0xb4c   :  { %5730 = vmatprep.subr.bf16.mxu0 (!%p5330_p7), %v6592_v12 }
 0xb4f   :  { %5731 = vmatpush3.bf16.msra.mxu0 (!%p5330_p7), %v6252_v13 }
 0xb50   :  { %5732 = vmatprep.subr.bf16.mxu0 (!%p5330_p7), %v6592_v12 }
 0xb53   :  { %5733 = vmatpush3.bf16.msra.mxu0 (!%p5330_p7), %v6253_v14 }
 0xb54   :  { %5734 = vmatprep.subr.bf16.mxu0 (!%p5330_p7), %v6592_v12 }
 0xb57   :  { %5735 = vmatpush3.bf16.msra.mxu0 (!%p5330_p7), %v6254_v15 }
 0xb58   :  { %5736 = vmatprep.subr.bf16.mxu0 (!%p5330_p7), %v6592_v12 }
 0xb5b   :  { %5737 = vmatpush3.bf16.msra.mxu0 (!%p5330_p7), %v6255_v16 }
 0xb5c   :  { %5738 = vmatprep.subr.bf16.mxu0 (!%p5330_p7), %v6592_v12 }
 0xb5f   :  { %5739 = vmatpush3.bf16.msra.mxu0 (!%p5330_p7), %v6256_v17 }
 0xb60   :  { %5740 = vmatprep.subr.bf16.mxu0 (!%p5330_p7), %v6592_v12 }
 0xb63   :  { %5741 = vmatpush3.bf16.msra.mxu0 (!%p5330_p7), %v6257_v18 }
 0xb64   :  { %5742 = vmatprep.subr.bf16.mxu0 (!%p5330_p7), %v6592_v12 }
 0xb67   :  { %5743 = vmatpush3.bf16.msra.mxu0 (!%p5330_p7), %v6258_v19 }
 0xc1a   :  { %2838 = sbr.rel (%p5330_p7) target bundleno = 3607 (0xe17), region = 41 }
 0xc1d   :  { %v2826_v5 = vpop.f32.mrb[4].mxu0 }
 0xc1e   :  { %v2827_v7 = vadd.f32 %v7352_v32, %v2826_v5  ;;  %v5726_v8 = vpop.f32.mrb[5].mxu0 }
 0xc1f   :  { %v2829_v9 = vpop.f32.mrb[6].mxu0 }
 0xc20   :  { %5328 = vst [vmem:[%s8181_s8 + $0x8] sm:$0xff] %v2827_v7  ;;  %v5727_v10 = vpop.f32.mrb[7].mxu0  ;;  %2842 = vmax.xlane.f32.xlu0 (!%p5330_p7), %v2827_v7 }
 0xcad   :  { %v2843_v23 = vpop.xlane.xlu0 %2842 }
 0xcae   :  { %vm2844_vm5 = vcmp.ge.f32.partialorder %v2827_v7, %v2843_v23 }
 0xcaf   :  { %v2845_v24 = vsel %vm2844_vm5, %v2841_v22, 128.0 }
 0xcb0   :  { %2846 = vmin.xlane.f32.xlu0 %v2845_v24 }
 0xd3d   :  { %v2847_v27 = vpop.xlane.xlu0 %2846 }
 0xd3e   :  { %vm2848_vm7 = vcmp.eq.f32.partialorder %v2841_v22, %v2847_v27 }
 0xd3f   :  { %vm5340_vm8 = vmpackc.low %vm2848_vm7, %vm2848_vm7 }
 0xd40   :  { %5745 = vmatmul.mubr.msk.bf16.vlgmr.msra.gmra.mrb[0].mxu0 %vm5340_vm8, %v6594_v28 }
 0xe13   :  { %v2950_v29 = vpop.f32.mrb[0].mxu0 }
 0xe14   :  { %2956 = vst [vmem:[#allocation4] sm:$0xff] %v2950_v29  ;;  %v5746_v30 = vpop.f32.mrb[1].mxu0 }
 0xe15   :  { %v2953_v26 = vpop.f32.mrb[2].mxu0 }
 0xe16   :  { %v5747_v34 = vpop.f32.mrb[3].mxu0 }
 0xe17 PF:  { %s5342_s11 = sld [smem:[#allocation6 + $0x2]] }
 0xe1d   :  { %p5343_p8 = scmp.eq.s32.totalorder %s5342_s11, 0 }
 0xe1e   :  { %v5344_v57 = vld [vmem:[%s8175_s2 + $0x10] sm:$0xff] (!%p5343_p8) }
 0xe1f   :  { %2961 = sbr.rel (%p5343_p8) target bundleno = 3622 (0xe26), region = 45  ;;  %2964 = vst [vmem:[#allocation4] sm:$0xff] (!%p5343_p8), %v5344_v57 }
 0xe26 PF:  { %v6259_v61 = vld [vmem:[%s8177_s4 + $0x4] ss:$16 sps:$4 sm:$0xff]   ;;  %3193 = vmatprep.mubr.bf16.mxu0 %v6586_v2  ;;  %3234 = vmatprep.mubr.bf16.mxu1 %v6586_v2  ;;  %v6261_v62 = vld [vmem:[%s8177_s4] ss:$16 sps:$4 sm:$0xff]   ;;  %v6270_v35 = vld [vmem:[%s8177_s4 + $0xc] ss:$16 sps:$4 sm:$0xff]  }
 0xe27   :  { %3161 = vmatprep.subr.bf16.mxu0 %v6259_v61  ;;  %v6262_v63 = vld [vmem:[%s8177_s4 + $0x24] ss:$16 sps:$4 sm:$0xff]   ;;  %v6264_v25 = vld [vmem:[%s8177_s4 + $0x20] ss:$16 sps:$4 sm:$0xff]   ;;  %v6273_v36 = vld [vmem:[%s8177_s4 + $0x8] ss:$16 sps:$4 sm:$0xff]   ;;  %3202 = vmatprep.subr.bf16.mxu1 %v6270_v35 }
 0xe28   :  { %3162 = vmatpush1.bf16.msra.mxu0 %v6261_v62  ;;  %v6265_v33 = vld [vmem:[%s8177_s4 + $0x44] ss:$16 sps:$4 sm:$0xff]   ;;  %v6267_v37 = vld [vmem:[%s8177_s4 + $0x40] ss:$16 sps:$4 sm:$0xff]   ;;  %3203 = vmatpush1.bf16.msra.mxu1 %v6273_v36  ;;  %v6276_v39 = vld [vmem:[%s8177_s4 + $0x2c] ss:$16 sps:$4 sm:$0xff]  }
 0xe29   :  { %3163 = vmatprep.subr.bf16.mxu0 %v6262_v63  ;;  %v6268_v38 = vld [vmem:[%s8177_s4 + $0x64] ss:$16 sps:$4 sm:$0xff]   ;;  %v6279_v40 = vld [vmem:[%s8177_s4 + $0x28] ss:$16 sps:$4 sm:$0xff]   ;;  %3204 = vmatprep.subr.bf16.mxu1 %v6276_v39  ;;  %v6272_v41 = vld [vmem:[%s8177_s4 + $0x60] ss:$16 sps:$4 sm:$0xff]  }
 0xe2a   :  { %v6274_v42 = vld [vmem:[%s8177_s4 + $0x84] ss:$16 sps:$4 sm:$0xff]   ;;  %v6282_v43 = vld [vmem:[%s8177_s4 + $0x4c] ss:$16 sps:$4 sm:$0xff]   ;;  %v6285_v44 = vld [vmem:[%s8177_s4 + $0x48] ss:$16 sps:$4 sm:$0xff]  }
 0xe2b   :  { %v6288_v45 = vld [vmem:[%s8177_s4 + $0x6c] ss:$16 sps:$4 sm:$0xff]   ;;  %v6278_v46 = vld [vmem:[%s8177_s4 + $0x80] ss:$16 sps:$4 sm:$0xff]   ;;  %v6280_v0 = vld [vmem:[%s8177_s4 + $0xa4] ss:$16 sps:$4 sm:$0xff]  }
 0xe2c   :  { %3164 = vmatpush1.bf16.msra.mxu0 %v6264_v25  ;;  %3205 = vmatpush1.bf16.msra.mxu1 %v6279_v40  ;;  %v6291_v47 = vld [vmem:[%s8177_s4 + $0x68] ss:$16 sps:$4 sm:$0xff]   ;;  %v6294_v48 = vld [vmem:[%s8177_s4 + $0x8c] ss:$16 sps:$4 sm:$0xff]   ;;  %v6284_v49 = vld [vmem:[%s8177_s4 + $0xa0] ss:$16 sps:$4 sm:$0xff]  }
 0xe2d   :  { %3165 = vmatprep.subr.bf16.mxu0 %v6265_v33  ;;  %3206 = vmatprep.subr.bf16.mxu1 %v6282_v43  ;;  %v6286_v50 = vld [vmem:[%s8177_s4 + $0xc4] ss:$16 sps:$4 sm:$0xff]   ;;  %v6297_v51 = vld [vmem:[%s8177_s4 + $0x88] ss:$16 sps:$4 sm:$0xff]   ;;  %v6290_v52 = vld [vmem:[%s8177_s4 + $0xc0] ss:$16 sps:$4 sm:$0xff]  }
 0xe2e   :  { %v2965_v53 = vld [vmem:[#allocation4] sm:$0xff]  ;;  %v2966_v6 = vld [vmem:[#allocation2] sm:$0xff]  ;;  %v6298_v54 = vld [vmem:[%s8177_s4 + $0xac] ss:$16 sps:$4 sm:$0xff]   ;;  %s5389_s15 = sld [smem:[#allocation6 + $0x3]] }
 0xe2f   :  { %v6292_v55 = vld [vmem:[%s8177_s4 + $0xe4] ss:$16 sps:$4 sm:$0xff]   ;;  %v6300_v56 = vld [vmem:[%s8177_s4 + $0xa8] ss:$16 sps:$4 sm:$0xff]   ;;  %v6301_v58 = vld [vmem:[%s8177_s4 + $0xcc] ss:$16 sps:$4 sm:$0xff]   ;;  %v2967_v59 = vadd.f32 %v2966_v6, %v2965_v53 }
 0xe30   :  { %3166 = vmatpush1.bf16.msra.mxu0 %v6267_v37  ;;  %3207 = vmatpush1.bf16.msra.mxu1 %v6285_v44  ;;  %v6296_v60 = vld [vmem:[%s8177_s4 + $0xe0] ss:$16 sps:$4 sm:$0xff]   ;;  %v6303_v1 = vld [vmem:[%s8177_s4 + $0xc8] ss:$16 sps:$4 sm:$0xff]   ;;  %v6304_v3 = vld [vmem:[%s8177_s4 + $0xec] ss:$16 sps:$4 sm:$0xff]  }
 0xe31   :  { %3167 = vmatprep.subr.bf16.mxu0 %v6268_v38  ;;  %3208 = vmatprep.subr.bf16.mxu1 %v6288_v45  ;;  %v2968_v4 = vpack.c.bf16 %v2967_v59, %v2967_v59  ;;  %v6306_v5 = vld [vmem:[%s8177_s4 + $0xe8] ss:$16 sps:$4 sm:$0xff]   ;;  %v6307_v7 = vld [vmem:[%s8178_s5] sm:$0xff]   ;;  %v6309_v9 = vld [vmem:[%s8178_s5 + $0x10] sm:$0xff]  }
 0xe32   :  { %v6308_v8 = vld [vmem:[%s8178_s5 + $0x8] sm:$0xff]   ;;  %v6310_v10 = vld [vmem:[%s8178_s5 + $0x18] sm:$0xff]   ;;  %v6311_v11 = vld [vmem:[%s8178_s5 + $0x20] sm:$0xff]  }
 0xe33   :  { %v6312_v12 = vld [vmem:[%s8178_s5 + $0x28] sm:$0xff]   ;;  %v6313_v13 = vld [vmem:[%s8178_s5 + $0x30] sm:$0xff]   ;;  %v6314_v14 = vld [vmem:[%s8178_s5 + $0x38] sm:$0xff]  }
 0xe34   :  { %3168 = vmatpush1.bf16.msra.mxu0 %v6272_v41  ;;  %3209 = vmatpush1.bf16.msra.mxu1 %v6291_v47  ;;  %v3262_v61 = vld [vmem:[#allocation3] sm:$0xff]  ;;  %p5390_p9 = scmp.ne.s32.totalorder %s5389_s15, 0 }
 0xe35   :  { %3169 = vmatprep.subr.bf16.mxu0 %v6274_v42  ;;  %3210 = vmatprep.subr.bf16.mxu1 %v6294_v48  ;;  %v6332_v47 = vld [vmem:[%s8180_s7 + $0x8] sm:$0xff] (!%p5390_p9)   ;;  %v6333_v48 = vld [vmem:[%s8180_s7 + $0x10] sm:$0xff] (!%p5390_p9)   ;;  %v6338_v53 = vld [vmem:[%s8180_s7 + $0x38] sm:$0xff] (!%p5390_p9)   ;;  %v3382_v6 = vlaneseq (!%p5390_p9)  ;;  %vm6596_vm10 = vmmov (!%p5390_p9), 0  }
 0xe38   :  { %3170 = vmatpush1.bf16.msra.mxu0 %v6278_v46  ;;  %3211 = vmatpush1.bf16.msra.mxu1 %v6297_v51  ;;  %v6331_v46 = vld [vmem:[%s8180_s7] sm:$0xff] (!%p5390_p9)   ;;  %v6336_v51 = vld [vmem:[%s8180_s7 + $0x28] sm:$0xff] (!%p5390_p9)  }
 0xe39   :  { %3171 = vmatprep.subr.bf16.mxu0 %v6280_v0  ;;  %3212 = vmatprep.subr.bf16.mxu1 %v6298_v54  ;;  %v6595_v0 = vmov (!%p5390_p9), 0.0   ;;  %v3383_v54 = vand.u32 (!%p5390_p9), 127, %v3382_v6 }
 0xe3c   :  { %3172 = vmatpush1.bf16.msra.mxu0 %v6284_v49  ;;  %3213 = vmatpush1.bf16.msra.mxu1 %v6300_v56  ;;  %v6334_v49 = vld [vmem:[%s8180_s7 + $0x18] sm:$0xff] (!%p5390_p9)  }
 0xe3d   :  { %3173 = vmatprep.subr.bf16.mxu0 %v6286_v50  ;;  %3214 = vmatprep.subr.bf16.mxu1 %v6301_v58  ;;  %v6335_v50 = vld [vmem:[%s8180_s7 + $0x20] sm:$0xff] (!%p5390_p9)  }
 0xe40   :  { %3174 = vmatpush1.bf16.msra.mxu0 %v6290_v52  ;;  %3215 = vmatpush1.bf16.msra.mxu1 %v6303_v1  ;;  %v6337_v52 = vld [vmem:[%s8180_s7 + $0x30] sm:$0xff] (!%p5390_p9)  }
 0xe41   :  { %3175 = vmatprep.subr.bf16.mxu0 %v6292_v55  ;;  %3216 = vmatprep.subr.bf16.mxu1 %v6304_v3  ;;  %v3384_v55 = vcvt.s32.f32 (!%p5390_p9), %v3383_v54 }
 0xe44   :  { %3176 = vmatpush1.bf16.msra.mxu0 %v6296_v60  ;;  %3217 = vmatpush1.bf16.msra.mxu1 %v6306_v5  ;;  %v6597_v60 = vmov (!%p5390_p9), 1.0|1.0  }
 0xe45   :  { %5748 = vmatprep.subr.bf16.mxu0 %v6587_v31 }
 0xe47   :  { %3194 = vmatmul.mubr.bf16.vlgmr.msra.gmra.mrb[0].mxu0 %v2968_v4  ;;  %3235 = vmatmul.mubr.bf16.vlgmr.msra.gmra.mrb[0].mxu1 %v2968_v4 }
 0xe48   :  { %5764 = vmatprep.mubr.msk.bf16.mxu0 %vm6588_vm0, %v6587_v31  ;;  %5749 = vmatpush3.bf16.msra.mxu0 %v6307_v7 }
 0xe49   :  { %5750 = vmatprep.subr.bf16.mxu0 %v6587_v31 }
 0xe4c   :  { %5751 = vmatpush3.bf16.msra.mxu0 %v6308_v8 }
 0xe4d   :  { %5752 = vmatprep.subr.bf16.mxu0 %v6587_v31 }
 0xe50   :  { %5753 = vmatpush3.bf16.msra.mxu0 %v6309_v9 }
 0xe51   :  { %5754 = vmatprep.subr.bf16.mxu0 %v6587_v31 }
 0xe54   :  { %5755 = vmatpush3.bf16.msra.mxu0 %v6310_v10 }
 0xe55   :  { %5756 = vmatprep.subr.bf16.mxu0 %v6587_v31 }
 0xe58   :  { %5757 = vmatpush3.bf16.msra.mxu0 %v6311_v11 }
 0xe59   :  { %5758 = vmatprep.subr.bf16.mxu0 %v6587_v31 }
 0xe5c   :  { %5759 = vmatpush3.bf16.msra.mxu0 %v6312_v12 }
 0xe5d   :  { %5760 = vmatprep.subr.bf16.mxu0 %v6587_v31 }
 0xe60   :  { %5761 = vmatpush3.bf16.msra.mxu0 %v6313_v13 }
 0xe61   :  { %5762 = vmatprep.subr.bf16.mxu0 %v6587_v31 }
 0xe64   :  { %5763 = vmatpush3.bf16.msra.mxu0 %v6314_v14 }
 0xe65   :  { %5768 = vmatprep.subr.bf16.mxu0 (!%p5390_p9), %v6595_v0 }
 0xf1a   :  { %v3195_v15 = vpop.f32.mrb[0].mxu0  ;;  %v3236_v21 = vpop.f32.mrb[0].mxu1 }
 0xf1b   :  { %v5377_v16 = vmul.f32 -1.442695, %v3195_v15  ;;  %v3197_v17 = vpop.f32.mrb[1].mxu0  ;;  %v3238_v22 = vpop.f32.mrb[1].mxu1 }
 0xf1c   :  { %v5378_v18 = vmul.f32 -1.442695, %v3197_v17  ;;  %v3199_v19 = vpop.f32.mrb[2].mxu0  ;;  %v3240_v23 = vpop.f32.mrb[2].mxu1  ;;  %v5379_v27 = vmul.f32 -1.442695, %v3238_v22 }
 0xf1d   :  { %6315 = vpow2.f32 %v5377_v16  ;;  %v3200_v20 = vpop.f32.mrb[3].mxu0  ;;  %v3241_v24 = vpop.f32.mrb[3].mxu1 }
 0xf1e   :  { %6317 = vpow2.f32 %v5378_v18 }
 0xf1f   :  { %6319 = vpow2.f32 %v5379_v27 }
 0xf20   :  { %6321 = vtanh.f32 %v3236_v21 }
 0xf27   :  { %v6316_v28 = vpop.eup %6315 }
 0xf28   :  { %v6318_v29 = vpop.eup %6317  ;;  %v3246_v30 = vadd.f32 1.0, %v6316_v28 }
 0xf29   :  { %v3252_v26 = vadd.f32 1.0, %v6318_v29  ;;  %v6320_v34 = vpop.eup %6319 }
 0xf2a   :  { %6323 = vrcp.f32 %v3246_v30  ;;  %v6322_v57 = vpop.eup %6321  ;;  %v3259_v63 = vadd.f32 1.0, %v6320_v34 }
 0xf2b   :  { %6325 = vrcp.f32 %v3252_v26 }
 0xf2c   :  { %6327 = vrcp.f32 %v3259_v63 }
 0xf34   :  { %v6324_v62 = vpop.eup %6323 }
 0xf35   :  { %v6326_v25 = vpop.eup %6325  ;;  %v3264_v33 = vmul.f32 %v6324_v62, %v6322_v57 }
 0xf36   :  { %v3263_v35 = vmul.f32 %v6326_v25, %v3262_v61  ;;  %v6328_v37 = vpop.eup %6327 }
 0xf38   :  { %v3265_v36 = vadd.f32 %v3264_v33, %v3263_v35 }
 0xf3a   :  { %6329 = vtanh.f32 %v3265_v36  ;;  %3269 = vst [vmem:[#allocation3] sm:$0xff] %v3265_v36 }
 0xf44   :  { %v6330_v38 = vpop.eup %6329 }
 0xf45   :  { %v3267_v39 = vmul.f32 %v6330_v38, %v6328_v37 }
 0xf47   :  { %3268 = vst [vmem:[#allocation2] sm:$0xff] %v3267_v39  ;;  %v3270_v40 = vpack.c.bf16 %v3267_v39, %v3267_v39 }
 0xf49   :  { %5765 = vmatmul.mubr.bf16.vlgmr.msra.gmra.mrb[4].mxu0 %v3270_v40 }
 0xf4a   :  { %5769 = vmatpush3.bf16.msra.mxu0 (!%p5390_p9), %v6331_v46  ;;  %5784 = vmatprep.mubr.msk.bf16.mxu0 (!%p5390_p9), %vm6596_vm10, %v6595_v0 }
 0xf4b   :  { %5770 = vmatprep.subr.bf16.mxu0 (!%p5390_p9), %v6595_v0 }
 0xf4e   :  { %5771 = vmatpush3.bf16.msra.mxu0 (!%p5390_p9), %v6332_v47 }
 0xf4f   :  { %5772 = vmatprep.subr.bf16.mxu0 (!%p5390_p9), %v6595_v0 }
 0xf52   :  { %5773 = vmatpush3.bf16.msra.mxu0 (!%p5390_p9), %v6333_v48 }
 0xf53   :  { %5774 = vmatprep.subr.bf16.mxu0 (!%p5390_p9), %v6595_v0 }
 0xf56   :  { %5775 = vmatpush3.bf16.msra.mxu0 (!%p5390_p9), %v6334_v49 }
 0xf57   :  { %5776 = vmatprep.subr.bf16.mxu0 (!%p5390_p9), %v6595_v0 }
 0xf5a   :  { %5777 = vmatpush3.bf16.msra.mxu0 (!%p5390_p9), %v6335_v50 }
 0xf5b   :  { %5778 = vmatprep.subr.bf16.mxu0 (!%p5390_p9), %v6595_v0 }
 0xf5e   :  { %5779 = vmatpush3.bf16.msra.mxu0 (!%p5390_p9), %v6336_v51 }
 0xf5f   :  { %5780 = vmatprep.subr.bf16.mxu0 (!%p5390_p9), %v6595_v0 }
 0xf62   :  { %5781 = vmatpush3.bf16.msra.mxu0 (!%p5390_p9), %v6337_v52 }
 0xf63   :  { %5782 = vmatprep.subr.bf16.mxu0 (!%p5390_p9), %v6595_v0 }
 0xf66   :  { %5783 = vmatpush3.bf16.msra.mxu0 (!%p5390_p9), %v6338_v53 }
0x1019   :  { %3381 = sbr.rel (%p5390_p9) target bundleno = 4630 (0x1216), region = 49 }
0x101c   :  { %v3369_v41 = vpop.f32.mrb[4].mxu0 }
0x101d   :  { %v3370_v42 = vadd.f32 %v7352_v32, %v3369_v41  ;;  %v5766_v43 = vpop.f32.mrb[5].mxu0 }
0x101e   :  { %v3372_v44 = vpop.f32.mrb[6].mxu0 }
0x101f   :  { %5388 = vst [vmem:[%s8181_s8 + $0x10] sm:$0xff] %v3370_v42  ;;  %v5767_v45 = vpop.f32.mrb[7].mxu0  ;;  %3385 = vmax.xlane.f32.xlu0 (!%p5390_p9), %v3370_v42 }
0x10ac   :  { %v3386_v56 = vpop.xlane.xlu0 %3385 }
0x10ad   :  { %vm3387_vm9 = vcmp.ge.f32.partialorder %v3370_v42, %v3386_v56 }
0x10ae   :  { %v3388_v58 = vsel %vm3387_vm9, %v3384_v55, 128.0 }
0x10af   :  { %3389 = vmin.xlane.f32.xlu0 %v3388_v58 }
0x113c   :  { %v3390_v59 = vpop.xlane.xlu0 %3389 }
0x113d   :  { %vm3391_vm11 = vcmp.eq.f32.partialorder %v3384_v55, %v3390_v59 }
0x113e   :  { %vm5400_vm12 = vmpackc.low %vm3391_vm11, %vm3391_vm11 }
0x113f   :  { %5785 = vmatmul.mubr.msk.bf16.vlgmr.msra.gmra.mrb[0].mxu0 %vm5400_vm12, %v6597_v60 }
0x1212   :  { %v3493_v1 = vpop.f32.mrb[0].mxu0 }
0x1213   :  { %3499 = vst [vmem:[#allocation4] sm:$0xff] %v3493_v1  ;;  %v5786_v3 = vpop.f32.mrb[1].mxu0 }
0x1214   :  { %v3496_v4 = vpop.f32.mrb[2].mxu0 }
0x1215   :  { %v5787_v5 = vpop.f32.mrb[3].mxu0 }
0x1216 PF:  { %s5402_s9 = sld [smem:[#allocation6 + $0x3]] }
0x121c   :  { %p5403_p10 = scmp.eq.s32.totalorder %s5402_s9, 0 }
0x121d   :  { %v5404_v7 = vld [vmem:[%s8175_s2 + $0x18] sm:$0xff] (!%p5403_p10) }
0x121e   :  { %3504 = sbr.rel (%p5403_p10) target bundleno = 4645 (0x1225), region = 53  ;;  %3507 = vst [vmem:[#allocation4] sm:$0xff] (!%p5403_p10), %v5404_v7 }
0x1225 PF:  { %v6339_v8 = vld [vmem:[%s8177_s4 + $0x4] ss:$16 sps:$4 sm:$0xff]   ;;  %3736 = vmatprep.mubr.bf16.mxu0 %v6586_v2  ;;  %3777 = vmatprep.mubr.bf16.mxu1 %v6586_v2  ;;  %v6341_v9 = vld [vmem:[%s8177_s4] ss:$16 sps:$4 sm:$0xff]   ;;  %v6350_v13 = vld [vmem:[%s8177_s4 + $0xc] ss:$16 sps:$4 sm:$0xff]  }
0x1226   :  { %3704 = vmatprep.subr.bf16.mxu0 %v6339_v8  ;;  %v6342_v10 = vld [vmem:[%s8177_s4 + $0x24] ss:$16 sps:$4 sm:$0xff]   ;;  %v6344_v11 = vld [vmem:[%s8177_s4 + $0x20] ss:$16 sps:$4 sm:$0xff]   ;;  %v6353_v14 = vld [vmem:[%s8177_s4 + $0x8] ss:$16 sps:$4 sm:$0xff]   ;;  %3745 = vmatprep.subr.bf16.mxu1 %v6350_v13 }
0x1227   :  { %3705 = vmatpush1.bf16.msra.mxu0 %v6341_v9  ;;  %v6345_v12 = vld [vmem:[%s8177_s4 + $0x44] ss:$16 sps:$4 sm:$0xff]   ;;  %v6347_v15 = vld [vmem:[%s8177_s4 + $0x40] ss:$16 sps:$4 sm:$0xff]   ;;  %3746 = vmatpush1.bf16.msra.mxu1 %v6353_v14  ;;  %v6356_v17 = vld [vmem:[%s8177_s4 + $0x2c] ss:$16 sps:$4 sm:$0xff]  }
0x1228   :  { %3706 = vmatprep.subr.bf16.mxu0 %v6342_v10  ;;  %v6348_v16 = vld [vmem:[%s8177_s4 + $0x64] ss:$16 sps:$4 sm:$0xff]   ;;  %v6359_v18 = vld [vmem:[%s8177_s4 + $0x28] ss:$16 sps:$4 sm:$0xff]   ;;  %3747 = vmatprep.subr.bf16.mxu1 %v6356_v17  ;;  %v6352_v19 = vld [vmem:[%s8177_s4 + $0x60] ss:$16 sps:$4 sm:$0xff]  }
0x1229   :  { %v6354_v20 = vld [vmem:[%s8177_s4 + $0x84] ss:$16 sps:$4 sm:$0xff]   ;;  %v6362_v21 = vld [vmem:[%s8177_s4 + $0x4c] ss:$16 sps:$4 sm:$0xff]   ;;  %v6365_v22 = vld [vmem:[%s8177_s4 + $0x48] ss:$16 sps:$4 sm:$0xff]  }
0x122a   :  { %v6368_v23 = vld [vmem:[%s8177_s4 + $0x6c] ss:$16 sps:$4 sm:$0xff]   ;;  %v6358_v24 = vld [vmem:[%s8177_s4 + $0x80] ss:$16 sps:$4 sm:$0xff]   ;;  %v6360_v27 = vld [vmem:[%s8177_s4 + $0xa4] ss:$16 sps:$4 sm:$0xff]  }
0x122b   :  { %3707 = vmatpush1.bf16.msra.mxu0 %v6344_v11  ;;  %3748 = vmatpush1.bf16.msra.mxu1 %v6359_v18  ;;  %v6371_v28 = vld [vmem:[%s8177_s4 + $0x68] ss:$16 sps:$4 sm:$0xff]   ;;  %v6374_v29 = vld [vmem:[%s8177_s4 + $0x8c] ss:$16 sps:$4 sm:$0xff]   ;;  %v6364_v30 = vld [vmem:[%s8177_s4 + $0xa0] ss:$16 sps:$4 sm:$0xff]  }
0x122c   :  { %3708 = vmatprep.subr.bf16.mxu0 %v6345_v12  ;;  %3749 = vmatprep.subr.bf16.mxu1 %v6362_v21  ;;  %v6366_v26 = vld [vmem:[%s8177_s4 + $0xc4] ss:$16 sps:$4 sm:$0xff]   ;;  %v6377_v34 = vld [vmem:[%s8177_s4 + $0x88] ss:$16 sps:$4 sm:$0xff]   ;;  %v6370_v57 = vld [vmem:[%s8177_s4 + $0xc0] ss:$16 sps:$4 sm:$0xff]  }
0x122d   :  { %v3508_v61 = vld [vmem:[#allocation4] sm:$0xff]  ;;  %v3509_v62 = vld [vmem:[#allocation2] sm:$0xff]  ;;  %v6378_v63 = vld [vmem:[%s8177_s4 + $0xac] ss:$16 sps:$4 sm:$0xff]   ;;  %s5449_s13 = sld [smem:[#allocation6 + $0x4]] }
0x122e   :  { %v6372_v25 = vld [vmem:[%s8177_s4 + $0xe4] ss:$16 sps:$4 sm:$0xff]   ;;  %v6380_v33 = vld [vmem:[%s8177_s4 + $0xa8] ss:$16 sps:$4 sm:$0xff]   ;;  %v6381_v35 = vld [vmem:[%s8177_s4 + $0xcc] ss:$16 sps:$4 sm:$0xff]   ;;  %v3510_v36 = vadd.f32 %v3509_v62, %v3508_v61 }
0x122f   :  { %3709 = vmatpush1.bf16.msra.mxu0 %v6347_v15  ;;  %3750 = vmatpush1.bf16.msra.mxu1 %v6365_v22  ;;  %v6376_v37 = vld [vmem:[%s8177_s4 + $0xe0] ss:$16 sps:$4 sm:$0xff]   ;;  %v6383_v38 = vld [vmem:[%s8177_s4 + $0xc8] ss:$16 sps:$4 sm:$0xff]   ;;  %v6384_v39 = vld [vmem:[%s8177_s4 + $0xec] ss:$16 sps:$4 sm:$0xff]  }
0x1230   :  { %3710 = vmatprep.subr.bf16.mxu0 %v6348_v16  ;;  %3751 = vmatprep.subr.bf16.mxu1 %v6368_v23  ;;  %v3511_v40 = vpack.c.bf16 %v3510_v36, %v3510_v36  ;;  %v6386_v41 = vld [vmem:[%s8177_s4 + $0xe8] ss:$16 sps:$4 sm:$0xff]   ;;  %v6387_v42 = vld [vmem:[%s8178_s5] sm:$0xff]   ;;  %v6389_v44 = vld [vmem:[%s8178_s5 + $0x10] sm:$0xff]  }
0x1231   :  { %v6388_v43 = vld [vmem:[%s8178_s5 + $0x8] sm:$0xff]   ;;  %v6390_v45 = vld [vmem:[%s8178_s5 + $0x18] sm:$0xff]   ;;  %v6391_v46 = vld [vmem:[%s8178_s5 + $0x20] sm:$0xff]  }
0x1232   :  { %v6392_v0 = vld [vmem:[%s8178_s5 + $0x28] sm:$0xff]   ;;  %v6393_v47 = vld [vmem:[%s8178_s5 + $0x30] sm:$0xff]   ;;  %v6394_v48 = vld [vmem:[%s8178_s5 + $0x38] sm:$0xff]  }
0x1233   :  { %3711 = vmatpush1.bf16.msra.mxu0 %v6352_v19  ;;  %3752 = vmatpush1.bf16.msra.mxu1 %v6371_v28  ;;  %v3805_v8 = vld [vmem:[#allocation3] sm:$0xff]  ;;  %p5450_p11 = scmp.ne.s32.totalorder %s5449_s13, 0 }
0x1234   :  { %3712 = vmatprep.subr.bf16.mxu0 %v6354_v20  ;;  %3753 = vmatprep.subr.bf16.mxu1 %v6374_v29  ;;  %v6412_v28 = vld [vmem:[%s8180_s7 + $0x8] sm:$0xff] (!%p5450_p11)   ;;  %v6413_v29 = vld [vmem:[%s8180_s7 + $0x10] sm:$0xff] (!%p5450_p11)   ;;  %v6418_v61 = vld [vmem:[%s8180_s7 + $0x38] sm:$0xff] (!%p5450_p11)   ;;  %v3925_v62 = vlaneseq (!%p5450_p11)  ;;  %vm6599_vm14 = vmmov (!%p5450_p11), 0  }
0x1237   :  { %3713 = vmatpush1.bf16.msra.mxu0 %v6358_v24  ;;  %3754 = vmatpush1.bf16.msra.mxu1 %v6377_v34  ;;  %v6411_v24 = vld [vmem:[%s8180_s7] sm:$0xff] (!%p5450_p11)   ;;  %v6416_v34 = vld [vmem:[%s8180_s7 + $0x28] sm:$0xff] (!%p5450_p11)  }
0x1238   :  { %3714 = vmatprep.subr.bf16.mxu0 %v6360_v27  ;;  %3755 = vmatprep.subr.bf16.mxu1 %v6378_v63  ;;  %v6598_v27 = vmov (!%p5450_p11), 0.0   ;;  %v3926_v63 = vand.u32 (!%p5450_p11), 127, %v3925_v62 }
0x123b   :  { %3715 = vmatpush1.bf16.msra.mxu0 %v6364_v30  ;;  %3756 = vmatpush1.bf16.msra.mxu1 %v6380_v33  ;;  %v6414_v30 = vld [vmem:[%s8180_s7 + $0x18] sm:$0xff] (!%p5450_p11)  }
0x123c   :  { %3716 = vmatprep.subr.bf16.mxu0 %v6366_v26  ;;  %3757 = vmatprep.subr.bf16.mxu1 %v6381_v35  ;;  %v6415_v26 = vld [vmem:[%s8180_s7 + $0x20] sm:$0xff] (!%p5450_p11)  }
0x123f   :  { %3717 = vmatpush1.bf16.msra.mxu0 %v6370_v57  ;;  %3758 = vmatpush1.bf16.msra.mxu1 %v6383_v38  ;;  %v6417_v57 = vld [vmem:[%s8180_s7 + $0x30] sm:$0xff] (!%p5450_p11)  }
0x1240   :  { %3718 = vmatprep.subr.bf16.mxu0 %v6372_v25  ;;  %3759 = vmatprep.subr.bf16.mxu1 %v6384_v39  ;;  %v3927_v25 = vcvt.s32.f32 (!%p5450_p11), %v3926_v63 }
0x1243   :  { %3719 = vmatpush1.bf16.msra.mxu0 %v6376_v37  ;;  %3760 = vmatpush1.bf16.msra.mxu1 %v6386_v41  ;;  %v6600_v37 = vmov (!%p5450_p11), 1.0|1.0  }
0x1244   :  { %5788 = vmatprep.subr.bf16.mxu0 %v6587_v31 }
0x1246   :  { %3737 = vmatmul.mubr.bf16.vlgmr.msra.gmra.mrb[0].mxu0 %v3511_v40  ;;  %3778 = vmatmul.mubr.bf16.vlgmr.msra.gmra.mrb[0].mxu1 %v3511_v40 }
0x1247   :  { %5804 = vmatprep.mubr.msk.bf16.mxu0 %vm6588_vm0, %v6587_v31  ;;  %5789 = vmatpush3.bf16.msra.mxu0 %v6387_v42 }
0x1248   :  { %5790 = vmatprep.subr.bf16.mxu0 %v6587_v31 }
0x124b   :  { %5791 = vmatpush3.bf16.msra.mxu0 %v6388_v43 }
0x124c   :  { %5792 = vmatprep.subr.bf16.mxu0 %v6587_v31 }
0x124f   :  { %5793 = vmatpush3.bf16.msra.mxu0 %v6389_v44 }
0x1250   :  { %5794 = vmatprep.subr.bf16.mxu0 %v6587_v31 }
0x1253   :  { %5795 = vmatpush3.bf16.msra.mxu0 %v6390_v45 }
0x1254   :  { %5796 = vmatprep.subr.bf16.mxu0 %v6587_v31 }
0x1257   :  { %5797 = vmatpush3.bf16.msra.mxu0 %v6391_v46 }
0x1258   :  { %5798 = vmatprep.subr.bf16.mxu0 %v6587_v31 }
0x125b   :  { %5799 = vmatpush3.bf16.msra.mxu0 %v6392_v0 }
0x125c   :  { %5800 = vmatprep.subr.bf16.mxu0 %v6587_v31 }
0x125f   :  { %5801 = vmatpush3.bf16.msra.mxu0 %v6393_v47 }
0x1260   :  { %5802 = vmatprep.subr.bf16.mxu0 %v6587_v31 }
0x1263   :  { %5803 = vmatpush3.bf16.msra.mxu0 %v6394_v48 }
0x1264   :  { %5808 = vmatprep.subr.bf16.mxu0 (!%p5450_p11), %v6598_v27 }
0x1319   :  { %v3738_v49 = vpop.f32.mrb[0].mxu0  ;;  %v3779_v54 = vpop.f32.mrb[0].mxu1 }
0x131a   :  { %v5437_v50 = vmul.f32 -1.442695, %v3738_v49  ;;  %v3740_v51 = vpop.f32.mrb[1].mxu0  ;;  %v3781_v55 = vpop.f32.mrb[1].mxu1 }
0x131b   :  { %v5438_v52 = vmul.f32 -1.442695, %v3740_v51  ;;  %v3742_v53 = vpop.f32.mrb[2].mxu0  ;;  %v3783_v56 = vpop.f32.mrb[2].mxu1  ;;  %v5439_v59 = vmul.f32 -1.442695, %v3781_v55 }
0x131c   :  { %6395 = vpow2.f32 %v5437_v50  ;;  %v3743_v6 = vpop.f32.mrb[3].mxu0  ;;  %v3784_v58 = vpop.f32.mrb[3].mxu1 }
0x131d   :  { %6397 = vpow2.f32 %v5438_v52 }
0x131e   :  { %6399 = vpow2.f32 %v5439_v59 }
0x131f   :  { %6401 = vtanh.f32 %v3779_v54 }
0x1326   :  { %v6396_v60 = vpop.eup %6395 }
0x1327   :  { %v6398_v1 = vpop.eup %6397  ;;  %v3789_v3 = vadd.f32 1.0, %v6396_v60 }
0x1328   :  { %v3795_v4 = vadd.f32 1.0, %v6398_v1  ;;  %v6400_v5 = vpop.eup %6399 }
0x1329   :  { %6403 = vrcp.f32 %v3789_v3  ;;  %v6402_v7 = vpop.eup %6401  ;;  %v3802_v10 = vadd.f32 1.0, %v6400_v5 }
0x132a   :  { %6405 = vrcp.f32 %v3795_v4 }
0x132b   :  { %6407 = vrcp.f32 %v3802_v10 }
0x1333   :  { %v6404_v9 = vpop.eup %6403 }
0x1334   :  { %v6406_v11 = vpop.eup %6405  ;;  %v3807_v12 = vmul.f32 %v6404_v9, %v6402_v7 }
0x1335   :  { %v3806_v13 = vmul.f32 %v6406_v11, %v3805_v8  ;;  %v6408_v15 = vpop.eup %6407 }
0x1337   :  { %v3808_v14 = vadd.f32 %v3807_v12, %v3806_v13 }
0x1339   :  { %6409 = vtanh.f32 %v3808_v14  ;;  %3812 = vst [vmem:[#allocation3] sm:$0xff] %v3808_v14 }
0x1343   :  { %v6410_v16 = vpop.eup %6409 }
0x1344   :  { %v3810_v17 = vmul.f32 %v6410_v16, %v6408_v15 }
0x1346   :  { %3811 = vst [vmem:[#allocation2] sm:$0xff] %v3810_v17  ;;  %v3813_v18 = vpack.c.bf16 %v3810_v17, %v3810_v17 }
0x1348   :  { %5805 = vmatmul.mubr.bf16.vlgmr.msra.gmra.mrb[4].mxu0 %v3813_v18 }
0x1349   :  { %5809 = vmatpush3.bf16.msra.mxu0 (!%p5450_p11), %v6411_v24  ;;  %5824 = vmatprep.mubr.msk.bf16.mxu0 (!%p5450_p11), %vm6599_vm14, %v6598_v27 }
0x134a   :  { %5810 = vmatprep.subr.bf16.mxu0 (!%p5450_p11), %v6598_v27 }
0x134d   :  { %5811 = vmatpush3.bf16.msra.mxu0 (!%p5450_p11), %v6412_v28 }
0x134e   :  { %5812 = vmatprep.subr.bf16.mxu0 (!%p5450_p11), %v6598_v27 }
0x1351   :  { %5813 = vmatpush3.bf16.msra.mxu0 (!%p5450_p11), %v6413_v29 }
0x1352   :  { %5814 = vmatprep.subr.bf16.mxu0 (!%p5450_p11), %v6598_v27 }
0x1355   :  { %5815 = vmatpush3.bf16.msra.mxu0 (!%p5450_p11), %v6414_v30 }
0x1356   :  { %5816 = vmatprep.subr.bf16.mxu0 (!%p5450_p11), %v6598_v27 }
0x1359   :  { %5817 = vmatpush3.bf16.msra.mxu0 (!%p5450_p11), %v6415_v26 }
0x135a   :  { %5818 = vmatprep.subr.bf16.mxu0 (!%p5450_p11), %v6598_v27 }
0x135d   :  { %5819 = vmatpush3.bf16.msra.mxu0 (!%p5450_p11), %v6416_v34 }
0x135e   :  { %5820 = vmatprep.subr.bf16.mxu0 (!%p5450_p11), %v6598_v27 }
0x1361   :  { %5821 = vmatpush3.bf16.msra.mxu0 (!%p5450_p11), %v6417_v57 }
0x1362   :  { %5822 = vmatprep.subr.bf16.mxu0 (!%p5450_p11), %v6598_v27 }
0x1365   :  { %5823 = vmatpush3.bf16.msra.mxu0 (!%p5450_p11), %v6418_v61 }
0x1418   :  { %3924 = sbr.rel (%p5450_p11) target bundleno = 5653 (0x1615), region = 57 }
0x141b   :  { %v3912_v19 = vpop.f32.mrb[4].mxu0 }
0x141c   :  { %v3913_v20 = vadd.f32 %v7352_v32, %v3912_v19  ;;  %v5806_v21 = vpop.f32.mrb[5].mxu0 }
0x141d   :  { %v3915_v22 = vpop.f32.mrb[6].mxu0 }
0x141e   :  { %5448 = vst [vmem:[%s8181_s8 + $0x18] sm:$0xff] %v3913_v20  ;;  %v5807_v23 = vpop.f32.mrb[7].mxu0  ;;  %3928 = vmax.xlane.f32.xlu0 (!%p5450_p11), %v3913_v20 }
0x14ab   :  { %v3929_v33 = vpop.xlane.xlu0 %3928 }
0x14ac   :  { %vm3930_vm13 = vcmp.ge.f32.partialorder %v3913_v20, %v3929_v33 }
0x14ad   :  { %v3931_v35 = vsel %vm3930_vm13, %v3927_v25, 128.0 }
0x14ae   :  { %3932 = vmin.xlane.f32.xlu0 %v3931_v35 }
0x153b   :  { %v3933_v36 = vpop.xlane.xlu0 %3932 }
0x153c   :  { %vm3934_vm15 = vcmp.eq.f32.partialorder %v3927_v25, %v3933_v36 }
0x153d   :  { %vm5460_vm1 = vmpackc.low %vm3934_vm15, %vm3934_vm15 }
0x153e   :  { %5825 = vmatmul.mubr.msk.bf16.vlgmr.msra.gmra.mrb[0].mxu0 %vm5460_vm1, %v6600_v37 }
0x1611   :  { %v4036_v38 = vpop.f32.mrb[0].mxu0 }
0x1612   :  { %4042 = vst [vmem:[#allocation4] sm:$0xff] %v4036_v38  ;;  %v5826_v39 = vpop.f32.mrb[1].mxu0 }
0x1613   :  { %v4039_v40 = vpop.f32.mrb[2].mxu0 }
0x1614   :  { %v5827_v41 = vpop.f32.mrb[3].mxu0 }
0x1615 PF:  { %s5462_s3 = sld [smem:[#allocation6 + $0x4]] }
0x161b   :  { %p5463_p12 = scmp.eq.s32.totalorder %s5462_s3, 0 }
0x161c   :  { %v5464_v42 = vld [vmem:[%s8175_s2 + $0x20] sm:$0xff] (!%p5463_p12) }
0x161d   :  { %4047 = sbr.rel (%p5463_p12) target bundleno = 5668 (0x1624), region = 61  ;;  %4050 = vst [vmem:[#allocation4] sm:$0xff] (!%p5463_p12), %v5464_v42 }
0x1624 PF:  { %v6419_v43 = vld [vmem:[%s8177_s4 + $0x4] ss:$16 sps:$4 sm:$0xff]   ;;  %4279 = vmatprep.mubr.bf16.mxu0 %v6586_v2  ;;  %4320 = vmatprep.mubr.bf16.mxu1 %v6586_v2  ;;  %v6421_v44 = vld [vmem:[%s8177_s4] ss:$16 sps:$4 sm:$0xff]   ;;  %v6430_v47 = vld [vmem:[%s8177_s4 + $0xc] ss:$16 sps:$4 sm:$0xff]  }
0x1625   :  { %4247 = vmatprep.subr.bf16.mxu0 %v6419_v43  ;;  %v6422_v45 = vld [vmem:[%s8177_s4 + $0x24] ss:$16 sps:$4 sm:$0xff]   ;;  %v6424_v46 = vld [vmem:[%s8177_s4 + $0x20] ss:$16 sps:$4 sm:$0xff]   ;;  %v6433_v48 = vld [vmem:[%s8177_s4 + $0x8] ss:$16 sps:$4 sm:$0xff]   ;;  %4288 = vmatprep.subr.bf16.mxu1 %v6430_v47 }
0x1626   :  { %4248 = vmatpush1.bf16.msra.mxu0 %v6421_v44  ;;  %v6425_v0 = vld [vmem:[%s8177_s4 + $0x44] ss:$16 sps:$4 sm:$0xff]   ;;  %v6427_v49 = vld [vmem:[%s8177_s4 + $0x40] ss:$16 sps:$4 sm:$0xff]   ;;  %4289 = vmatpush1.bf16.msra.mxu1 %v6433_v48  ;;  %v6436_v51 = vld [vmem:[%s8177_s4 + $0x2c] ss:$16 sps:$4 sm:$0xff]  }
0x1627   :  { %4249 = vmatprep.subr.bf16.mxu0 %v6422_v45  ;;  %v6428_v50 = vld [vmem:[%s8177_s4 + $0x64] ss:$16 sps:$4 sm:$0xff]   ;;  %v6439_v52 = vld [vmem:[%s8177_s4 + $0x28] ss:$16 sps:$4 sm:$0xff]   ;;  %4290 = vmatprep.subr.bf16.mxu1 %v6436_v51  ;;  %v6432_v53 = vld [vmem:[%s8177_s4 + $0x60] ss:$16 sps:$4 sm:$0xff]  }
0x1628   :  { %v6434_v6 = vld [vmem:[%s8177_s4 + $0x84] ss:$16 sps:$4 sm:$0xff]   ;;  %v6442_v54 = vld [vmem:[%s8177_s4 + $0x4c] ss:$16 sps:$4 sm:$0xff]   ;;  %v6445_v55 = vld [vmem:[%s8177_s4 + $0x48] ss:$16 sps:$4 sm:$0xff]  }
0x1629   :  { %v6448_v56 = vld [vmem:[%s8177_s4 + $0x6c] ss:$16 sps:$4 sm:$0xff]   ;;  %v6438_v58 = vld [vmem:[%s8177_s4 + $0x80] ss:$16 sps:$4 sm:$0xff]   ;;  %v6440_v59 = vld [vmem:[%s8177_s4 + $0xa4] ss:$16 sps:$4 sm:$0xff]  }
0x162a   :  { %4250 = vmatpush1.bf16.msra.mxu0 %v6424_v46  ;;  %4291 = vmatpush1.bf16.msra.mxu1 %v6439_v52  ;;  %v6451_v60 = vld [vmem:[%s8177_s4 + $0x68] ss:$16 sps:$4 sm:$0xff]   ;;  %v6454_v1 = vld [vmem:[%s8177_s4 + $0x8c] ss:$16 sps:$4 sm:$0xff]   ;;  %v6444_v3 = vld [vmem:[%s8177_s4 + $0xa0] ss:$16 sps:$4 sm:$0xff]  }
0x162b   :  { %4251 = vmatprep.subr.bf16.mxu0 %v6425_v0  ;;  %4292 = vmatprep.subr.bf16.mxu1 %v6442_v54  ;;  %v6446_v4 = vld [vmem:[%s8177_s4 + $0xc4] ss:$16 sps:$4 sm:$0xff]   ;;  %v6457_v5 = vld [vmem:[%s8177_s4 + $0x88] ss:$16 sps:$4 sm:$0xff]   ;;  %v6450_v7 = vld [vmem:[%s8177_s4 + $0xc0] ss:$16 sps:$4 sm:$0xff]  }
0x162c   :  { %v4051_v8 = vld [vmem:[#allocation4] sm:$0xff]  ;;  %v4052_v9 = vld [vmem:[#allocation2] sm:$0xff]  ;;  %v6458_v10 = vld [vmem:[%s8177_s4 + $0xac] ss:$16 sps:$4 sm:$0xff]   ;;  %s5509_s12 = sld [smem:[#allocation6 + $0x5]] }
0x162d   :  { %v6452_v11 = vld [vmem:[%s8177_s4 + $0xe4] ss:$16 sps:$4 sm:$0xff]   ;;  %v6460_v12 = vld [vmem:[%s8177_s4 + $0xa8] ss:$16 sps:$4 sm:$0xff]   ;;  %v6461_v13 = vld [vmem:[%s8177_s4 + $0xcc] ss:$16 sps:$4 sm:$0xff]   ;;  %v4053_v14 = vadd.f32 %v4052_v9, %v4051_v8 }
0x162e   :  { %4252 = vmatpush1.bf16.msra.mxu0 %v6427_v49  ;;  %4293 = vmatpush1.bf16.msra.mxu1 %v6445_v55  ;;  %v6456_v15 = vld [vmem:[%s8177_s4 + $0xe0] ss:$16 sps:$4 sm:$0xff]   ;;  %v6463_v16 = vld [vmem:[%s8177_s4 + $0xc8] ss:$16 sps:$4 sm:$0xff]   ;;  %v6464_v17 = vld [vmem:[%s8177_s4 + $0xec] ss:$16 sps:$4 sm:$0xff]  }
0x162f   :  { %4253 = vmatprep.subr.bf16.mxu0 %v6428_v50  ;;  %4294 = vmatprep.subr.bf16.mxu1 %v6448_v56  ;;  %v4054_v18 = vpack.c.bf16 %v4053_v14, %v4053_v14  ;;  %v6466_v19 = vld [vmem:[%s8177_s4 + $0xe8] ss:$16 sps:$4 sm:$0xff]   ;;  %v6467_v20 = vld [vmem:[%s8178_s5] sm:$0xff]   ;;  %v6469_v22 = vld [vmem:[%s8178_s5 + $0x10] sm:$0xff]  }
0x1630   :  { %v6468_v21 = vld [vmem:[%s8178_s5 + $0x8] sm:$0xff]   ;;  %v6470_v23 = vld [vmem:[%s8178_s5 + $0x18] sm:$0xff]   ;;  %v6471_v24 = vld [vmem:[%s8178_s5 + $0x20] sm:$0xff]  }
0x1631   :  { %v6472_v27 = vld [vmem:[%s8178_s5 + $0x28] sm:$0xff]   ;;  %v6473_v28 = vld [vmem:[%s8178_s5 + $0x30] sm:$0xff]   ;;  %v6474_v29 = vld [vmem:[%s8178_s5 + $0x38] sm:$0xff]  }
0x1632   :  { %4254 = vmatpush1.bf16.msra.mxu0 %v6432_v53  ;;  %4295 = vmatpush1.bf16.msra.mxu1 %v6451_v60  ;;  %v4348_v43 = vld [vmem:[#allocation3] sm:$0xff]  ;;  %p5510_p13 = scmp.ne.s32.totalorder %s5509_s12, 0 }
0x1633   :  { %4255 = vmatprep.subr.bf16.mxu0 %v6434_v6  ;;  %4296 = vmatprep.subr.bf16.mxu1 %v6454_v1  ;;  %v6492_v60 = vld [vmem:[%s8180_s7 + $0x8] sm:$0xff] (!%p5510_p13)   ;;  %v6493_v1 = vld [vmem:[%s8180_s7 + $0x10] sm:$0xff] (!%p5510_p13)   ;;  %v6498_v8 = vld [vmem:[%s8180_s7 + $0x38] sm:$0xff] (!%p5510_p13)   ;;  %v4468_v9 = vlaneseq (!%p5510_p13)  ;;  %vm6602_vm3 = vmmov (!%p5510_p13), 0  }
0x1636   :  { %4256 = vmatpush1.bf16.msra.mxu0 %v6438_v58  ;;  %4297 = vmatpush1.bf16.msra.mxu1 %v6457_v5  ;;  %v6491_v58 = vld [vmem:[%s8180_s7] sm:$0xff] (!%p5510_p13)   ;;  %v6496_v5 = vld [vmem:[%s8180_s7 + $0x28] sm:$0xff] (!%p5510_p13)  }
0x1637   :  { %4257 = vmatprep.subr.bf16.mxu0 %v6440_v59  ;;  %4298 = vmatprep.subr.bf16.mxu1 %v6458_v10  ;;  %v6601_v59 = vmov (!%p5510_p13), 0.0   ;;  %v4469_v10 = vand.u32 (!%p5510_p13), 127, %v4468_v9 }
0x163a   :  { %4258 = vmatpush1.bf16.msra.mxu0 %v6444_v3  ;;  %4299 = vmatpush1.bf16.msra.mxu1 %v6460_v12  ;;  %v6494_v3 = vld [vmem:[%s8180_s7 + $0x18] sm:$0xff] (!%p5510_p13)  }
0x163b   :  { %4259 = vmatprep.subr.bf16.mxu0 %v6446_v4  ;;  %4300 = vmatprep.subr.bf16.mxu1 %v6461_v13  ;;  %v6495_v4 = vld [vmem:[%s8180_s7 + $0x20] sm:$0xff] (!%p5510_p13)  }
0x163e   :  { %4260 = vmatpush1.bf16.msra.mxu0 %v6450_v7  ;;  %4301 = vmatpush1.bf16.msra.mxu1 %v6463_v16  ;;  %v6497_v7 = vld [vmem:[%s8180_s7 + $0x30] sm:$0xff] (!%p5510_p13)  }
0x163f   :  { %4261 = vmatprep.subr.bf16.mxu0 %v6452_v11  ;;  %4302 = vmatprep.subr.bf16.mxu1 %v6464_v17  ;;  %v4470_v11 = vcvt.s32.f32 (!%p5510_p13), %v4469_v10 }
0x1642   :  { %4262 = vmatpush1.bf16.msra.mxu0 %v6456_v15  ;;  %4303 = vmatpush1.bf16.msra.mxu1 %v6466_v19  ;;  %v6603_v15 = vmov (!%p5510_p13), 1.0|1.0  }
0x1643   :  { %5828 = vmatprep.subr.bf16.mxu0 %v6587_v31 }
0x1645   :  { %4280 = vmatmul.mubr.bf16.vlgmr.msra.gmra.mrb[0].mxu0 %v4054_v18  ;;  %4321 = vmatmul.mubr.bf16.vlgmr.msra.gmra.mrb[0].mxu1 %v4054_v18 }
0x1646   :  { %5844 = vmatprep.mubr.msk.bf16.mxu0 %vm6588_vm0, %v6587_v31  ;;  %5829 = vmatpush3.bf16.msra.mxu0 %v6467_v20 }
0x1647   :  { %5830 = vmatprep.subr.bf16.mxu0 %v6587_v31 }
0x164a   :  { %5831 = vmatpush3.bf16.msra.mxu0 %v6468_v21 }
0x164b   :  { %5832 = vmatprep.subr.bf16.mxu0 %v6587_v31 }
0x164e   :  { %5833 = vmatpush3.bf16.msra.mxu0 %v6469_v22 }
0x164f   :  { %5834 = vmatprep.subr.bf16.mxu0 %v6587_v31 }
0x1652   :  { %5835 = vmatpush3.bf16.msra.mxu0 %v6470_v23 }
0x1653   :  { %5836 = vmatprep.subr.bf16.mxu0 %v6587_v31 }
0x1656   :  { %5837 = vmatpush3.bf16.msra.mxu0 %v6471_v24 }
0x1657   :  { %5838 = vmatprep.subr.bf16.mxu0 %v6587_v31 }
0x165a   :  { %5839 = vmatpush3.bf16.msra.mxu0 %v6472_v27 }
0x165b   :  { %5840 = vmatprep.subr.bf16.mxu0 %v6587_v31 }
0x165e   :  { %5841 = vmatpush3.bf16.msra.mxu0 %v6473_v28 }
0x165f   :  { %5842 = vmatprep.subr.bf16.mxu0 %v6587_v31 }
0x1662   :  { %5843 = vmatpush3.bf16.msra.mxu0 %v6474_v29 }
0x1663   :  { %5848 = vmatprep.subr.bf16.mxu0 (!%p5510_p13), %v6601_v59 }
0x1718   :  { %v4281_v30 = vpop.f32.mrb[0].mxu0  ;;  %v4322_v63 = vpop.f32.mrb[0].mxu1 }
0x1719   :  { %v5497_v26 = vmul.f32 -1.442695, %v4281_v30  ;;  %v4283_v34 = vpop.f32.mrb[1].mxu0  ;;  %v4324_v25 = vpop.f32.mrb[1].mxu1 }
0x171a   :  { %v5498_v57 = vmul.f32 -1.442695, %v4283_v34  ;;  %v4285_v61 = vpop.f32.mrb[2].mxu0  ;;  %v4326_v33 = vpop.f32.mrb[2].mxu1  ;;  %v5499_v36 = vmul.f32 -1.442695, %v4324_v25 }
0x171b   :  { %6475 = vpow2.f32 %v5497_v26  ;;  %v4286_v62 = vpop.f32.mrb[3].mxu0  ;;  %v4327_v35 = vpop.f32.mrb[3].mxu1 }
0x171c   :  { %6477 = vpow2.f32 %v5498_v57 }
0x171d   :  { %6479 = vpow2.f32 %v5499_v36 }
0x171e   :  { %6481 = vtanh.f32 %v4322_v63 }
0x1725   :  { %v6476_v37 = vpop.eup %6475 }
0x1726   :  { %v6478_v38 = vpop.eup %6477  ;;  %v4332_v39 = vadd.f32 1.0, %v6476_v37 }
0x1727   :  { %v4338_v40 = vadd.f32 1.0, %v6478_v38  ;;  %v6480_v41 = vpop.eup %6479 }
0x1728   :  { %6483 = vrcp.f32 %v4332_v39  ;;  %v6482_v42 = vpop.eup %6481  ;;  %v4345_v45 = vadd.f32 1.0, %v6480_v41 }
0x1729   :  { %6485 = vrcp.f32 %v4338_v40 }
0x172a   :  { %6487 = vrcp.f32 %v4345_v45 }
0x1732   :  { %v6484_v44 = vpop.eup %6483 }
0x1733   :  { %v6486_v46 = vpop.eup %6485  ;;  %v4350_v0 = vmul.f32 %v6484_v44, %v6482_v42 }
0x1734   :  { %v4349_v47 = vmul.f32 %v6486_v46, %v4348_v43  ;;  %v6488_v49 = vpop.eup %6487 }
0x1736   :  { %v4351_v48 = vadd.f32 %v4350_v0, %v4349_v47 }
0x1738   :  { %6489 = vtanh.f32 %v4351_v48  ;;  %4355 = vst [vmem:[#allocation3] sm:$0xff] %v4351_v48 }
0x1742   :  { %v6490_v50 = vpop.eup %6489 }
0x1743   :  { %v4353_v51 = vmul.f32 %v6490_v50, %v6488_v49 }
0x1745   :  { %4354 = vst [vmem:[#allocation2] sm:$0xff] %v4353_v51  ;;  %v4356_v52 = vpack.c.bf16 %v4353_v51, %v4353_v51 }
0x1747   :  { %5845 = vmatmul.mubr.bf16.vlgmr.msra.gmra.mrb[4].mxu0 %v4356_v52 }
0x1748   :  { %5849 = vmatpush3.bf16.msra.mxu0 (!%p5510_p13), %v6491_v58  ;;  %5864 = vmatprep.mubr.msk.bf16.mxu0 (!%p5510_p13), %vm6602_vm3, %v6601_v59 }
0x1749   :  { %5850 = vmatprep.subr.bf16.mxu0 (!%p5510_p13), %v6601_v59 }
0x174c   :  { %5851 = vmatpush3.bf16.msra.mxu0 (!%p5510_p13), %v6492_v60 }
0x174d   :  { %5852 = vmatprep.subr.bf16.mxu0 (!%p5510_p13), %v6601_v59 }
0x1750   :  { %5853 = vmatpush3.bf16.msra.mxu0 (!%p5510_p13), %v6493_v1 }
0x1751   :  { %5854 = vmatprep.subr.bf16.mxu0 (!%p5510_p13), %v6601_v59 }
0x1754   :  { %5855 = vmatpush3.bf16.msra.mxu0 (!%p5510_p13), %v6494_v3 }
0x1755   :  { %5856 = vmatprep.subr.bf16.mxu0 (!%p5510_p13), %v6601_v59 }
0x1758   :  { %5857 = vmatpush3.bf16.msra.mxu0 (!%p5510_p13), %v6495_v4 }
0x1759   :  { %5858 = vmatprep.subr.bf16.mxu0 (!%p5510_p13), %v6601_v59 }
0x175c   :  { %5859 = vmatpush3.bf16.msra.mxu0 (!%p5510_p13), %v6496_v5 }
0x175d   :  { %5860 = vmatprep.subr.bf16.mxu0 (!%p5510_p13), %v6601_v59 }
0x1760   :  { %5861 = vmatpush3.bf16.msra.mxu0 (!%p5510_p13), %v6497_v7 }
0x1761   :  { %5862 = vmatprep.subr.bf16.mxu0 (!%p5510_p13), %v6601_v59 }
0x1764   :  { %5863 = vmatpush3.bf16.msra.mxu0 (!%p5510_p13), %v6498_v8 }
0x1817   :  { %4467 = sbr.rel (%p5510_p13) target bundleno = 6676 (0x1a14), region = 65 }
0x181a   :  { %v4455_v53 = vpop.f32.mrb[4].mxu0 }
0x181b   :  { %v4456_v6 = vadd.f32 %v7352_v32, %v4455_v53  ;;  %v5846_v54 = vpop.f32.mrb[5].mxu0 }
0x181c   :  { %v4458_v55 = vpop.f32.mrb[6].mxu0 }
0x181d   :  { %5508 = vst [vmem:[%s8181_s8 + $0x20] sm:$0xff] %v4456_v6  ;;  %v5847_v56 = vpop.f32.mrb[7].mxu0  ;;  %4471 = vmax.xlane.f32.xlu0 (!%p5510_p13), %v4456_v6 }
0x18aa   :  { %v4472_v12 = vpop.xlane.xlu0 %4471 }
0x18ab   :  { %vm4473_vm2 = vcmp.ge.f32.partialorder %v4456_v6, %v4472_v12 }
0x18ac   :  { %v4474_v13 = vsel %vm4473_vm2, %v4470_v11, 128.0 }
0x18ad   :  { %4475 = vmin.xlane.f32.xlu0 %v4474_v13 }
0x193a   :  { %v4476_v14 = vpop.xlane.xlu0 %4475 }
0x193b   :  { %vm4477_vm4 = vcmp.eq.f32.partialorder %v4470_v11, %v4476_v14 }
0x193c   :  { %vm5520_vm5 = vmpackc.low %vm4477_vm4, %vm4477_vm4 }
0x193d   :  { %5865 = vmatmul.mubr.msk.bf16.vlgmr.msra.gmra.mrb[0].mxu0 %vm5520_vm5, %v6603_v15 }
0x1a10   :  { %v4579_v16 = vpop.f32.mrb[0].mxu0 }
0x1a11   :  { %4585 = vst [vmem:[#allocation4] sm:$0xff] %v4579_v16  ;;  %v5866_v17 = vpop.f32.mrb[1].mxu0 }
0x1a12   :  { %v4582_v18 = vpop.f32.mrb[2].mxu0 }
0x1a13   :  { %v5867_v19 = vpop.f32.mrb[3].mxu0 }
0x1a14 PF:  { %s5522_s7 = sld [smem:[#allocation6 + $0x5]] }
0x1a1a   :  { %p5523_p0 = scmp.eq.s32.totalorder %s5522_s7, 0 }
0x1a1b   :  { %v5524_v20 = vld [vmem:[%s8175_s2 + $0x28] sm:$0xff] (!%p5523_p0) }
0x1a1c   :  { %4590 = sbr.rel (%p5523_p0) target bundleno = 6691 (0x1a23), region = 69  ;;  %4593 = vst [vmem:[#allocation4] sm:$0xff] (!%p5523_p0), %v5524_v20 }
0x1a23 PF:  { %v6499_v21 = vld [vmem:[%s8177_s4 + $0x4] ss:$16 sps:$4 sm:$0xff]   ;;  %4822 = vmatprep.mubr.bf16.mxu0 %v6586_v2  ;;  %4863 = vmatprep.mubr.bf16.mxu1 %v6586_v2  ;;  %v6501_v22 = vld [vmem:[%s8177_s4] ss:$16 sps:$4 sm:$0xff]   ;;  %v6510_v2 = vld [vmem:[%s8177_s4 + $0xc] ss:$16 sps:$4 sm:$0xff]  }
0x1a24   :  { %4790 = vmatprep.subr.bf16.mxu0 %v6499_v21  ;;  %v6502_v23 = vld [vmem:[%s8177_s4 + $0x24] ss:$16 sps:$4 sm:$0xff]   ;;  %v6504_v24 = vld [vmem:[%s8177_s4 + $0x20] ss:$16 sps:$4 sm:$0xff]   ;;  %v6513_v28 = vld [vmem:[%s8177_s4 + $0x8] ss:$16 sps:$4 sm:$0xff]   ;;  %4831 = vmatprep.subr.bf16.mxu1 %v6510_v2 }
0x1a25   :  { %4791 = vmatpush1.bf16.msra.mxu0 %v6501_v22  ;;  %v6505_v27 = vld [vmem:[%s8177_s4 + $0x44] ss:$16 sps:$4 sm:$0xff]   ;;  %v6507_v29 = vld [vmem:[%s8177_s4 + $0x40] ss:$16 sps:$4 sm:$0xff]   ;;  %4832 = vmatpush1.bf16.msra.mxu1 %v6513_v28  ;;  %v6516_v26 = vld [vmem:[%s8177_s4 + $0x2c] ss:$16 sps:$4 sm:$0xff]  }
0x1a26   :  { %4792 = vmatprep.subr.bf16.mxu0 %v6502_v23  ;;  %v6508_v30 = vld [vmem:[%s8177_s4 + $0x64] ss:$16 sps:$4 sm:$0xff]   ;;  %v6519_v34 = vld [vmem:[%s8177_s4 + $0x28] ss:$16 sps:$4 sm:$0xff]   ;;  %4833 = vmatprep.subr.bf16.mxu1 %v6516_v26  ;;  %v6512_v57 = vld [vmem:[%s8177_s4 + $0x60] ss:$16 sps:$4 sm:$0xff]  }
0x1a27   :  { %v6514_v61 = vld [vmem:[%s8177_s4 + $0x84] ss:$16 sps:$4 sm:$0xff]   ;;  %v6522_v62 = vld [vmem:[%s8177_s4 + $0x4c] ss:$16 sps:$4 sm:$0xff]   ;;  %v6525_v63 = vld [vmem:[%s8177_s4 + $0x48] ss:$16 sps:$4 sm:$0xff]  }
0x1a28   :  { %v6528_v25 = vld [vmem:[%s8177_s4 + $0x6c] ss:$16 sps:$4 sm:$0xff]   ;;  %v6518_v33 = vld [vmem:[%s8177_s4 + $0x80] ss:$16 sps:$4 sm:$0xff]   ;;  %v6520_v35 = vld [vmem:[%s8177_s4 + $0xa4] ss:$16 sps:$4 sm:$0xff]  }
0x1a29   :  { %4793 = vmatpush1.bf16.msra.mxu0 %v6504_v24  ;;  %4834 = vmatpush1.bf16.msra.mxu1 %v6519_v34  ;;  %v6531_v36 = vld [vmem:[%s8177_s4 + $0x68] ss:$16 sps:$4 sm:$0xff]   ;;  %v6534_v37 = vld [vmem:[%s8177_s4 + $0x8c] ss:$16 sps:$4 sm:$0xff]   ;;  %v6524_v38 = vld [vmem:[%s8177_s4 + $0xa0] ss:$16 sps:$4 sm:$0xff]  }
0x1a2a   :  { %4794 = vmatprep.subr.bf16.mxu0 %v6505_v27  ;;  %4835 = vmatprep.subr.bf16.mxu1 %v6522_v62  ;;  %v6526_v39 = vld [vmem:[%s8177_s4 + $0xc4] ss:$16 sps:$4 sm:$0xff]   ;;  %v6537_v40 = vld [vmem:[%s8177_s4 + $0x88] ss:$16 sps:$4 sm:$0xff]   ;;  %v6530_v41 = vld [vmem:[%s8177_s4 + $0xc0] ss:$16 sps:$4 sm:$0xff]  }
0x1a2b   :  { %v4594_v42 = vld [vmem:[#allocation4] sm:$0xff]  ;;  %v4595_v43 = vld [vmem:[#allocation2] sm:$0xff]  ;;  %v6538_v44 = vld [vmem:[%s8177_s4 + $0xac] ss:$16 sps:$4 sm:$0xff]  }
0x1a2c   :  { %v6532_v45 = vld [vmem:[%s8177_s4 + $0xe4] ss:$16 sps:$4 sm:$0xff]   ;;  %v6540_v46 = vld [vmem:[%s8177_s4 + $0xa8] ss:$16 sps:$4 sm:$0xff]   ;;  %v6541_v0 = vld [vmem:[%s8177_s4 + $0xcc] ss:$16 sps:$4 sm:$0xff]   ;;  %v4596_v47 = vadd.f32 %v4595_v43, %v4594_v42 }
0x1a2d   :  { %4795 = vmatpush1.bf16.msra.mxu0 %v6507_v29  ;;  %4836 = vmatpush1.bf16.msra.mxu1 %v6525_v63  ;;  %v6536_v48 = vld [vmem:[%s8177_s4 + $0xe0] ss:$16 sps:$4 sm:$0xff]   ;;  %v6543_v49 = vld [vmem:[%s8177_s4 + $0xc8] ss:$16 sps:$4 sm:$0xff]   ;;  %v6544_v50 = vld [vmem:[%s8177_s4 + $0xec] ss:$16 sps:$4 sm:$0xff]  }
0x1a2e   :  { %4796 = vmatprep.subr.bf16.mxu0 %v6508_v30  ;;  %4837 = vmatprep.subr.bf16.mxu1 %v6528_v25  ;;  %v4597_v51 = vpack.c.bf16 %v4596_v47, %v4596_v47  ;;  %v6546_v52 = vld [vmem:[%s8177_s4 + $0xe8] ss:$16 sps:$4 sm:$0xff]   ;;  %v6547_v53 = vld [vmem:[%s8178_s5] sm:$0xff]   ;;  %v6549_v54 = vld [vmem:[%s8178_s5 + $0x10] sm:$0xff]  }
0x1a2f   :  { %v6548_v6 = vld [vmem:[%s8178_s5 + $0x8] sm:$0xff]   ;;  %v6550_v55 = vld [vmem:[%s8178_s5 + $0x18] sm:$0xff]   ;;  %v6551_v56 = vld [vmem:[%s8178_s5 + $0x20] sm:$0xff]  }
0x1a30   :  { %v6552_v58 = vld [vmem:[%s8178_s5 + $0x28] sm:$0xff]   ;;  %v6553_v59 = vld [vmem:[%s8178_s5 + $0x30] sm:$0xff]   ;;  %v6554_v60 = vld [vmem:[%s8178_s5 + $0x38] sm:$0xff]  }
0x1a31   :  { %4797 = vmatpush1.bf16.msra.mxu0 %v6512_v57  ;;  %4838 = vmatpush1.bf16.msra.mxu1 %v6531_v36  ;;  %v4891_v19 = vld [vmem:[#allocation3] sm:$0xff] }
0x1a32   :  { %4798 = vmatprep.subr.bf16.mxu0 %v6514_v61  ;;  %4839 = vmatprep.subr.bf16.mxu1 %v6534_v37 }
0x1a35   :  { %4799 = vmatpush1.bf16.msra.mxu0 %v6518_v33  ;;  %4840 = vmatpush1.bf16.msra.mxu1 %v6537_v40 }
0x1a36   :  { %4800 = vmatprep.subr.bf16.mxu0 %v6520_v35  ;;  %4841 = vmatprep.subr.bf16.mxu1 %v6538_v44 }
0x1a39   :  { %4801 = vmatpush1.bf16.msra.mxu0 %v6524_v38  ;;  %4842 = vmatpush1.bf16.msra.mxu1 %v6540_v46 }
0x1a3a   :  { %4802 = vmatprep.subr.bf16.mxu0 %v6526_v39  ;;  %4843 = vmatprep.subr.bf16.mxu1 %v6541_v0 }
0x1a3d   :  { %4803 = vmatpush1.bf16.msra.mxu0 %v6530_v41  ;;  %4844 = vmatpush1.bf16.msra.mxu1 %v6543_v49 }
0x1a3e   :  { %4804 = vmatprep.subr.bf16.mxu0 %v6532_v45  ;;  %4845 = vmatprep.subr.bf16.mxu1 %v6544_v50 }
0x1a41   :  { %4805 = vmatpush1.bf16.msra.mxu0 %v6536_v48  ;;  %4846 = vmatpush1.bf16.msra.mxu1 %v6546_v52 }
0x1a42   :  { %5868 = vmatprep.subr.bf16.mxu0 %v6587_v31 }
0x1a44   :  { %4823 = vmatmul.mubr.bf16.vlgmr.msra.gmra.mrb[0].mxu0 %v4597_v51  ;;  %4864 = vmatmul.mubr.bf16.vlgmr.msra.gmra.mrb[0].mxu1 %v4597_v51 }
0x1a45   :  { %5884 = vmatprep.mubr.msk.bf16.mxu0 %vm6588_vm0, %v6587_v31  ;;  %5869 = vmatpush3.bf16.msra.mxu0 %v6547_v53 }
0x1a46   :  { %5870 = vmatprep.subr.bf16.mxu0 %v6587_v31 }
0x1a49   :  { %5871 = vmatpush3.bf16.msra.mxu0 %v6548_v6 }
0x1a4a   :  { %5872 = vmatprep.subr.bf16.mxu0 %v6587_v31 }
0x1a4d   :  { %5873 = vmatpush3.bf16.msra.mxu0 %v6549_v54 }
0x1a4e   :  { %5874 = vmatprep.subr.bf16.mxu0 %v6587_v31 }
0x1a51   :  { %5875 = vmatpush3.bf16.msra.mxu0 %v6550_v55 }
0x1a52   :  { %5876 = vmatprep.subr.bf16.mxu0 %v6587_v31 }
0x1a55   :  { %5877 = vmatpush3.bf16.msra.mxu0 %v6551_v56 }
0x1a56   :  { %5878 = vmatprep.subr.bf16.mxu0 %v6587_v31 }
0x1a59   :  { %5879 = vmatpush3.bf16.msra.mxu0 %v6552_v58 }
0x1a5a   :  { %5880 = vmatprep.subr.bf16.mxu0 %v6587_v31 }
0x1a5d   :  { %5881 = vmatpush3.bf16.msra.mxu0 %v6553_v59 }
0x1a5e   :  { %5882 = vmatprep.subr.bf16.mxu0 %v6587_v31 }
0x1a61   :  { %5883 = vmatpush3.bf16.msra.mxu0 %v6554_v60 }
0x1b17   :  { %v4824_v1 = vpop.f32.mrb[0].mxu0  ;;  %v4865_v9 = vpop.f32.mrb[0].mxu1 }
0x1b18   :  { %v5557_v3 = vmul.f32 -1.442695, %v4824_v1  ;;  %v4826_v4 = vpop.f32.mrb[1].mxu0  ;;  %v4867_v10 = vpop.f32.mrb[1].mxu1 }
0x1b19   :  { %v5558_v5 = vmul.f32 -1.442695, %v4826_v4  ;;  %v4828_v7 = vpop.f32.mrb[2].mxu0  ;;  %v4869_v11 = vpop.f32.mrb[2].mxu1  ;;  %v5559_v13 = vmul.f32 -1.442695, %v4867_v10 }
0x1b1a   :  { %6555 = vpow2.f32 %v5557_v3  ;;  %v4829_v8 = vpop.f32.mrb[3].mxu0  ;;  %v4870_v12 = vpop.f32.mrb[3].mxu1 }
0x1b1b   :  { %6557 = vpow2.f32 %v5558_v5 }
0x1b1c   :  { %6559 = vpow2.f32 %v5559_v13 }
0x1b1d   :  { %6561 = vtanh.f32 %v4865_v9 }
0x1b24   :  { %v6556_v14 = vpop.eup %6555 }
0x1b25   :  { %v6558_v15 = vpop.eup %6557  ;;  %v4875_v16 = vadd.f32 1.0, %v6556_v14 }
0x1b26   :  { %v4881_v31 = vadd.f32 1.0, %v6558_v15  ;;  %v6560_v17 = vpop.eup %6559 }
0x1b27   :  { %6563 = vrcp.f32 %v4875_v16  ;;  %v6562_v18 = vpop.eup %6561  ;;  %v4888_v21 = vadd.f32 1.0, %v6560_v17 }
0x1b28   :  { %6565 = vrcp.f32 %v4881_v31 }
0x1b29   :  { %6567 = vrcp.f32 %v4888_v21 }
0x1b31   :  { %v6564_v20 = vpop.eup %6563 }
0x1b32   :  { %v6566_v22 = vpop.eup %6565  ;;  %v4893_v23 = vmul.f32 %v6564_v20, %v6562_v18 }
0x1b33   :  { %v4892_v24 = vmul.f32 %v6566_v22, %v4891_v19  ;;  %v6568_v2 = vpop.eup %6567 }
0x1b35   :  { %v4894_v27 = vadd.f32 %v4893_v23, %v4892_v24 }
0x1b37   :  { %6569 = vtanh.f32 %v4894_v27  ;;  %4898 = vst [vmem:[#allocation3] sm:$0xff] %v4894_v27 }
0x1b41   :  { %v6570_v28 = vpop.eup %6569 }
0x1b42   :  { %v4896_v29 = vmul.f32 %v6570_v28, %v6568_v2 }
0x1b44   :  { %4897 = vst [vmem:[#allocation2] sm:$0xff] %v4896_v29  ;;  %v4899_v30 = vpack.c.bf16 %v4896_v29, %v4896_v29 }
0x1b46   :  { %5885 = vmatmul.mubr.bf16.vlgmr.msra.gmra.mrb[4].mxu0 %v4899_v30 }
0x1c19   :  { %v4998_v26 = vpop.f32.mrb[4].mxu0 }
0x1c1a   :  { %v4999_v34 = vadd.f32 %v7352_v32, %v4998_v26  ;;  %v5886_v57 = vpop.f32.mrb[5].mxu0 }
0x1c1b   :  { %v5001_v61 = vpop.f32.mrb[6].mxu0 }
0x1c1c   :  { %5568 = vst [vmem:[%s8181_s8 + $0x28] sm:$0xff] %v4999_v34  ;;  %v5887_v62 = vpop.f32.mrb[7].mxu0 }

</bundles_post_ra>
